<compile_context>
chip_gen: v6e
topology: v6e:2x2x1
jax: 0.10.0
libtpu: 0.0.40
codegen_flags: <defaults>
</compile_context>

<pallas_src>
import jax
import jax.numpy as jnp
import numpy as np
from jax.experimental import pallas as pl
from jax.experimental.pallas import tpu as pltpu


def _shifted_taps_3x3(x):
    """Nine copies of x (H, W, C), shifted by (ky-1, kx-1) with a zero halo.

    taps[ky*3 + kx][y, x, :] == x[y + ky - 1, x + kx - 1, :] (zero out of
    bounds), i.e. exactly the nn.Conv2d(kernel=3, stride=1, padding=1) taps.
    Built with static slices + zero strips only (no padded scratch buffer).
    """
    H, W, C = x.shape
    zrow = jnp.zeros((1, W, C), x.dtype)
    zcol = jnp.zeros((H, 1, C), x.dtype)
    rows = [
        jnp.concatenate([zrow, x[:H - 1]], axis=0),   # ky = 0  (dy = -1)
        x,                                            # ky = 1
        jnp.concatenate([x[1:], zrow], axis=0),       # ky = 2  (dy = +1)
    ]
    taps = []
    for xy in rows:
        taps.append(jnp.concatenate([zcol, xy[:, :W - 1]], axis=1))  # kx = 0
        taps.append(xy)                                              # kx = 1
        taps.append(jnp.concatenate([xy[:, 1:], zcol], axis=1))      # kx = 2
    return taps


def _conv3x3_fused(x_hwc, w_ref, b_ref):
    """3x3 same-conv as a single (H*W, 9C) x (9C, C) MXU matmul, f32 accum."""
    H, W, C = x_hwc.shape
    patches = jnp.concatenate(_shifted_taps_3x3(x_hwc), axis=-1)   # (H, W, 9C)
    patches = patches.reshape(H * W, 9 * C)
    acc = jnp.dot(patches, w_ref[...], preferred_element_type=jnp.float32)
    return acc + b_ref[...].astype(jnp.float32)                    # (H*W, C)


def _resblock_kernel(x_ref, w1_ref, b1_ref, w2_ref, b2_ref, out_ref):
    """One grid step == one batch element.

    x_ref  : (H, W, C)   unpadded NHWC frame (halo handled in-register)
    w1_ref : (9*C, C)    conv1 weights, im2col-fused (tap-major, Cin-minor)
    b1_ref : (1, C)
    w2_ref : (9*C, C)
    b2_ref : (1, C)
    out_ref: (C, H*W)    lane-dense output (spatial on the 128-lane axis)
    """
    H, W, C = x_ref.shape
    x = x_ref[...]                                   # native dtype, no upcast

    h1 = _conv3x3_fused(x, w1_ref, b1_ref)           # conv1 (f32 accumulate)
    h1 = jnp.maximum(h1, 0.0)                        # ReLU
    h1 = h1.reshape(H, W, C).astype(x.dtype)         # stays in vregs, no scratch

    y = _conv3x3_fused(h1, w2_ref, b2_ref)           # conv2
    y = y + x.reshape(H * W, C)                      # residual add

    out_ref[...] = y.T.astype(out_ref.dtype)         # (C, H*W) dense store


def resblock_pallas(x_nchw, w1_oihw, b1, w2_oihw, b2):
    """Pallas implementation of ResBlock.forward on NCHW input."""
    N, C, H, W = x_nchw.shape

    # NCHW -> NHWC (layout plumbing in XLA; no spatial zero-padding in HBM).
    x_nhwc = jnp.transpose(x_nchw, (0, 2, 3, 1))

    # OIHW -> HWIO -> (9*Cin, Cout); row index = (ky*3 + kx)*Cin + cin, which
    # matches the tap/channel order of the im2col patches built in-kernel.
    w1f = jnp.transpose(w1_oihw, (2, 3, 1, 0)).reshape(9 * C, C)
    w2f = jnp.transpose(w2_oihw, (2, 3, 1, 0)).reshape(9 * C, C)
    b1r = b1.reshape(1, C)
    b2r = b2.reshape(1, C)

    out_flat = pl.pallas_call(
        _resblock_kernel,
        out_shape=jax.ShapeDtypeStruct((N, C, H * W), x_nchw.dtype),
        grid_spec=pltpu.PrefetchScalarGridSpec(
            num_scalar_prefetch=0,
            grid=(N,),
            in_specs=[
                pl.BlockSpec((pl.Squeezed(), H, W, C), lambda n: (n, 0, 0, 0)),
                pl.BlockSpec((9 * C, C), lambda n: (0, 0)),
                pl.BlockSpec((1, C), lambda n: (0, 0)),
                pl.BlockSpec((9 * C, C), lambda n: (0, 0)),
                pl.BlockSpec((1, C), lambda n: (0, 0)),
            ],
            out_specs=pl.BlockSpec((pl.Squeezed(), C, H * W), lambda n: (n, 0, 0)),
        ),
        compiler_params=pltpu.CompilerParams(dimension_semantics=("parallel",)),
    )(x_nhwc, w1f, b1r, w2f, b2r)

    # (N, C, H*W) is already channels-first: NCHW output is a free reshape.
    return out_flat.reshape(N, C, H, W)


def _reference(x_nchw, w1, b1, w2, b2):
    """Pure-JAX reference (matches nn.Conv2d semantics, NCHW / OIHW)."""
    dn = jax.lax.conv_dimension_numbers(x_nchw.shape, w1.shape, ("NCHW", "OIHW", "NCHW"))
    h = jax.lax.conv_general_dilated(x_nchw, w1, (1, 1), ((1, 1), (1, 1)), dimension_numbers=dn)
    h = h + b1.reshape(1, -1, 1, 1)
    h = jnp.maximum(h, 0.0)
    y = jax.lax.conv_general_dilated(h, w2, (1, 1), ((1, 1), (1, 1)), dimension_numbers=dn)
    y = y + b2.reshape(1, -1, 1, 1)
    return y + x_nchw


if __name__ == "__main__":
    N, C, H, W = 2, 4, 16, 16

    key = jax.random.PRNGKey(0)
    kx, kw1, kb1, kw2, kb2 = jax.random.split(key, 5)

    x = jax.random.normal(kx, (N, C, H, W), dtype=jnp.float32)
    # Deterministic synthetic parameters (shapes from nn.Conv2d(C, C, 3, 1, 1))
    w1 = jax.random.normal(kw1, (C, C, 3, 3), dtype=jnp.float32) * 0.1
    b1 = jax.random.normal(kb1, (C,), dtype=jnp.float32) * 0.1
    w2 = jax.random.normal(kw2, (C, C, 3, 3), dtype=jnp.float32) * 0.1
    b2 = jax.random.normal(kb2, (C,), dtype=jnp.float32) * 0.1

    out = resblock_pallas(x, w1, b1, w2, b2)
    out = jax.block_until_ready(out)

    ref = jax.block_until_ready(_reference(x, w1, b1, w2, b2))
    np.testing.assert_allclose(np.asarray(out), np.asarray(ref), rtol=1e-4, atol=1e-4)

    print("KERNEL_OK")
</pallas_src>

<mosaic_0001>
module attributes {stable_mosaic.version = 11 : i64} {
  func.func @_resblock_kernel(%arg0: i32, %arg1: memref<1x16x16x4xf32, #tpu.memory_space<vmem>>, %arg2: memref<36x4xf32, #tpu.memory_space<vmem>>, %arg3: memref<1x4xf32, #tpu.memory_space<vmem>>, %arg4: memref<36x4xf32, #tpu.memory_space<vmem>>, %arg5: memref<1x4xf32, #tpu.memory_space<vmem>>, %arg6: memref<1x4x256xf32, #tpu.memory_space<vmem>>) attributes {dimension_semantics = [#tpu.dimension_semantics<parallel>], iteration_bounds = array<i64: 2>, scalar_prefetch = 0 : i64, scratch_operands = 0 : i64, tpu.core_type = #tpu.core_type<tc>, window_params = [{transform_indices = @transform_0, window_bounds = array<i64: 1, 16, 16, 4>}, {pipeline_mode = #tpu.pipeline_mode<synchronous>, transform_indices = @transform_1, window_bounds = array<i64: 36, 4>}, {pipeline_mode = #tpu.pipeline_mode<synchronous>, transform_indices = @transform_2, window_bounds = array<i64: 1, 4>}, {pipeline_mode = #tpu.pipeline_mode<synchronous>, transform_indices = @transform_3, window_bounds = array<i64: 36, 4>}, {pipeline_mode = #tpu.pipeline_mode<synchronous>, transform_indices = @transform_4, window_bounds = array<i64: 1, 4>}, {transform_indices = @transform_5, window_bounds = array<i64: 1, 4, 256>}]} {
    %c0 = arith.constant 0 : index
    %c0_0 = arith.constant 0 : index
    %c0_1 = arith.constant 0 : index
    %c0_2 = arith.constant 0 : index
    %0 = vector.load %arg1[%c0, %c0_0, %c0_1, %c0_2] : memref<1x16x16x4xf32, #tpu.memory_space<vmem>>, vector<1x16x16x4xf32>
    %1 = vector.shape_cast %0 : vector<1x16x16x4xf32> to vector<16x16x4xf32>
    %cst = arith.constant 0.000000e+00 : f32
    %2 = vector.broadcast %cst : f32 to vector<1x16x4xf32>
    %cst_3 = arith.constant 0.000000e+00 : f32
    %3 = vector.broadcast %cst_3 : f32 to vector<16x1x4xf32>
    %4 = vector.extract_strided_slice %1 {offsets = [0, 0, 0], sizes = [15, 16, 4], strides = [1, 1, 1]} : vector<16x16x4xf32> to vector<15x16x4xf32>
    %5 = tpu.concatenate %2, %4 in 0 : vector<1x16x4xf32>, vector<15x16x4xf32> -> vector<16x16x4xf32>
    %6 = vector.extract_strided_slice %1 {offsets = [1, 0, 0], sizes = [15, 16, 4], strides = [1, 1, 1]} : vector<16x16x4xf32> to vector<15x16x4xf32>
    %7 = tpu.concatenate %6, %2 in 0 : vector<15x16x4xf32>, vector<1x16x4xf32> -> vector<16x16x4xf32>
    %8 = vector.extract_strided_slice %5 {offsets = [0, 0, 0], sizes = [16, 15, 4], strides = [1, 1, 1]} : vector<16x16x4xf32> to vector<16x15x4xf32>
    %9 = tpu.concatenate %3, %8 in 1 : vector<16x1x4xf32>, vector<16x15x4xf32> -> vector<16x16x4xf32>
    %10 = vector.extract_strided_slice %5 {offsets = [0, 1, 0], sizes = [16, 15, 4], strides = [1, 1, 1]} : vector<16x16x4xf32> to vector<16x15x4xf32>
    %11 = tpu.concatenate %10, %3 in 1 : vector<16x15x4xf32>, vector<16x1x4xf32> -> vector<16x16x4xf32>
    %12 = vector.extract_strided_slice %1 {offsets = [0, 0, 0], sizes = [16, 15, 4], strides = [1, 1, 1]} : vector<16x16x4xf32> to vector<16x15x4xf32>
    %13 = tpu.concatenate %3, %12 in 1 : vector<16x1x4xf32>, vector<16x15x4xf32> -> vector<16x16x4xf32>
    %14 = vector.extract_strided_slice %1 {offsets = [0, 1, 0], sizes = [16, 15, 4], strides = [1, 1, 1]} : vector<16x16x4xf32> to vector<16x15x4xf32>
    %15 = tpu.concatenate %14, %3 in 1 : vector<16x15x4xf32>, vector<16x1x4xf32> -> vector<16x16x4xf32>
    %16 = vector.extract_strided_slice %7 {offsets = [0, 0, 0], sizes = [16, 15, 4], strides = [1, 1, 1]} : vector<16x16x4xf32> to vector<16x15x4xf32>
    %17 = tpu.concatenate %3, %16 in 1 : vector<16x1x4xf32>, vector<16x15x4xf32> -> vector<16x16x4xf32>
    %18 = vector.extract_strided_slice %7 {offsets = [0, 1, 0], sizes = [16, 15, 4], strides = [1, 1, 1]} : vector<16x16x4xf32> to vector<16x15x4xf32>
    %19 = tpu.concatenate %18, %3 in 1 : vector<16x15x4xf32>, vector<16x1x4xf32> -> vector<16x16x4xf32>
    %20 = tpu.concatenate %9, %5, %11, %13, %1, %15, %17, %7, %19 in 2 : vector<16x16x4xf32>, vector<16x16x4xf32>, vector<16x16x4xf32>, vector<16x16x4xf32>, vector<16x16x4xf32>, vector<16x16x4xf32>, vector<16x16x4xf32>, vector<16x16x4xf32>, vector<16x16x4xf32> -> vector<16x16x36xf32>
    %21 = vector.shape_cast %20 : vector<16x16x36xf32> to vector<256x36xf32>
    %c0_4 = arith.constant 0 : index
    %c0_5 = arith.constant 0 : index
    %22 = vector.load %arg2[%c0_4, %c0_5] : memref<36x4xf32, #tpu.memory_space<vmem>>, vector<36x4xf32>
    %cst_6 = arith.constant dense<0.000000e+00> : vector<256x4xf32>
    %23 = tpu.matmul %21, %22, %cst_6 {dimension_numbers = #tpu.dot_dimension_numbers<[1], [0], [0], [1], [0, 0, 1, 1], [], []>} : vector<256x36xf32>, vector<36x4xf32>, vector<256x4xf32> -> vector<256x4xf32>
    %c0_7 = arith.constant 0 : index
    %c0_8 = arith.constant 0 : index
    %24 = vector.load %arg3[%c0_7, %c0_8] : memref<1x4xf32, #tpu.memory_space<vmem>>, vector<1x4xf32>
    %25 = vector.broadcast %24 : vector<1x4xf32> to vector<256x4xf32>
    %26 = arith.addf %23, %25 : vector<256x4xf32>
    %cst_9 = arith.constant 0.000000e+00 : f32
    %27 = vector.broadcast %cst_9 : f32 to vector<256x4xf32>
    %28 = arith.maximumf %26, %27 : vector<256x4xf32>
    %29 = vector.shape_cast %28 : vector<256x4xf32> to vector<16x16x4xf32>
    %cst_10 = arith.constant 0.000000e+00 : f32
    %30 = vector.broadcast %cst_10 : f32 to vector<1x16x4xf32>
    %cst_11 = arith.constant 0.000000e+00 : f32
    %31 = vector.broadcast %cst_11 : f32 to vector<16x1x4xf32>
    %32 = vector.extract_strided_slice %29 {offsets = [0, 0, 0], sizes = [15, 16, 4], strides = [1, 1, 1]} : vector<16x16x4xf32> to vector<15x16x4xf32>
    %33 = tpu.concatenate %30, %32 in 0 : vector<1x16x4xf32>, vector<15x16x4xf32> -> vector<16x16x4xf32>
    %34 = vector.extract_strided_slice %29 {offsets = [1, 0, 0], sizes = [15, 16, 4], strides = [1, 1, 1]} : vector<16x16x4xf32> to vector<15x16x4xf32>
    %35 = tpu.concatenate %34, %30 in 0 : vector<15x16x4xf32>, vector<1x16x4xf32> -> vector<16x16x4xf32>
    %36 = vector.extract_strided_slice %33 {offsets = [0, 0, 0], sizes = [16, 15, 4], strides = [1, 1, 1]} : vector<16x16x4xf32> to vector<16x15x4xf32>
    %37 = tpu.concatenate %31, %36 in 1 : vector<16x1x4xf32>, vector<16x15x4xf32> -> vector<16x16x4xf32>
    %38 = vector.extract_strided_slice %33 {offsets = [0, 1, 0], sizes = [16, 15, 4], strides = [1, 1, 1]} : vector<16x16x4xf32> to vector<16x15x4xf32>
    %39 = tpu.concatenate %38, %31 in 1 : vector<16x15x4xf32>, vector<16x1x4xf32> -> vector<16x16x4xf32>
    %40 = vector.extract_strided_slice %29 {offsets = [0, 0, 0], sizes = [16, 15, 4], strides = [1, 1, 1]} : vector<16x16x4xf32> to vector<16x15x4xf32>
    %41 = tpu.concatenate %31, %40 in 1 : vector<16x1x4xf32>, vector<16x15x4xf32> -> vector<16x16x4xf32>
    %42 = vector.extract_strided_slice %29 {offsets = [0, 1, 0], sizes = [16, 15, 4], strides = [1, 1, 1]} : vector<16x16x4xf32> to vector<16x15x4xf32>
    %43 = tpu.concatenate %42, %31 in 1 : vector<16x15x4xf32>, vector<16x1x4xf32> -> vector<16x16x4xf32>
    %44 = vector.extract_strided_slice %35 {offsets = [0, 0, 0], sizes = [16, 15, 4], strides = [1, 1, 1]} : vector<16x16x4xf32> to vector<16x15x4xf32>
    %45 = tpu.concatenate %31, %44 in 1 : vector<16x1x4xf32>, vector<16x15x4xf32> -> vector<16x16x4xf32>
    %46 = vector.extract_strided_slice %35 {offsets = [0, 1, 0], sizes = [16, 15, 4], strides = [1, 1, 1]} : vector<16x16x4xf32> to vector<16x15x4xf32>
    %47 = tpu.concatenate %46, %31 in 1 : vector<16x15x4xf32>, vector<16x1x4xf32> -> vector<16x16x4xf32>
    %48 = tpu.concatenate %37, %33, %39, %41, %29, %43, %45, %35, %47 in 2 : vector<16x16x4xf32>, vector<16x16x4xf32>, vector<16x16x4xf32>, vector<16x16x4xf32>, vector<16x16x4xf32>, vector<16x16x4xf32>, vector<16x16x4xf32>, vector<16x16x4xf32>, vector<16x16x4xf32> -> vector<16x16x36xf32>
    %49 = vector.shape_cast %48 : vector<16x16x36xf32> to vector<256x36xf32>
    %c0_12 = arith.constant 0 : index
    %c0_13 = arith.constant 0 : index
    %50 = vector.load %arg4[%c0_12, %c0_13] : memref<36x4xf32, #tpu.memory_space<vmem>>, vector<36x4xf32>
    %cst_14 = arith.constant dense<0.000000e+00> : vector<256x4xf32>
    %51 = tpu.matmul %49, %50, %cst_14 {dimension_numbers = #tpu.dot_dimension_numbers<[1], [0], [0], [1], [0, 0, 1, 1], [], []>} : vector<256x36xf32>, vector<36x4xf32>, vector<256x4xf32> -> vector<256x4xf32>
    %c0_15 = arith.constant 0 : index
    %c0_16 = arith.constant 0 : index
    %52 = vector.load %arg5[%c0_15, %c0_16] : memref<1x4xf32, #tpu.memory_space<vmem>>, vector<1x4xf32>
    %53 = vector.broadcast %52 : vector<1x4xf32> to vector<256x4xf32>
    %54 = arith.addf %51, %53 : vector<256x4xf32>
    %55 = vector.shape_cast %1 : vector<16x16x4xf32> to vector<256x4xf32>
    %56 = arith.addf %54, %55 : vector<256x4xf32>
    %57 = tpu.transpose %56, [1, 0] : vector<256x4xf32> -> vector<4x256xf32>
    %c0_17 = arith.constant 0 : index
    %c0_18 = arith.constant 0 : index
    %c0_19 = arith.constant 0 : index
    %58 = vector.load %arg6[%c0_17, %c0_18, %c0_19] : memref<1x4x256xf32, #tpu.memory_space<vmem>>, vector<1x4x256xf32>
    %59 = vector.shape_cast %58 : vector<1x4x256xf32> to vector<4x256xf32>
    %60 = vector.shape_cast %57 : vector<4x256xf32> to vector<1x4x256xf32>
    tpu.vector_store %arg6[%c0_17, %c0_18, %c0_19], %60 {strides = array<i32>} : memref<1x4x256xf32, #tpu.memory_space<vmem>>, vector<1x4x256xf32>,
    return
  }
  func.func @transform_0(%arg0: i32) -> (i32, i32, i32, i32) {
    %c0_i32 = arith.constant 0 : i32
    %c0_i32_0 = arith.constant 0 : i32
    %c0_i32_1 = arith.constant 0 : i32
    %c0_i32_2 = arith.constant 0 : i32
    return %arg0, %c0_i32, %c0_i32_0, %c0_i32_1 : i32, i32, i32, i32
  }
  func.func @transform_1(%arg0: i32) -> (i32, i32) {
    %c0_i32 = arith.constant 0 : i32
    %c0_i32_0 = arith.constant 0 : i32
    %c0_i32_1 = arith.constant 0 : i32
    return %c0_i32, %c0_i32_0 : i32, i32
  }
  func.func @transform_2(%arg0: i32) -> (i32, i32) {
    %c0_i32 = arith.constant 0 : i32
    %c0_i32_0 = arith.constant 0 : i32
    %c0_i32_1 = arith.constant 0 : i32
    return %c0_i32, %c0_i32_0 : i32, i32
  }
  func.func @transform_3(%arg0: i32) -> (i32, i32) {
    %c0_i32 = arith.constant 0 : i32
    %c0_i32_0 = arith.constant 0 : i32
    %c0_i32_1 = arith.constant 0 : i32
    return %c0_i32, %c0_i32_0 : i32, i32
  }
  func.func @transform_4(%arg0: i32) -> (i32, i32) {
    %c0_i32 = arith.constant 0 : i32
    %c0_i32_0 = arith.constant 0 : i32
    %c0_i32_1 = arith.constant 0 : i32
    return %c0_i32, %c0_i32_0 : i32, i32
  }
  func.func @transform_5(%arg0: i32) -> (i32, i32, i32) {
    %c0_i32 = arith.constant 0 : i32
    %c0_i32_0 = arith.constant 0 : i32
    %c0_i32_1 = arith.constant 0 : i32
    return %arg0, %c0_i32, %c0_i32_0 : i32, i32, i32
  }
}

</mosaic_0001>

<bundles_post_ra>
// kernel: tpu_custom_call.1
= control target key start
LH: loop header
LB: loop body
LE: loop exit
PB: predicated region body
PF: predicated region fallthrough
CT: control target
= control target key end

     0   :  { %10 = vsyncpa [#allocation3], 0  ;;  %s7643_s0 = inlined_call_operand.vmem [shape: f32[2,16,16,4], index: 0, kind: input, shape index: {}]   ;;  %s7644_s1 = inlined_call_operand.vmem [shape: f32[36,4], index: 1, kind: input, shape index: {}]   ;;  %s7645_s2 = inlined_call_operand.vmem [shape: f32[1,4], index: 2, kind: input, shape index: {}]   ;;  %s7646_s3 = inlined_call_operand.vmem [shape: f32[36,4], index: 3, kind: input, shape index: {}]   ;;  %s7647_s4 = inlined_call_operand.vmem [shape: f32[1,4], index: 4, kind: input, shape index: {}]   ;;  %s7648_s5 = inlined_call_operand.hbm [shape: f32[2,4,256], index: 5, kind: output, shape index: {}]  }
   0x1   :  { %12 = vsyncpa [#allocation3 + $0x1], 0  ;;  %s4113_s18 = smov 0   ;;  %s4115_s19 = smov 0  }
   0x2   :  { %s4117_s20 = smov 0   ;;  %s4119_s21 = smov 0  }
   0x3 LB: > { %s4134_s22 = sadd.s32 4294967295, %s4071_s21   ;;  %s3644_s23 = sadd.s32 4294967294, %s4071_s21   ;;  %s4071_s21 = sphi %s4119_s21, %s8556_s21   ;;  %s4067_s20 = sphi %s4117_s20, %s8555_s20   ;;  %s4063_s19 = sphi %s4115_s19, %s8554_s19   ;;  %s4059_s18 = sphi %s4113_s18, %s8553_s18  }
   0x4   : > { %s4138_s24 = sadd.s32 1, %s4071_s21   ;;  %s135_s25 = sadd.s32 1, %s4067_s20 }
   0x5   : > { %s132_s26 = ssub.s32 %s4071_s21, %s4138_s24  ;;  %p145_p0 = scmp.ne.s32.totalorder %s4067_s20, %s4063_s19 }
   0x6   : > { %p133_p1 = scmp.eq.s32.totalorder %s132_s26, 0  ;;  %p146_p2 = scmp.eq.s32.totalorder %s4134_s22, 1 }
   0x7   : > { %p151_p3 = scmp.ne.s32.totalorder %s4063_s19, %s4059_s18  ;;  %p152_p4 = scmp.eq.s32.totalorder %s3644_s23, 1 }
   0x8   : > { %s4149_s27 = scalar_select %p133_p1, %s4067_s20, %s135_s25  }
   0x9   : > { %p4151_p5 = por %p146_p2, %p145_p0  ;;  %p4155_p6 = por %p152_p4, %p151_p3 }
   0xa   : > { %p3647_p7 = scmp.ge.s32.totalorder %s4071_s21, 1  ;;  %p190_p8 = scmp.lt.s32.totalorder %s4071_s21, 3 }
   0xc   : > { %p191_p9 = pnand %p3647_p7, %p190_p8 }
   0xe   : > { %194 = sbr.rel (%p191_p9) target bundleno = 1680 (0x690), region = 40 }
  0x13   : > { %p218_p10 = scmp.lt.s32.totalorder %s4134_s22, 1  ;;  %vm382_vm0 = vcmask 1046528   ;;  %v7649_v0 = vmov 0.0   ;;  %s4074_s30 = smov 4   ;;  %vm286_vm1 = vcmask 1040384   ;;  %vm1643_vm2 = vcmask 1043456  }
  0x14   : > { %474 = vrot.lane.b32.xlu0 %v7649_v0, %s4074_s30  ;;  %v383_v1 = vrot.slane %v7649_v0, 1  ;;  %s4075_s11 = smov 8   ;;  %s4076_s12 = smov 12   ;;  %vm1270_vm3 = vcmask 31744   ;;  %vm1336_vm4 = vcmask 97280   ;;  %vm1303_vm5 = vcmask 64512  }
  0x15   : > { %s219_s6 = scalar_select %p218_p10, %s4134_s22, 1  ;;  %vm1369_vm6 = vcmask 130048   ;;  %vm1402_vm7 = vcmask 162816   ;;  %vm1435_vm8 = vcmask 195584   ;;  %vm1468_vm9 = vcmask 228352  }
  0x16   : > { %v446_v2 = vsel %vm382_vm0, %v383_v1, 0.0  ;;  %s4077_s13 = smov 16   ;;  %s4078_s14 = smov 20   ;;  %vm1501_vm10 = vcmask 261120   ;;  %vm1546_vm11 = vcmask 293888  }
  0x17   : > { %s3724_s7 = sshll.u32 %s219_s6, 8  ;;  %v4167_v3 = vpack.i.bf16 %v446_v2, %v383_v1  ;;  %s4079_s15 = smov 24  }
  0x18   : > { %s4172_s10 = scalar_lea.vmem %s7643_s0, %s3724_s7  ;;  %s4080_s16 = smov 28  }
  0x19   : > { %7837 = vst [vmem:[#allocation5_spill] sm:$0xff] %v4167_v3  ;;  %v4175_v4 = vld [vmem:[%s4172_s10 + $0x8] sm:$0xff]  ;;  %v4178_v5 = vld [vmem:[%s4172_s10] sm:$0xff]  ;;  %v4185_v6 = vld [vmem:[%s4172_s10 + $0x10] sm:$0xff]  ;;  %s4081_s25 = smov 32  }
  0x1a   : > { %478 = vrot.lane.b32.xlu1 %v4175_v4, %s4074_s30  ;;  %476 = vrot.lane.b32.xlu0 %v4178_v5, %s4074_s30  ;;  %v4188_v7 = vld [vmem:[%s4172_s10 + $0x18] sm:$0xff]  ;;  %v4195_v8 = vld [vmem:[%s4172_s10 + $0x20] sm:$0xff]  ;;  %v385_v34 = vrot.slane %v4178_v5, 1  ;;  %v386_v35 = vrot.slane %v4175_v4, 1  ;;  %v388_v37 = vrot.slane %v4185_v6, 1 }
  0x1b   : > { %v4198_v9 = vld [vmem:[%s4172_s10 + $0x28] sm:$0xff]  ;;  %v4205_v10 = vld [vmem:[%s4172_s10 + $0x30] sm:$0xff]  ;;  %v4208_v11 = vld [vmem:[%s4172_s10 + $0x38] sm:$0xff]  ;;  %v389_v38 = vrot.slane %v4188_v7, 1  ;;  %v391_v41 = vrot.slane %v4195_v8, 1 }
  0x1c   : > { %v4215_v12 = vld [vmem:[%s4172_s10 + $0x40] sm:$0xff]  ;;  %v4218_v13 = vld [vmem:[%s4172_s10 + $0x48] sm:$0xff]  ;;  %v4225_v14 = vld [vmem:[%s4172_s10 + $0x50] sm:$0xff]  ;;  %v4327_v36 = vsel %vm382_vm0, %v385_v34, %v386_v35  ;;  %v4336_v39 = vsel %vm382_vm0, %v386_v35, 0.0  ;;  %v392_v42 = vrot.slane %v4198_v9, 1  ;;  %v394_v45 = vrot.slane %v4205_v10, 1 }
  0x1d   : > { %v4228_v15 = vld [vmem:[%s4172_s10 + $0x58] sm:$0xff]  ;;  %v4235_v16 = vld [vmem:[%s4172_s10 + $0x60] sm:$0xff]  ;;  %v4238_v17 = vld [vmem:[%s4172_s10 + $0x68] sm:$0xff]  ;;  %v4339_v40 = vsel %vm382_vm0, %v388_v37, %v389_v38  ;;  %v4348_v43 = vsel %vm382_vm0, %v389_v38, 0.0  ;;  %v395_v46 = vrot.slane %v4208_v11, 1  ;;  %v397_v49 = vrot.slane %v4215_v12, 1 }
  0x1e   : > { %480 = vrot.lane.b32.xlu1 %v4185_v6, %s4074_s30  ;;  %482 = vrot.lane.b32.xlu0 %v4188_v7, %s4074_s30  ;;  %v4245_v18 = vld [vmem:[%s4172_s10 + $0x70] sm:$0xff]  ;;  %v4248_v19 = vld [vmem:[%s4172_s10 + $0x78] sm:$0xff]  ;;  %v4351_v44 = vsel %vm382_vm0, %v391_v41, %v392_v42  ;;  %v4360_v47 = vsel %vm382_vm0, %v392_v42, 0.0  ;;  %v398_v50 = vrot.slane %v4218_v13, 1  ;;  %v400_v53 = vrot.slane %v4225_v14, 1 }
  0x1f   : > { %v4255_v20 = vld [vmem:[%s4172_s10 + $0x80] sm:$0xff]  ;;  %v4258_v21 = vld [vmem:[%s4172_s10 + $0x88] sm:$0xff]  ;;  %v4265_v22 = vld [vmem:[%s4172_s10 + $0x90] sm:$0xff]  ;;  %v4363_v48 = vsel %vm382_vm0, %v394_v45, %v395_v46  ;;  %v4372_v51 = vsel %vm382_vm0, %v395_v46, 0.0  ;;  %v401_v54 = vrot.slane %v4228_v15, 1  ;;  %v403_v57 = vrot.slane %v4235_v16, 1 }
  0x20   : > { %v4268_v23 = vld [vmem:[%s4172_s10 + $0x98] sm:$0xff]  ;;  %v4275_v24 = vld [vmem:[%s4172_s10 + $0xa0] sm:$0xff]  ;;  %v4278_v25 = vld [vmem:[%s4172_s10 + $0xa8] sm:$0xff]  ;;  %v4375_v52 = vsel %vm382_vm0, %v397_v49, %v398_v50  ;;  %v4384_v55 = vsel %vm382_vm0, %v398_v50, 0.0  ;;  %v404_v58 = vrot.slane %v4238_v17, 1  ;;  %v406_v61 = vrot.slane %v4245_v18, 1 }
  0x21   : > { %v4285_v26 = vld [vmem:[%s4172_s10 + $0xb0] sm:$0xff]  ;;  %v4288_v27 = vld [vmem:[%s4172_s10 + $0xb8] sm:$0xff]  ;;  %v4295_v28 = vld [vmem:[%s4172_s10 + $0xc0] sm:$0xff]  ;;  %v4387_v56 = vsel %vm382_vm0, %v400_v53, %v401_v54  ;;  %v4396_v59 = vsel %vm382_vm0, %v401_v54, 0.0  ;;  %v407_v62 = vrot.slane %v4248_v19, 1  ;;  %v409_v2 = vrot.slane %v4255_v20, 1 }
  0x22   : > { %484 = vrot.lane.b32.xlu1 %v4195_v8, %s4074_s30  ;;  %486 = vrot.lane.b32.xlu0 %v4198_v9, %s4074_s30  ;;  %v4298_v29 = vld [vmem:[%s4172_s10 + $0xc8] sm:$0xff]  ;;  %v4305_v30 = vld [vmem:[%s4172_s10 + $0xd0] sm:$0xff]  ;;  %v4399_v60 = vsel %vm382_vm0, %v403_v57, %v404_v58  ;;  %v4408_v63 = vsel %vm382_vm0, %v404_v58, 0.0  ;;  %v410_v34 = vrot.slane %v4258_v21, 1  ;;  %v412_v38 = vrot.slane %v4265_v22, 1 }
  0x23   : > { %v4308_v31 = vld [vmem:[%s4172_s10 + $0xd8] sm:$0xff]  ;;  %v4315_v32 = vld [vmem:[%s4172_s10 + $0xe0] sm:$0xff]  ;;  %v4318_v33 = vld [vmem:[%s4172_s10 + $0xe8] sm:$0xff]  ;;  %v4411_v1 = vsel %vm382_vm0, %v406_v61, %v407_v62  ;;  %v4420_v35 = vsel %vm382_vm0, %v407_v62, 0.0  ;;  %v413_v41 = vrot.slane %v4268_v23, 1  ;;  %v415_v46 = vrot.slane %v4275_v24, 1 }
  0x24   : > { %v4423_v37 = vsel %vm382_vm0, %v409_v2, %v410_v34  ;;  %v4432_v42 = vsel %vm382_vm0, %v410_v34, 0.0  ;;  %v416_v49 = vrot.slane %v4278_v25, 1  ;;  %v418_v54 = vrot.slane %v4285_v26, 1 }
  0x25   : > { %v4435_v45 = vsel %vm382_vm0, %v412_v38, %v413_v41  ;;  %v4444_v50 = vsel %vm382_vm0, %v413_v41, 0.0  ;;  %v419_v57 = vrot.slane %v4288_v27, 1  ;;  %v421_v62 = vrot.slane %v4295_v28, 1 }
  0x26   : > { %488 = vrot.lane.b32.xlu1 %v4205_v10, %s4074_s30  ;;  %490 = vrot.lane.b32.xlu0 %v4208_v11, %s4074_s30  ;;  %v4447_v53 = vsel %vm382_vm0, %v415_v46, %v416_v49  ;;  %v4456_v58 = vsel %vm382_vm0, %v416_v49, 0.0  ;;  %v422_v2 = vrot.slane %v4298_v29, 1  ;;  %v424_v41 = vrot.slane %v4305_v30, 1 }
  0x27   : > { %7838 = vst [vmem:[#allocation6_spill] sm:$0xff] %v4456_v58  ;;  %v4459_v61 = vsel %vm382_vm0, %v418_v54, %v419_v57  ;;  %v4468_v34 = vsel %vm382_vm0, %v419_v57, 0.0  ;;  %v425_v46 = vrot.slane %v4308_v31, 1  ;;  %v428_v0 = vrot.slane %v4318_v33, 1 }
  0x28   : > { %7839 = vst [vmem:[#allocation7_spill] sm:$0xff] %v4459_v61  ;;  %7840 = vst [vmem:[#allocation8_spill] sm:$0xff] %v4468_v34  ;;  %v4471_v38 = vsel %vm382_vm0, %v421_v62, %v422_v2  ;;  %v4482_v54 = vsel %vm382_vm0, %v422_v2, 0.0  ;;  %v427_v62 = vrot.slane %v4315_v32, 1 }
  0x29   : > { %7841 = vst [vmem:[#allocation9_spill] sm:$0xff] %v4471_v38  ;;  %7843 = vst [vmem:[#allocation11_spill] sm:$0xff] %v4482_v54  ;;  %v4485_v57 = vsel %vm382_vm0, %v424_v41, %v425_v46 }
  0x2a   : > { %492 = vrot.lane.b32.xlu1 %v4215_v12, %s4074_s30  ;;  %494 = vrot.lane.b32.xlu0 %v4218_v13, %s4074_s30  ;;  %7844 = vst [vmem:[#allocation12_spill] sm:$0xff] %v4485_v57 }
  0x2e   : > { %496 = vrot.lane.b32.xlu1 %v4225_v14, %s4074_s30  ;;  %498 = vrot.lane.b32.xlu0 %v4228_v15, %s4074_s30 }
  0x32   : > { %500 = vrot.lane.b32.xlu1 %v4235_v16, %s4074_s30  ;;  %502 = vrot.lane.b32.xlu0 %v4238_v17, %s4074_s30 }
  0x36   : > { %504 = vrot.lane.b32.xlu1 %v4245_v18, %s4074_s30  ;;  %506 = vrot.lane.b32.xlu0 %v4248_v19, %s4074_s30 }
  0x3a   : > { %508 = vrot.lane.b32.xlu1 %v4255_v20, %s4074_s30  ;;  %510 = vrot.lane.b32.xlu0 %v4258_v21, %s4074_s30 }
  0x3e   : > { %512 = vrot.lane.b32.xlu1 %v4265_v22, %s4074_s30  ;;  %514 = vrot.lane.b32.xlu0 %v4268_v23, %s4074_s30 }
  0x42   : > { %516 = vrot.lane.b32.xlu1 %v4275_v24, %s4074_s30  ;;  %518 = vrot.lane.b32.xlu0 %v4278_v25, %s4074_s30 }
  0x46   : > { %520 = vrot.lane.b32.xlu1 %v4285_v26, %s4074_s30  ;;  %522 = vrot.lane.b32.xlu0 %v4288_v27, %s4074_s30 }
  0x4a   : > { %524 = vrot.lane.b32.xlu1 %v4295_v28, %s4074_s30  ;;  %526 = vrot.lane.b32.xlu0 %v4298_v29, %s4074_s30 }
  0x4e   : > { %528 = vrot.lane.b32.xlu1 %v4305_v30, %s4074_s30  ;;  %530 = vrot.lane.b32.xlu0 %v4308_v31, %s4074_s30 }
  0x52   : > { %532 = vrot.lane.b32.xlu1 %v4315_v32, %s4074_s30  ;;  %534 = vrot.lane.b32.xlu0 %v4318_v33, %s4074_s30 }
  0x56   : > { %3965 = vrot.lane.b32.xlu1 %v4167_v3, %s4075_s11  ;;  %587 = vrot.lane.b32.xlu0 %v4327_v36, %s4075_s11  ;;  %v4494_v3 = vsel %vm382_vm0, %v425_v46, 0.0 }
  0x57   : > { %7845 = vst [vmem:[#allocation13_spill] sm:$0xff] %v4494_v3 }
  0x5a   : > { %589 = vrot.lane.b32.xlu1 %v4336_v39, %s4075_s11  ;;  %591 = vrot.lane.b32.xlu0 %v4339_v40, %s4075_s11 }
  0x5e   : > { %593 = vrot.lane.b32.xlu1 %v4348_v43, %s4075_s11  ;;  %595 = vrot.lane.b32.xlu0 %v4351_v44, %s4075_s11 }
  0x62   : > { %597 = vrot.lane.b32.xlu1 %v4360_v47, %s4075_s11  ;;  %599 = vrot.lane.b32.xlu0 %v4363_v48, %s4075_s11 }
  0x66   : > { %601 = vrot.lane.b32.xlu1 %v4372_v51, %s4075_s11  ;;  %603 = vrot.lane.b32.xlu0 %v4375_v52, %s4075_s11 }
  0x6a   : > { %605 = vrot.lane.b32.xlu1 %v4384_v55, %s4075_s11  ;;  %607 = vrot.lane.b32.xlu0 %v4387_v56, %s4075_s11 }
  0x6e   : > { %609 = vrot.lane.b32.xlu1 %v4396_v59, %s4075_s11  ;;  %611 = vrot.lane.b32.xlu0 %v4399_v60, %s4075_s11 }
  0x72   : > { %613 = vrot.lane.b32.xlu1 %v4408_v63, %s4075_s11  ;;  %615 = vrot.lane.b32.xlu0 %v4411_v1, %s4075_s11 }
  0x76   : > { %617 = vrot.lane.b32.xlu1 %v4420_v35, %s4075_s11  ;;  %619 = vrot.lane.b32.xlu0 %v4423_v37, %s4075_s11 }
  0x7a   : > { %621 = vrot.lane.b32.xlu1 %v4432_v42, %s4075_s11  ;;  %623 = vrot.lane.b32.xlu0 %v4435_v45, %s4075_s11 }
  0x7e   : > { %625 = vrot.lane.b32.xlu1 %v4444_v50, %s4075_s11  ;;  %627 = vrot.lane.b32.xlu0 %v4447_v53, %s4075_s11 }
  0x82   : > { %629 = vrot.lane.b32.xlu1 %v4456_v58, %s4075_s11  ;;  %631 = vrot.lane.b32.xlu0 %v4459_v61, %s4075_s11  ;;  %v331_v58 = vrot.slane %v4315_v32, 7  ;;  %v332_v61 = vrot.slane %v4318_v33, 7 }
  0x86   : > { %633 = vrot.lane.b32.xlu1 %v4468_v34, %s4075_s11  ;;  %635 = vrot.lane.b32.xlu0 %v4471_v38, %s4075_s11  ;;  %v4479_v49 = vpop.permute.xlu0 %474  ;;  %v293_v34 = vrot.slane %v4188_v7, 7  ;;  %v295_v38 = vrot.slane %v4195_v8, 7 }
  0x87   : > { %7842 = vst [vmem:[#allocation10_spill] sm:$0xff] %v4479_v49  ;;  %v4497_v49 = vsel %vm382_vm0, %v427_v62, %v428_v0 }
  0x88   : > { %7846 = vst [vmem:[#allocation14_spill] sm:$0xff] %v4497_v49 }
  0x8a   : > { %637 = vrot.lane.b32.xlu1 %v4482_v54, %s4075_s11  ;;  %639 = vrot.lane.b32.xlu0 %v4485_v57, %s4075_s11  ;;  %v289_v54 = vrot.slane %v4178_v5, 7  ;;  %v4509_v57 = vsel %vm382_vm0, %v428_v0, 0.0 }
  0x8b   : > { %7849 = vst [vmem:[#allocation17_spill] sm:$0xff] %v4509_v57 }
  0x8c   : > { %v4499_v2 = vpop.permute.xlu1 %478  ;;  %v4501_v41 = vpop.permute.xlu0 %476 }
  0x8d   : > { %7847 = vst [vmem:[#allocation15_spill] sm:$0xff] %v4499_v2  ;;  %7848 = vst [vmem:[#allocation16_spill] sm:$0xff] %v4501_v41  ;;  %v290_v2 = vrot.slane %v4175_v4, 7  ;;  %v4517_v41 = vsel %vm286_vm1, 0.0, %v289_v54 }
  0x8e   : > { %641 = vrot.lane.b32.xlu1 %v4494_v3, %s4075_s11  ;;  %643 = vrot.lane.b32.xlu0 %v4497_v49, %s4075_s11  ;;  %7852 = vst [vmem:[#allocation20_spill] sm:$0xff] %v4517_v41  ;;  %v292_v3 = vrot.slane %v4185_v6, 7 }
  0x90   : > { %v4511_v46 = vpop.permute.xlu1 %480  ;;  %v4513_v62 = vpop.permute.xlu0 %482 }
  0x91   : > { %7850 = vst [vmem:[#allocation18_spill] sm:$0xff] %v4511_v46  ;;  %7851 = vst [vmem:[#allocation19_spill] sm:$0xff] %v4513_v62  ;;  %v4529_v62 = vsel %vm286_vm1, %v289_v54, %v290_v2  ;;  %v4532_v46 = vsel %vm286_vm1, 0.0, %v292_v3  ;;  %v4545_v54 = vsel %vm286_vm1, %v292_v3, %v293_v34  ;;  %v4548_v2 = vsel %vm286_vm1, 0.0, %v295_v38 }
  0x92   : > { %645 = vrot.lane.b32.xlu1 %v4509_v57, %s4075_s11  ;;  %695 = vrot.lane.b32.xlu0 %v4517_v41, %s4076_s12  ;;  %7855 = vst [vmem:[#allocation23_spill] sm:$0xff] %v4529_v62  ;;  %7856 = vst [vmem:[#allocation24_spill] sm:$0xff] %v4532_v46  ;;  %v298_v57 = vrot.slane %v4205_v10, 7 }
  0x93   : > { %7859 = vst [vmem:[#allocation27_spill] sm:$0xff] %v4545_v54  ;;  %7860 = vst [vmem:[#allocation28_spill] sm:$0xff] %v4548_v2 }
  0x94   : > { %v4524_v0 = vpop.permute.xlu1 %484  ;;  %v4526_v49 = vpop.permute.xlu0 %486  ;;  %v4564_v34 = vsel %vm286_vm1, 0.0, %v298_v57 }
  0x95   : > { %7853 = vst [vmem:[#allocation21_spill] sm:$0xff] %v4524_v0  ;;  %7854 = vst [vmem:[#allocation22_spill] sm:$0xff] %v4526_v49  ;;  %v296_v49 = vrot.slane %v4198_v9, 7 }
  0x96   : > { %699 = vrot.lane.b32.xlu0 %v4532_v46, %s4076_s12  ;;  %697 = vrot.lane.b32.xlu1 %v4529_v62, %s4076_s12  ;;  %7864 = vst [vmem:[#allocation32_spill] sm:$0xff] %v4564_v34  ;;  %v301_v46 = vrot.slane %v4215_v12, 7 }
  0x97   : > { %v4561_v3 = vsel %vm286_vm1, %v295_v38, %v296_v49 }
  0x98   : > { %v4540_v41 = vpop.permute.xlu1 %488  ;;  %v4542_v0 = vpop.permute.xlu0 %490  ;;  %7863 = vst [vmem:[#allocation31_spill] sm:$0xff] %v4561_v3  ;;  %v4580_v49 = vsel %vm286_vm1, 0.0, %v301_v46 }
  0x99   : > { %7857 = vst [vmem:[#allocation25_spill] sm:$0xff] %v4540_v41  ;;  %7858 = vst [vmem:[#allocation26_spill] sm:$0xff] %v4542_v0  ;;  %v299_v0 = vrot.slane %v4208_v11, 7 }
  0x9a   : > { %703 = vrot.lane.b32.xlu0 %v4548_v2, %s4076_s12  ;;  %701 = vrot.lane.b32.xlu1 %v4545_v54, %s4076_s12  ;;  %7868 = vst [vmem:[#allocation36_spill] sm:$0xff] %v4580_v49  ;;  %v304_v2 = vrot.slane %v4225_v14, 7 }
  0x9b   : > { %v4577_v38 = vsel %vm286_vm1, %v298_v57, %v299_v0 }
  0x9c   : > { %v4556_v62 = vpop.permute.xlu1 %492  ;;  %v4558_v41 = vpop.permute.xlu0 %494  ;;  %7867 = vst [vmem:[#allocation35_spill] sm:$0xff] %v4577_v38  ;;  %v4596_v0 = vsel %vm286_vm1, 0.0, %v304_v2 }
  0x9d   : > { %7861 = vst [vmem:[#allocation29_spill] sm:$0xff] %v4556_v62  ;;  %7862 = vst [vmem:[#allocation30_spill] sm:$0xff] %v4558_v41  ;;  %v302_v41 = vrot.slane %v4218_v13, 7 }
  0x9e   : > { %707 = vrot.lane.b32.xlu0 %v4564_v34, %s4076_s12  ;;  %705 = vrot.lane.b32.xlu1 %v4561_v3, %s4076_s12  ;;  %7872 = vst [vmem:[#allocation40_spill] sm:$0xff] %v4596_v0  ;;  %v307_v34 = vrot.slane %v4235_v16, 7 }
  0x9f   : > { %v4593_v57 = vsel %vm286_vm1, %v301_v46, %v302_v41 }
  0xa0   : > { %v4572_v54 = vpop.permute.xlu1 %496  ;;  %v4574_v62 = vpop.permute.xlu0 %498  ;;  %7871 = vst [vmem:[#allocation39_spill] sm:$0xff] %v4593_v57  ;;  %v4612_v46 = vsel %vm286_vm1, 0.0, %v307_v34 }
  0xa1   : > { %7865 = vst [vmem:[#allocation33_spill] sm:$0xff] %v4572_v54  ;;  %7866 = vst [vmem:[#allocation34_spill] sm:$0xff] %v4574_v62  ;;  %v305_v62 = vrot.slane %v4228_v15, 7 }
  0xa2   : > { %711 = vrot.lane.b32.xlu0 %v4580_v49, %s4076_s12  ;;  %709 = vrot.lane.b32.xlu1 %v4577_v38, %s4076_s12  ;;  %7876 = vst [vmem:[#allocation44_spill] sm:$0xff] %v4612_v46  ;;  %v310_v49 = vrot.slane %v4245_v18, 7 }
  0xa3   : > { %v4609_v41 = vsel %vm286_vm1, %v304_v2, %v305_v62 }
  0xa4   : > { %v4588_v3 = vpop.permute.xlu1 %500  ;;  %v4590_v54 = vpop.permute.xlu0 %502  ;;  %7875 = vst [vmem:[#allocation43_spill] sm:$0xff] %v4609_v41  ;;  %v4628_v2 = vsel %vm286_vm1, 0.0, %v310_v49 }
  0xa5   : > { %7869 = vst [vmem:[#allocation37_spill] sm:$0xff] %v4588_v3  ;;  %7870 = vst [vmem:[#allocation38_spill] sm:$0xff] %v4590_v54  ;;  %v308_v54 = vrot.slane %v4238_v17, 7 }
  0xa6   : > { %715 = vrot.lane.b32.xlu0 %v4596_v0, %s4076_s12  ;;  %713 = vrot.lane.b32.xlu1 %v4593_v57, %s4076_s12  ;;  %7880 = vst [vmem:[#allocation48_spill] sm:$0xff] %v4628_v2  ;;  %v313_v0 = vrot.slane %v4255_v20, 7 }
  0xa7   : > { %v4625_v62 = vsel %vm286_vm1, %v307_v34, %v308_v54 }
  0xa8   : > { %v4604_v38 = vpop.permute.xlu1 %504  ;;  %v4606_v3 = vpop.permute.xlu0 %506  ;;  %7879 = vst [vmem:[#allocation47_spill] sm:$0xff] %v4625_v62  ;;  %v4644_v34 = vsel %vm286_vm1, 0.0, %v313_v0 }
  0xa9   : > { %7873 = vst [vmem:[#allocation41_spill] sm:$0xff] %v4604_v38  ;;  %7874 = vst [vmem:[#allocation42_spill] sm:$0xff] %v4606_v3  ;;  %v311_v3 = vrot.slane %v4248_v19, 7 }
  0xaa   : > { %719 = vrot.lane.b32.xlu0 %v4612_v46, %s4076_s12  ;;  %717 = vrot.lane.b32.xlu1 %v4609_v41, %s4076_s12  ;;  %7884 = vst [vmem:[#allocation52_spill] sm:$0xff] %v4644_v34  ;;  %v316_v46 = vrot.slane %v4265_v22, 7 }
  0xab   : > { %v4641_v54 = vsel %vm286_vm1, %v310_v49, %v311_v3 }
  0xac   : > { %v4620_v57 = vpop.permute.xlu1 %508  ;;  %v4622_v38 = vpop.permute.xlu0 %510  ;;  %7883 = vst [vmem:[#allocation51_spill] sm:$0xff] %v4641_v54  ;;  %v4660_v49 = vsel %vm286_vm1, 0.0, %v316_v46 }
  0xad   : > { %7877 = vst [vmem:[#allocation45_spill] sm:$0xff] %v4620_v57  ;;  %7878 = vst [vmem:[#allocation46_spill] sm:$0xff] %v4622_v38  ;;  %v314_v38 = vrot.slane %v4258_v21, 7 }
  0xae   : > { %723 = vrot.lane.b32.xlu0 %v4628_v2, %s4076_s12  ;;  %721 = vrot.lane.b32.xlu1 %v4625_v62, %s4076_s12  ;;  %7888 = vst [vmem:[#allocation56_spill] sm:$0xff] %v4660_v49  ;;  %v319_v2 = vrot.slane %v4275_v24, 7 }
  0xaf   : > { %v4657_v3 = vsel %vm286_vm1, %v313_v0, %v314_v38 }
  0xb0   : > { %v4636_v41 = vpop.permute.xlu1 %512  ;;  %v4638_v57 = vpop.permute.xlu0 %514  ;;  %7887 = vst [vmem:[#allocation55_spill] sm:$0xff] %v4657_v3  ;;  %v4676_v0 = vsel %vm286_vm1, 0.0, %v319_v2 }
  0xb1   : > { %7881 = vst [vmem:[#allocation49_spill] sm:$0xff] %v4636_v41  ;;  %7882 = vst [vmem:[#allocation50_spill] sm:$0xff] %v4638_v57  ;;  %v317_v57 = vrot.slane %v4268_v23, 7 }
  0xb2   : > { %727 = vrot.lane.b32.xlu0 %v4644_v34, %s4076_s12  ;;  %725 = vrot.lane.b32.xlu1 %v4641_v54, %s4076_s12  ;;  %7892 = vst [vmem:[#allocation60_spill] sm:$0xff] %v4676_v0  ;;  %v322_v34 = vrot.slane %v4285_v26, 7 }
  0xb3   : > { %v4673_v38 = vsel %vm286_vm1, %v316_v46, %v317_v57 }
  0xb4   : > { %v4652_v62 = vpop.permute.xlu1 %516  ;;  %v4654_v41 = vpop.permute.xlu0 %518  ;;  %7891 = vst [vmem:[#allocation59_spill] sm:$0xff] %v4673_v38  ;;  %v4692_v46 = vsel %vm286_vm1, 0.0, %v322_v34 }
  0xb5   : > { %7885 = vst [vmem:[#allocation53_spill] sm:$0xff] %v4652_v62  ;;  %7886 = vst [vmem:[#allocation54_spill] sm:$0xff] %v4654_v41  ;;  %v320_v41 = vrot.slane %v4278_v25, 7 }
  0xb6   : > { %731 = vrot.lane.b32.xlu0 %v4660_v49, %s4076_s12  ;;  %729 = vrot.lane.b32.xlu1 %v4657_v3, %s4076_s12  ;;  %7896 = vst [vmem:[#allocation64_spill] sm:$0xff] %v4692_v46  ;;  %v325_v49 = vrot.slane %v4295_v28, 7 }
  0xb7   : > { %v4689_v57 = vsel %vm286_vm1, %v319_v2, %v320_v41 }
  0xb8   : > { %v4668_v54 = vpop.permute.xlu1 %520  ;;  %v4670_v62 = vpop.permute.xlu0 %522  ;;  %7895 = vst [vmem:[#allocation63_spill] sm:$0xff] %v4689_v57  ;;  %v4708_v2 = vsel %vm286_vm1, 0.0, %v325_v49 }
  0xb9   : > { %7889 = vst [vmem:[#allocation57_spill] sm:$0xff] %v4668_v54  ;;  %7890 = vst [vmem:[#allocation58_spill] sm:$0xff] %v4670_v62  ;;  %v323_v62 = vrot.slane %v4288_v27, 7 }
  0xba   : > { %735 = vrot.lane.b32.xlu0 %v4676_v0, %s4076_s12  ;;  %733 = vrot.lane.b32.xlu1 %v4673_v38, %s4076_s12  ;;  %7900 = vst [vmem:[#allocation68_spill] sm:$0xff] %v4708_v2  ;;  %v326_v38 = vrot.slane %v4298_v29, 7  ;;  %v328_v0 = vrot.slane %v4305_v30, 7 }
  0xbb   : > { %v4705_v41 = vsel %vm286_vm1, %v322_v34, %v323_v62  ;;  %v4721_v62 = vld [vmem:[%s4172_s10 + $0xf0] sm:$0xff] }
  0xbc   : > { %v4684_v3 = vpop.permute.xlu1 %524  ;;  %v4686_v54 = vpop.permute.xlu0 %526  ;;  %7899 = vst [vmem:[#allocation67_spill] sm:$0xff] %v4705_v41  ;;  %v4724_v34 = vsel %vm286_vm1, %v325_v49, %v326_v38  ;;  %v4741_v49 = vld [vmem:[%s4172_s10 + $0xf8] sm:$0xff] }
  0xbd   : > { %7893 = vst [vmem:[#allocation61_spill] sm:$0xff] %v4684_v3  ;;  %7894 = vst [vmem:[#allocation62_spill] sm:$0xff] %v4686_v54 }
  0xbe   : > { %739 = vrot.lane.b32.xlu0 %v4692_v46, %s4076_s12  ;;  %737 = vrot.lane.b32.xlu1 %v4689_v57, %s4076_s12  ;;  %7903 = vst [vmem:[#allocation71_spill] sm:$0xff] %v4724_v34  ;;  %v4727_v57 = vsel %vm286_vm1, 0.0, %v328_v0  ;;  %v329_v46 = vrot.slane %v4308_v31, 7 }
  0xbf   : > { %7904 = vst [vmem:[#allocation72_spill] sm:$0xff] %v4727_v57 }
  0xc0   : > { %v4700_v3 = vpop.permute.xlu1 %528  ;;  %v4702_v54 = vpop.permute.xlu0 %530  ;;  %v4744_v38 = vsel %vm286_vm1, %v328_v0, %v329_v46  ;;  %v4763_v46 = vsel %vm286_vm1, %v331_v58, %v332_v61 }
  0xc1   : > { %7897 = vst [vmem:[#allocation65_spill] sm:$0xff] %v4700_v3  ;;  %7898 = vst [vmem:[#allocation66_spill] sm:$0xff] %v4702_v54 }
  0xc2   : > { %743 = vrot.lane.b32.xlu0 %v4708_v2, %s4076_s12  ;;  %741 = vrot.lane.b32.xlu1 %v4705_v41, %s4076_s12  ;;  %7907 = vst [vmem:[#allocation75_spill] sm:$0xff] %v4744_v38  ;;  %v4747_v2 = vsel %vm286_vm1, 0.0, %v331_v58  ;;  %7911 = vst [vmem:[#allocation79_spill] sm:$0xff] %v4763_v46 }
  0xc3   : > { %7908 = vst [vmem:[#allocation76_spill] sm:$0xff] %v4747_v2 }
  0xc4   : > { %v4716_v3 = vpop.permute.xlu1 %532  ;;  %v4718_v54 = vpop.permute.xlu0 %534 }
  0xc5   : > { %7901 = vst [vmem:[#allocation69_spill] sm:$0xff] %v4716_v3  ;;  %7902 = vst [vmem:[#allocation70_spill] sm:$0xff] %v4718_v54  ;;  %v464_v54 = vrot.slane %v4721_v62, 7 }
  0xc6   : > { %747 = vrot.lane.b32.xlu0 %v4727_v57, %s4076_s12  ;;  %745 = vrot.lane.b32.xlu1 %v4724_v34, %s4076_s12 }
  0xc8   : > { %v4736_v3 = vpop.permute.xlu1 %3965  ;;  %v4738_v41 = vpop.permute.xlu0 %587 }
  0xc9   : > { %7905 = vst [vmem:[#allocation73_spill] sm:$0xff] %v4736_v3  ;;  %7906 = vst [vmem:[#allocation74_spill] sm:$0xff] %v4738_v41  ;;  %v4755_v3 = vsel %vm286_vm1, 0.0, %v464_v54  ;;  %v465_v41 = vrot.slane %v4741_v49, 7 }
  0xca   : > { %751 = vrot.lane.b32.xlu0 %v4747_v2, %s4076_s12  ;;  %749 = vrot.lane.b32.xlu1 %v4744_v38, %s4076_s12 }
  0xcb   : > { %v4770_v38 = vsel %vm286_vm1, %v464_v54, %v465_v41 }
  0xcc   : > { %v4758_v34 = vpop.permute.xlu1 %589  ;;  %v4760_v0 = vpop.permute.xlu0 %591 }
  0xcd   : > { %7909 = vst [vmem:[#allocation77_spill] sm:$0xff] %v4758_v34  ;;  %7910 = vst [vmem:[#allocation78_spill] sm:$0xff] %v4760_v0  ;;  %v7973_v0 = vld [vmem:[#allocation8_spill] sm:$0xff] }
  0xce   : > { %755 = vrot.lane.b32.xlu0 %v4755_v3, %s4076_s12  ;;  %753 = vrot.lane.b32.xlu1 %v4763_v46, %s4076_s12 }
  0xd0   : > { %v4772_v2 = vpop.permute.xlu1 %593  ;;  %v4774_v57 = vpop.permute.xlu0 %595 }
  0xd1   : > { %7912 = vst [vmem:[#allocation80_spill] sm:$0xff] %v4772_v2  ;;  %7913 = vst [vmem:[#allocation81_spill] sm:$0xff] %v4774_v57 }
  0xd2   : > { %791 = vrot.lane.b32.xlu0 %v4178_v5, %s4077_s13  ;;  %757 = vrot.lane.b32.xlu1 %v4770_v38, %s4076_s12 }
  0xd4   : > { %v4780_v58 = vpop.permute.xlu1 %597  ;;  %v4782_v61 = vpop.permute.xlu0 %599 }
  0xd5   : > { %7914 = vst [vmem:[#allocation82_spill] sm:$0xff] %v4780_v58  ;;  %7915 = vst [vmem:[#allocation83_spill] sm:$0xff] %v4782_v61 }
  0xd6   : > { %795 = vrot.lane.b32.xlu0 %v4185_v6, %s4077_s13  ;;  %793 = vrot.lane.b32.xlu1 %v4175_v4, %s4077_s13 }
  0xd8   : > { %v4788_v54 = vpop.permute.xlu1 %601  ;;  %v4790_v41 = vpop.permute.xlu0 %603 }
  0xd9   : > { %7916 = vst [vmem:[#allocation84_spill] sm:$0xff] %v4788_v54  ;;  %7917 = vst [vmem:[#allocation85_spill] sm:$0xff] %v4790_v41 }
  0xda   : > { %799 = vrot.lane.b32.xlu0 %v4195_v8, %s4077_s13  ;;  %797 = vrot.lane.b32.xlu1 %v4188_v7, %s4077_s13 }
  0xdc   : > { %v4796_v5 = vpop.permute.xlu1 %605  ;;  %v4798_v58 = vpop.permute.xlu0 %607 }
  0xdd   : > { %7918 = vst [vmem:[#allocation86_spill] sm:$0xff] %v4796_v5  ;;  %7919 = vst [vmem:[#allocation87_spill] sm:$0xff] %v4798_v58 }
  0xde   : > { %803 = vrot.lane.b32.xlu0 %v4205_v10, %s4077_s13  ;;  %801 = vrot.lane.b32.xlu1 %v4198_v9, %s4077_s13 }
  0xe0   : > { %v4804_v4 = vpop.permute.xlu1 %609  ;;  %v4806_v54 = vpop.permute.xlu0 %611 }
  0xe1   : > { %7920 = vst [vmem:[#allocation88_spill] sm:$0xff] %v4804_v4  ;;  %7921 = vst [vmem:[#allocation89_spill] sm:$0xff] %v4806_v54 }
  0xe2   : > { %807 = vrot.lane.b32.xlu0 %v4215_v12, %s4077_s13  ;;  %805 = vrot.lane.b32.xlu1 %v4208_v11, %s4077_s13 }
  0xe4   : > { %v4812_v41 = vpop.permute.xlu1 %613  ;;  %v4814_v5 = vpop.permute.xlu0 %615 }
  0xe5   : > { %7922 = vst [vmem:[#allocation90_spill] sm:$0xff] %v4812_v41  ;;  %7923 = vst [vmem:[#allocation91_spill] sm:$0xff] %v4814_v5 }
  0xe6   : > { %811 = vrot.lane.b32.xlu0 %v4225_v14, %s4077_s13  ;;  %809 = vrot.lane.b32.xlu1 %v4218_v13, %s4077_s13 }
  0xe8   : > { %v4820_v58 = vpop.permute.xlu1 %617  ;;  %v4822_v4 = vpop.permute.xlu0 %619 }
  0xe9   : > { %7924 = vst [vmem:[#allocation92_spill] sm:$0xff] %v4820_v58  ;;  %7925 = vst [vmem:[#allocation93_spill] sm:$0xff] %v4822_v4 }
  0xea   : > { %815 = vrot.lane.b32.xlu0 %v4235_v16, %s4077_s13  ;;  %813 = vrot.lane.b32.xlu1 %v4228_v15, %s4077_s13 }
  0xec   : > { %v4828_v54 = vpop.permute.xlu1 %621  ;;  %v4830_v41 = vpop.permute.xlu0 %623 }
  0xed   : > { %7926 = vst [vmem:[#allocation94_spill] sm:$0xff] %v4828_v54  ;;  %7927 = vst [vmem:[#allocation95_spill] sm:$0xff] %v4830_v41 }
  0xee   : > { %819 = vrot.lane.b32.xlu0 %v4245_v18, %s4077_s13  ;;  %817 = vrot.lane.b32.xlu1 %v4238_v17, %s4077_s13 }
  0xf0   : > { %v4836_v5 = vpop.permute.xlu1 %625  ;;  %v4838_v58 = vpop.permute.xlu0 %627 }
  0xf1   : > { %7928 = vst [vmem:[#allocation96_spill] sm:$0xff] %v4836_v5  ;;  %7929 = vst [vmem:[#allocation97_spill] sm:$0xff] %v4838_v58 }
  0xf2   : > { %823 = vrot.lane.b32.xlu0 %v4255_v20, %s4077_s13  ;;  %821 = vrot.lane.b32.xlu1 %v4248_v19, %s4077_s13 }
  0xf4   : > { %v4844_v4 = vpop.permute.xlu1 %629  ;;  %v4846_v54 = vpop.permute.xlu0 %631 }
  0xf5   : > { %7930 = vst [vmem:[#allocation98_spill] sm:$0xff] %v4844_v4  ;;  %7931 = vst [vmem:[#allocation99_spill] sm:$0xff] %v4846_v54 }
  0xf6   : > { %827 = vrot.lane.b32.xlu0 %v4265_v22, %s4077_s13  ;;  %825 = vrot.lane.b32.xlu1 %v4258_v21, %s4077_s13 }
  0xf8   : > { %v4852_v41 = vpop.permute.xlu1 %633  ;;  %v4854_v5 = vpop.permute.xlu0 %635 }
  0xf9   : > { %7932 = vst [vmem:[#allocation100_spill] sm:$0xff] %v4852_v41  ;;  %7933 = vst [vmem:[#allocation101_spill] sm:$0xff] %v4854_v5 }
  0xfa   : > { %831 = vrot.lane.b32.xlu0 %v4275_v24, %s4077_s13  ;;  %829 = vrot.lane.b32.xlu1 %v4268_v23, %s4077_s13 }
  0xfc   : > { %v4860_v58 = vpop.permute.xlu1 %637  ;;  %v4862_v4 = vpop.permute.xlu0 %639 }
  0xfd   : > { %7934 = vst [vmem:[#allocation102_spill] sm:$0xff] %v4860_v58  ;;  %7935 = vst [vmem:[#allocation103_spill] sm:$0xff] %v4862_v4 }
  0xfe   : > { %835 = vrot.lane.b32.xlu0 %v4285_v26, %s4077_s13  ;;  %833 = vrot.lane.b32.xlu1 %v4278_v25, %s4077_s13 }
 0x100   : > { %v4868_v54 = vpop.permute.xlu1 %641  ;;  %v4870_v41 = vpop.permute.xlu0 %643 }
 0x101   : > { %7936 = vst [vmem:[#allocation104_spill] sm:$0xff] %v4868_v54  ;;  %7937 = vst [vmem:[#allocation105_spill] sm:$0xff] %v4870_v41 }
 0x102   : > { %839 = vrot.lane.b32.xlu0 %v4295_v28, %s4077_s13  ;;  %837 = vrot.lane.b32.xlu1 %v4288_v27, %s4077_s13 }
 0x104   : > { %v4876_v5 = vpop.permute.xlu1 %645  ;;  %v4878_v58 = vpop.permute.xlu0 %695 }
 0x105   : > { %7938 = vst [vmem:[#allocation106_spill] sm:$0xff] %v4876_v5  ;;  %7939 = vst [vmem:[#allocation107_spill] sm:$0xff] %v4878_v58 }
 0x106   : > { %843 = vrot.lane.b32.xlu0 %v4305_v30, %s4077_s13  ;;  %841 = vrot.lane.b32.xlu1 %v4298_v29, %s4077_s13 }
 0x108   : > { %v4884_v4 = vpop.permute.xlu0 %699  ;;  %v4886_v54 = vpop.permute.xlu1 %697 }
 0x109   : > { %7940 = vst [vmem:[#allocation108_spill] sm:$0xff] %v4884_v4  ;;  %7941 = vst [vmem:[#allocation109_spill] sm:$0xff] %v4886_v54  ;;  %v7977_v54 = vld [vmem:[#allocation11_spill] sm:$0xff] }
 0x10a   : > { %847 = vrot.lane.b32.xlu0 %v4315_v32, %s4077_s13  ;;  %845 = vrot.lane.b32.xlu1 %v4308_v31, %s4077_s13 }
 0x10c   : > { %v4892_v41 = vpop.permute.xlu0 %703  ;;  %v4894_v5 = vpop.permute.xlu1 %701 }
 0x10d   : > { %7942 = vst [vmem:[#allocation110_spill] sm:$0xff] %v4892_v41  ;;  %7943 = vst [vmem:[#allocation111_spill] sm:$0xff] %v4894_v5 }
 0x10e   : > { %851 = vrot.lane.b32.xlu0 %v4721_v62, %s4077_s13  ;;  %849 = vrot.lane.b32.xlu1 %v4318_v33, %s4077_s13 }
 0x110   : > { %v4900_v61 = vpop.permute.xlu0 %707  ;;  %v4902_v57 = vpop.permute.xlu1 %705 }
 0x111   : > { %7944 = vst [vmem:[#allocation112_spill] sm:$0xff] %v4900_v61  ;;  %7945 = vst [vmem:[#allocation113_spill] sm:$0xff] %v4902_v57 }
 0x112   : > { %888 = vrot.lane.b32.xlu0 %v4327_v36, %s4078_s14  ;;  %853 = vrot.lane.b32.xlu1 %v4741_v49, %s4077_s13 }
 0x114   : > { %v4908_v2 = vpop.permute.xlu0 %711  ;;  %v4910_v5 = vpop.permute.xlu1 %709 }
 0x115   : > { %7946 = vst [vmem:[#allocation114_spill] sm:$0xff] %v4908_v2  ;;  %7947 = vst [vmem:[#allocation115_spill] sm:$0xff] %v4910_v5  ;;  %v7969_v5 = vld [vmem:[#allocation6_spill] sm:$0xff] }
 0x116   : > { %892 = vrot.lane.b32.xlu0 %v4339_v40, %s4078_s14  ;;  %890 = vrot.lane.b32.xlu1 %v4336_v39, %s4078_s14 }
 0x118   : > { %v4916_v61 = vpop.permute.xlu0 %715  ;;  %v4918_v57 = vpop.permute.xlu1 %713 }
 0x119   : > { %7948 = vst [vmem:[#allocation116_spill] sm:$0xff] %v4916_v61  ;;  %7949 = vst [vmem:[#allocation117_spill] sm:$0xff] %v4918_v57 }
 0x11a   : > { %896 = vrot.lane.b32.xlu0 %v4351_v44, %s4078_s14  ;;  %894 = vrot.lane.b32.xlu1 %v4348_v43, %s4078_s14 }
 0x11c   : > { %v4924_v36 = vpop.permute.xlu0 %719  ;;  %v4926_v2 = vpop.permute.xlu1 %717 }
 0x11d   : > { %7950 = vst [vmem:[#allocation118_spill] sm:$0xff] %v4924_v36  ;;  %7951 = vst [vmem:[#allocation119_spill] sm:$0xff] %v4926_v2 }
 0x11e   : > { %900 = vrot.lane.b32.xlu0 %v4363_v48, %s4078_s14  ;;  %898 = vrot.lane.b32.xlu1 %v4360_v47, %s4078_s14 }
 0x120   : > { %v4932_v39 = vpop.permute.xlu0 %723  ;;  %v4934_v61 = vpop.permute.xlu1 %721 }
 0x121   : > { %7952 = vst [vmem:[#allocation120_spill] sm:$0xff] %v4932_v39  ;;  %7953 = vst [vmem:[#allocation121_spill] sm:$0xff] %v4934_v61 }
 0x122   : > { %904 = vrot.lane.b32.xlu0 %v4375_v52, %s4078_s14  ;;  %902 = vrot.lane.b32.xlu1 %v4372_v51, %s4078_s14 }
 0x124   : > { %v4940_v57 = vpop.permute.xlu0 %727  ;;  %v4942_v36 = vpop.permute.xlu1 %725 }
 0x125   : > { %7954 = vst [vmem:[#allocation122_spill] sm:$0xff] %v4940_v57  ;;  %7955 = vst [vmem:[#allocation123_spill] sm:$0xff] %v4942_v36 }
 0x126   : > { %908 = vrot.lane.b32.xlu0 %v4387_v56, %s4078_s14  ;;  %906 = vrot.lane.b32.xlu1 %v4384_v55, %s4078_s14 }
 0x128   : > { %v4948_v2 = vpop.permute.xlu0 %731  ;;  %v4950_v39 = vpop.permute.xlu1 %729 }
 0x129   : > { %7956 = vst [vmem:[#allocation124_spill] sm:$0xff] %v4948_v2  ;;  %7957 = vst [vmem:[#allocation125_spill] sm:$0xff] %v4950_v39 }
 0x12a   : > { %912 = vrot.lane.b32.xlu0 %v4399_v60, %s4078_s14  ;;  %910 = vrot.lane.b32.xlu1 %v4396_v59, %s4078_s14 }
 0x12c   : > { %v4956_v61 = vpop.permute.xlu0 %735  ;;  %v4958_v57 = vpop.permute.xlu1 %733 }
 0x12d   : > { %7958 = vst [vmem:[#allocation126_spill] sm:$0xff] %v4956_v61  ;;  %7959 = vst [vmem:[#allocation127_spill] sm:$0xff] %v4958_v57 }
 0x12e   : > { %916 = vrot.lane.b32.xlu0 %v4411_v1, %s4078_s14  ;;  %914 = vrot.lane.b32.xlu1 %v4408_v63, %s4078_s14 }
 0x130   : > { %v4964_v36 = vpop.permute.xlu0 %739  ;;  %v4966_v2 = vpop.permute.xlu1 %737 }
 0x131   : > { %7960 = vst [vmem:[#allocation128_spill] sm:$0xff] %v4964_v36  ;;  %7961 = vst [vmem:[#allocation129_spill] sm:$0xff] %v4966_v2 }
 0x132   : > { %920 = vrot.lane.b32.xlu0 %v4423_v37, %s4078_s14  ;;  %918 = vrot.lane.b32.xlu1 %v4420_v35, %s4078_s14 }
 0x134   : > { %v4972_v39 = vpop.permute.xlu0 %743  ;;  %v4974_v61 = vpop.permute.xlu1 %741 }
 0x135   : > { %7962 = vst [vmem:[#allocation130_spill] sm:$0xff] %v4972_v39  ;;  %7963 = vst [vmem:[#allocation131_spill] sm:$0xff] %v4974_v61  ;;  %v7968_v61 = vld [vmem:[#allocation7_spill] sm:$0xff] }
 0x136   : > { %924 = vrot.lane.b32.xlu0 %v4435_v45, %s4078_s14  ;;  %922 = vrot.lane.b32.xlu1 %v4432_v42, %s4078_s14 }
 0x138   : > { %v4980_v57 = vpop.permute.xlu0 %747  ;;  %v4982_v36 = vpop.permute.xlu1 %745 }
 0x139   : > { %7964 = vst [vmem:[#allocation132_spill] sm:$0xff] %v4980_v57  ;;  %7965 = vst [vmem:[#allocation133_spill] sm:$0xff] %v4982_v36  ;;  %v7972_v36 = vld [vmem:[#allocation9_spill] sm:$0xff] }
 0x13a   : > { %928 = vrot.lane.b32.xlu0 %v4447_v53, %s4078_s14  ;;  %926 = vrot.lane.b32.xlu1 %v4444_v50, %s4078_s14 }
 0x13c   : > { %v4988_v2 = vpop.permute.xlu0 %751  ;;  %v4990_v39 = vpop.permute.xlu1 %749 }
 0x13d   : > { %7966 = vst [vmem:[#allocation134_spill] sm:$0xff] %v4988_v2  ;;  %7967 = vst [vmem:[#allocation135_spill] sm:$0xff] %v4990_v39  ;;  %v7976_v39 = vld [vmem:[#allocation12_spill] sm:$0xff] }
 0x13e   : > { %932 = vrot.lane.b32.xlu0 %v7968_v61, %s4078_s14  ;;  %930 = vrot.lane.b32.xlu1 %v7969_v5, %s4078_s14 }
 0x140   : > { %v4996_v41 = vpop.permute.xlu0 %755  ;;  %v4998_v57 = vpop.permute.xlu1 %753 }
 0x141   : > { %7970 = vst [vmem:[#allocation7_spill] sm:$0xff] %v4996_v41  ;;  %7971 = vst [vmem:[#allocation6_spill] sm:$0xff] %v4998_v57  ;;  %v469_v41 = vrot.slane %v4721_v62, 1  ;;  %v470_v57 = vrot.slane %v4741_v49, 1 }
 0x142   : > { %936 = vrot.lane.b32.xlu0 %v7972_v36, %s4078_s14  ;;  %934 = vrot.lane.b32.xlu1 %v7973_v0, %s4078_s14  ;;  %v7980_v0 = vld [vmem:[#allocation14_spill] sm:$0xff] }
 0x144   : > { %v5004_v34 = vpop.permute.xlu0 %791  ;;  %v5006_v2 = vpop.permute.xlu1 %757 }
 0x145   : > { %7974 = vst [vmem:[#allocation136_spill] sm:$0xff] %v5004_v34  ;;  %7975 = vst [vmem:[#allocation137_spill] sm:$0xff] %v5006_v2  ;;  %v7981_v34 = vld [vmem:[#allocation13_spill] sm:$0xff]  ;;  %v5023_v2 = vsel %vm382_vm0, %v469_v41, %v470_v57  ;;  %v7989_v41 = vld [vmem:[#allocation24_spill] sm:$0xff] }
 0x146   : > { %940 = vrot.lane.b32.xlu0 %v7976_v39, %s4078_s14  ;;  %938 = vrot.lane.b32.xlu1 %v7977_v54, %s4078_s14  ;;  %7982 = vst [vmem:[#allocation140_spill] sm:$0xff] %v5023_v2 }
 0x148   : > { %v5014_v4 = vpop.permute.xlu0 %795  ;;  %v5016_v58 = vpop.permute.xlu1 %793 }
 0x149   : > { %7978 = vst [vmem:[#allocation138_spill] sm:$0xff] %v5014_v4  ;;  %7979 = vst [vmem:[#allocation139_spill] sm:$0xff] %v5016_v58  ;;  %v7985_v4 = vld [vmem:[#allocation17_spill] sm:$0xff]  ;;  %v5034_v58 = vsel %vm382_vm0, %v470_v57, 0.0  ;;  %v7993_v57 = vld [vmem:[#allocation27_spill] sm:$0xff] }
 0x14a   : > { %944 = vrot.lane.b32.xlu0 %v7980_v0, %s4078_s14  ;;  %942 = vrot.lane.b32.xlu1 %v7981_v34, %s4078_s14  ;;  %7986 = vst [vmem:[#allocation143_spill] sm:$0xff] %v5034_v58 }
 0x14c   : > { %v5025_v39 = vpop.permute.xlu0 %799  ;;  %v5027_v54 = vpop.permute.xlu1 %797 }
 0x14d   : > { %7983 = vst [vmem:[#allocation141_spill] sm:$0xff] %v5025_v39  ;;  %7984 = vst [vmem:[#allocation142_spill] sm:$0xff] %v5027_v54 }
 0x14e   : > { %948 = vrot.lane.b32.xlu0 %v5023_v2, %s4078_s14  ;;  %946 = vrot.lane.b32.xlu1 %v7985_v4, %s4078_s14  ;;  %v7992_v4 = vld [vmem:[#allocation28_spill] sm:$0xff] }
 0x14f   : > { %v7996_v2 = vld [vmem:[#allocation32_spill] sm:$0xff] }
 0x150   : > { %v5036_v0 = vpop.permute.xlu0 %803  ;;  %v5038_v36 = vpop.permute.xlu1 %801 }
 0x151   : > { %7987 = vst [vmem:[#allocation144_spill] sm:$0xff] %v5036_v0  ;;  %7988 = vst [vmem:[#allocation145_spill] sm:$0xff] %v5038_v36 }
 0x152   : > { %985 = vrot.lane.b32.xlu0 %v7989_v41, %s4079_s15  ;;  %950 = vrot.lane.b32.xlu1 %v5034_v58, %s4078_s14  ;;  %v7997_v41 = vld [vmem:[#allocation31_spill] sm:$0xff] }
 0x154   : > { %v5044_v54 = vpop.permute.xlu0 %807  ;;  %v5046_v39 = vpop.permute.xlu1 %805 }
 0x155   : > { %7990 = vst [vmem:[#allocation146_spill] sm:$0xff] %v5044_v54  ;;  %7991 = vst [vmem:[#allocation147_spill] sm:$0xff] %v5046_v39  ;;  %v8000_v39 = vld [vmem:[#allocation36_spill] sm:$0xff] }
 0x156   : > { %989 = vrot.lane.b32.xlu0 %v7992_v4, %s4079_s15  ;;  %987 = vrot.lane.b32.xlu1 %v7993_v57, %s4079_s15  ;;  %v8001_v4 = vld [vmem:[#allocation35_spill] sm:$0xff] }
 0x158   : > { %v5052_v0 = vpop.permute.xlu0 %811  ;;  %v5054_v36 = vpop.permute.xlu1 %809 }
 0x159   : > { %7994 = vst [vmem:[#allocation148_spill] sm:$0xff] %v5052_v0  ;;  %7995 = vst [vmem:[#allocation149_spill] sm:$0xff] %v5054_v36  ;;  %v8004_v36 = vld [vmem:[#allocation40_spill] sm:$0xff] }
 0x15a   : > { %993 = vrot.lane.b32.xlu0 %v7996_v2, %s4079_s15  ;;  %991 = vrot.lane.b32.xlu1 %v7997_v41, %s4079_s15  ;;  %v8005_v2 = vld [vmem:[#allocation39_spill] sm:$0xff] }
 0x15c   : > { %v5060_v58 = vpop.permute.xlu0 %815  ;;  %v5062_v54 = vpop.permute.xlu1 %813 }
 0x15d   : > { %7998 = vst [vmem:[#allocation150_spill] sm:$0xff] %v5060_v58  ;;  %7999 = vst [vmem:[#allocation151_spill] sm:$0xff] %v5062_v54  ;;  %v8008_v54 = vld [vmem:[#allocation44_spill] sm:$0xff] }
 0x15e   : > { %997 = vrot.lane.b32.xlu0 %v8000_v39, %s4079_s15  ;;  %995 = vrot.lane.b32.xlu1 %v8001_v4, %s4079_s15  ;;  %v8009_v39 = vld [vmem:[#allocation43_spill] sm:$0xff] }
 0x160   : > { %v5068_v57 = vpop.permute.xlu0 %819  ;;  %v5070_v0 = vpop.permute.xlu1 %817 }
 0x161   : > { %8002 = vst [vmem:[#allocation152_spill] sm:$0xff] %v5068_v57  ;;  %8003 = vst [vmem:[#allocation153_spill] sm:$0xff] %v5070_v0  ;;  %v8012_v0 = vld [vmem:[#allocation48_spill] sm:$0xff] }
 0x162   : > { %1001 = vrot.lane.b32.xlu0 %v8004_v36, %s4079_s15  ;;  %999 = vrot.lane.b32.xlu1 %v8005_v2, %s4079_s15  ;;  %v8013_v36 = vld [vmem:[#allocation47_spill] sm:$0xff] }
 0x164   : > { %v5076_v41 = vpop.permute.xlu0 %823  ;;  %v5078_v58 = vpop.permute.xlu1 %821 }
 0x165   : > { %8006 = vst [vmem:[#allocation154_spill] sm:$0xff] %v5076_v41  ;;  %8007 = vst [vmem:[#allocation155_spill] sm:$0xff] %v5078_v58  ;;  %v8016_v58 = vld [vmem:[#allocation52_spill] sm:$0xff] }
 0x166   : > { %1005 = vrot.lane.b32.xlu0 %v8008_v54, %s4079_s15  ;;  %1003 = vrot.lane.b32.xlu1 %v8009_v39, %s4079_s15  ;;  %v8017_v54 = vld [vmem:[#allocation51_spill] sm:$0xff] }
 0x168   : > { %v5084_v4 = vpop.permute.xlu0 %827  ;;  %v5086_v57 = vpop.permute.xlu1 %825 }
 0x169   : > { %8010 = vst [vmem:[#allocation156_spill] sm:$0xff] %v5084_v4  ;;  %8011 = vst [vmem:[#allocation157_spill] sm:$0xff] %v5086_v57  ;;  %v8020_v57 = vld [vmem:[#allocation56_spill] sm:$0xff] }
 0x16a   : > { %1009 = vrot.lane.b32.xlu0 %v8012_v0, %s4079_s15  ;;  %1007 = vrot.lane.b32.xlu1 %v8013_v36, %s4079_s15  ;;  %v8021_v0 = vld [vmem:[#allocation55_spill] sm:$0xff] }
 0x16c   : > { %v5092_v2 = vpop.permute.xlu0 %831  ;;  %v5094_v41 = vpop.permute.xlu1 %829 }
 0x16d   : > { %8014 = vst [vmem:[#allocation158_spill] sm:$0xff] %v5092_v2  ;;  %8015 = vst [vmem:[#allocation159_spill] sm:$0xff] %v5094_v41  ;;  %v8024_v41 = vld [vmem:[#allocation60_spill] sm:$0xff] }
 0x16e   : > { %1013 = vrot.lane.b32.xlu0 %v8016_v58, %s4079_s15  ;;  %1011 = vrot.lane.b32.xlu1 %v8017_v54, %s4079_s15  ;;  %v8025_v58 = vld [vmem:[#allocation59_spill] sm:$0xff] }
 0x170   : > { %v5100_v39 = vpop.permute.xlu0 %835  ;;  %v5102_v4 = vpop.permute.xlu1 %833 }
 0x171   : > { %8018 = vst [vmem:[#allocation160_spill] sm:$0xff] %v5100_v39  ;;  %8019 = vst [vmem:[#allocation161_spill] sm:$0xff] %v5102_v4  ;;  %v8028_v4 = vld [vmem:[#allocation64_spill] sm:$0xff] }
 0x172   : > { %1017 = vrot.lane.b32.xlu0 %v8020_v57, %s4079_s15  ;;  %1015 = vrot.lane.b32.xlu1 %v8021_v0, %s4079_s15  ;;  %v8029_v57 = vld [vmem:[#allocation63_spill] sm:$0xff] }
 0x174   : > { %v5108_v36 = vpop.permute.xlu0 %839  ;;  %v5110_v2 = vpop.permute.xlu1 %837 }
 0x175   : > { %8022 = vst [vmem:[#allocation162_spill] sm:$0xff] %v5108_v36  ;;  %8023 = vst [vmem:[#allocation163_spill] sm:$0xff] %v5110_v2  ;;  %v8032_v2 = vld [vmem:[#allocation68_spill] sm:$0xff] }
 0x176   : > { %1021 = vrot.lane.b32.xlu0 %v8024_v41, %s4079_s15  ;;  %1019 = vrot.lane.b32.xlu1 %v8025_v58, %s4079_s15  ;;  %v8033_v41 = vld [vmem:[#allocation67_spill] sm:$0xff] }
 0x178   : > { %v5116_v54 = vpop.permute.xlu0 %843  ;;  %v5118_v39 = vpop.permute.xlu1 %841 }
 0x179   : > { %8026 = vst [vmem:[#allocation164_spill] sm:$0xff] %v5116_v54  ;;  %8027 = vst [vmem:[#allocation165_spill] sm:$0xff] %v5118_v39  ;;  %v8036_v39 = vld [vmem:[#allocation72_spill] sm:$0xff] }
 0x17a   : > { %1025 = vrot.lane.b32.xlu0 %v8028_v4, %s4079_s15  ;;  %1023 = vrot.lane.b32.xlu1 %v8029_v57, %s4079_s15  ;;  %v8037_v4 = vld [vmem:[#allocation71_spill] sm:$0xff] }
 0x17c   : > { %v5124_v0 = vpop.permute.xlu0 %847  ;;  %v5126_v36 = vpop.permute.xlu1 %845 }
 0x17d   : > { %8030 = vst [vmem:[#allocation166_spill] sm:$0xff] %v5124_v0  ;;  %8031 = vst [vmem:[#allocation167_spill] sm:$0xff] %v5126_v36  ;;  %v8039_v36 = vmov 0.0  }
 0x17e   : > { %1029 = vrot.lane.b32.xlu0 %v8032_v2, %s4079_s15  ;;  %1027 = vrot.lane.b32.xlu1 %v8033_v41, %s4079_s15  ;;  %v5145_v34 = vrot.slane %v8039_v36, 7  ;;  %v8040_v2 = vld [vmem:[#allocation76_spill] sm:$0xff] }
 0x180   : > { %v5132_v58 = vpop.permute.xlu0 %851  ;;  %v5134_v54 = vpop.permute.xlu1 %849 }
 0x181   : > { %8034 = vst [vmem:[#allocation168_spill] sm:$0xff] %v5132_v58  ;;  %8035 = vst [vmem:[#allocation169_spill] sm:$0xff] %v5134_v54  ;;  %v8041_v58 = vld [vmem:[#allocation75_spill] sm:$0xff] }
 0x182   : > { %1033 = vrot.lane.b32.xlu0 %v8036_v39, %s4079_s15  ;;  %1031 = vrot.lane.b32.xlu1 %v8037_v4, %s4079_s15  ;;  %v5157_v39 = vsel %vm286_vm1, 0.0, %v5145_v34 }
 0x184   : > { %v5140_v57 = vpop.permute.xlu0 %888  ;;  %v5142_v0 = vpop.permute.xlu1 %853 }
 0x185   : > { %8038 = vst [vmem:[#allocation170_spill] sm:$0xff] %v5142_v0  ;;  %v3969_v0 = vpack.i.bf16 %v5145_v34, %v5157_v39 }
 0x186   : > { %1037 = vrot.lane.b32.xlu0 %v8040_v2, %s4079_s15  ;;  %1035 = vrot.lane.b32.xlu1 %v8041_v58, %s4079_s15 }
 0x188   : > { %v5151_v54 = vpop.permute.xlu0 %892  ;;  %v5153_v41 = vpop.permute.xlu1 %890 }
 0x189   : > { %8042 = vst [vmem:[#allocation171_spill] sm:$0xff] %v5153_v41 }
 0x18a   : > { %1041 = vrot.lane.b32.xlu0 %v4755_v3, %s4079_s15  ;;  %1039 = vrot.lane.b32.xlu1 %v4763_v46, %s4079_s15 }
 0x18c   : > { %v5165_v2 = vpop.permute.xlu0 %896  ;;  %v5167_v58 = vpop.permute.xlu1 %894 }
 0x18e   : > { %3970 = vrot.lane.b32.xlu0 %v3969_v0, %s4079_s15  ;;  %1043 = vrot.lane.b32.xlu1 %v4770_v38, %s4079_s15 }
 0x190   : > { %v5172_v4 = vpop.permute.xlu0 %900  ;;  %v5174_v41 = vpop.permute.xlu1 %898 }
 0x192   : > { %1083 = vrot.lane.b32.xlu0 %v4188_v7, %s4080_s16  ;;  %1081 = vrot.lane.b32.xlu1 %v4185_v6, %s4080_s16 }
 0x194   : > { %v5180_v3 = vpop.permute.xlu0 %904  ;;  %v5182_v46 = vpop.permute.xlu1 %902 }
 0x196   : > { %1087 = vrot.lane.b32.xlu0 %v4198_v9, %s4080_s16  ;;  %1085 = vrot.lane.b32.xlu1 %v4195_v8, %s4080_s16 }
 0x198   : > { %v5188_v38 = vpop.permute.xlu0 %908  ;;  %v5190_v0 = vpop.permute.xlu1 %906 }
 0x19a   : > { %1091 = vrot.lane.b32.xlu0 %v4208_v11, %s4080_s16  ;;  %1089 = vrot.lane.b32.xlu1 %v4205_v10, %s4080_s16 }
 0x19c   : > { %v5196_v6 = vpop.permute.xlu0 %912  ;;  %v5198_v7 = vpop.permute.xlu1 %910 }
 0x19e   : > { %1095 = vrot.lane.b32.xlu0 %v4218_v13, %s4080_s16  ;;  %1093 = vrot.lane.b32.xlu1 %v4215_v12, %s4080_s16 }
 0x1a0   : > { %v5204_v8 = vpop.permute.xlu0 %916  ;;  %v5206_v9 = vpop.permute.xlu1 %914 }
 0x1a2   : > { %1099 = vrot.lane.b32.xlu0 %v4228_v15, %s4080_s16  ;;  %1097 = vrot.lane.b32.xlu1 %v4225_v14, %s4080_s16 }
 0x1a4   : > { %v5212_v10 = vpop.permute.xlu0 %920  ;;  %v5214_v11 = vpop.permute.xlu1 %918 }
 0x1a6   : > { %1103 = vrot.lane.b32.xlu0 %v4238_v17, %s4080_s16  ;;  %1101 = vrot.lane.b32.xlu1 %v4235_v16, %s4080_s16 }
 0x1a8   : > { %v5220_v12 = vpop.permute.xlu0 %924  ;;  %v5222_v13 = vpop.permute.xlu1 %922 }
 0x1a9   : > { %8043 = vst [vmem:[#allocation172_spill] sm:$0xff] %v5220_v12  ;;  %8044 = vst [vmem:[#allocation173_spill] sm:$0xff] %v5222_v13 }
 0x1aa   : > { %1107 = vrot.lane.b32.xlu0 %v4248_v19, %s4080_s16  ;;  %1105 = vrot.lane.b32.xlu1 %v4245_v18, %s4080_s16 }
 0x1ac   : > { %v5228_v14 = vpop.permute.xlu0 %928  ;;  %v5230_v15 = vpop.permute.xlu1 %926 }
 0x1ad   : > { %8045 = vst [vmem:[#allocation174_spill] sm:$0xff] %v5228_v14  ;;  %8046 = vst [vmem:[#allocation175_spill] sm:$0xff] %v5230_v15 }
 0x1ae   : > { %1111 = vrot.lane.b32.xlu0 %v4258_v21, %s4080_s16  ;;  %1109 = vrot.lane.b32.xlu1 %v4255_v20, %s4080_s16 }
 0x1b0   : > { %v5236_v16 = vpop.permute.xlu0 %932  ;;  %v5238_v17 = vpop.permute.xlu1 %930 }
 0x1b1   : > { %8047 = vst [vmem:[#allocation176_spill] sm:$0xff] %v5236_v16  ;;  %8048 = vst [vmem:[#allocation177_spill] sm:$0xff] %v5238_v17 }
 0x1b2   : > { %1115 = vrot.lane.b32.xlu0 %v4268_v23, %s4080_s16  ;;  %1113 = vrot.lane.b32.xlu1 %v4265_v22, %s4080_s16  ;;  %v1538_v23 = vld [vmem:[%s7644_s1 + $0x20] sm:$0xf] }
 0x1b3   : > { %3800 = vmatprep.subr.msk.mxu0 %vm1643_vm2, %v1538_v23 }
 0x1b4   : > { %v5244_v18 = vpop.permute.xlu0 %936  ;;  %v5246_v19 = vpop.permute.xlu1 %934  ;;  %3801 = vmatpush3.msk.msra.mxu0 %vm1643_vm2, %v1538_v23  ;;  %v1535_v23 = vld [vmem:[%s7644_s1 + $0x8] sm:$0xff] }
 0x1b5   : > { %8049 = vst [vmem:[#allocation178_spill] sm:$0xff] %v5244_v18  ;;  %8050 = vst [vmem:[#allocation179_spill] sm:$0xff] %v5246_v19 }
 0x1b6   : > { %1119 = vrot.lane.b32.xlu0 %v4278_v25, %s4080_s16  ;;  %1117 = vrot.lane.b32.xlu1 %v4275_v24, %s4080_s16  ;;  %v1537_v25 = vld [vmem:[%s7644_s1 + $0x18] sm:$0xff] }
 0x1b7   : > { %3802 = vmatprep.subr.mxu0 %v1537_v25 }
 0x1b8   : > { %v5252_v20 = vpop.permute.xlu0 %940  ;;  %v5254_v21 = vpop.permute.xlu1 %938  ;;  %3803 = vmatpush3.msra.mxu0 %v1537_v25  ;;  %v1534_v25 = vld [vmem:[%s7644_s1] sm:$0xff] }
 0x1b9   : > { %8051 = vst [vmem:[#allocation180_spill] sm:$0xff] %v5252_v20  ;;  %8052 = vst [vmem:[#allocation181_spill] sm:$0xff] %v5254_v21 }
 0x1ba   : > { %1123 = vrot.lane.b32.xlu0 %v4288_v27, %s4080_s16  ;;  %1121 = vrot.lane.b32.xlu1 %v4285_v26, %s4080_s16  ;;  %v1536_v26 = vld [vmem:[%s7644_s1 + $0x10] sm:$0xff] }
 0x1bb   : > { %3804 = vmatprep.subr.mxu0 %v1536_v26 }
 0x1bc   : > { %v5264_v22 = vpop.permute.xlu0 %944  ;;  %v5266_v24 = vpop.permute.xlu1 %942  ;;  %3805 = vmatpush3.msra.mxu0 %v1536_v26 }
 0x1bd   : > { %8053 = vst [vmem:[#allocation182_spill] sm:$0xff] %v5264_v22  ;;  %8054 = vst [vmem:[#allocation183_spill] sm:$0xff] %v5266_v24  ;;  %3806 = vmatprep.subr.mxu0 %v1535_v23  ;;  %v8076_v22 = vld [vmem:[#allocation14_spill] sm:$0xff] }
 0x1be   : > { %1127 = vrot.lane.b32.xlu0 %v4298_v29, %s4080_s16  ;;  %1125 = vrot.lane.b32.xlu1 %v4295_v28, %s4080_s16 }
 0x1bf   : > { %3807 = vmatpush3.msra.mxu0 %v1535_v23 }
 0x1c0   : > { %v5279_v27 = vpop.permute.xlu0 %948  ;;  %v5281_v24 = vpop.permute.xlu1 %946  ;;  %3808 = vmatprep.subr.mxu0 %v1534_v25 }
 0x1c1   : > { %8055 = vst [vmem:[#allocation184_spill] sm:$0xff] %v5279_v27  ;;  %8056 = vst [vmem:[#allocation185_spill] sm:$0xff] %v5281_v24  ;;  %3809 = vmatpush3.msra.mxu0 %v1534_v25  ;;  %v8068_v25 = vld [vmem:[#allocation9_spill] sm:$0xff]  ;;  %v8072_v27 = vld [vmem:[#allocation12_spill] sm:$0xff] }
 0x1c2   : > { %1131 = vrot.lane.b32.xlu0 %v4308_v31, %s4080_s16  ;;  %1129 = vrot.lane.b32.xlu1 %v4305_v30, %s4080_s16 }
 0x1c4   : > { %v5290_v28 = vpop.permute.xlu0 %985  ;;  %v5292_v29 = vpop.permute.xlu1 %950 }
 0x1c5   : > { %8057 = vst [vmem:[#allocation186_spill] sm:$0xff] %v5292_v29 }
 0x1c6   : > { %1135 = vrot.lane.b32.xlu0 %v4318_v33, %s4080_s16  ;;  %1133 = vrot.lane.b32.xlu1 %v4315_v32, %s4080_s16 }
 0x1c8   : > { %v5301_v31 = vpop.permute.xlu0 %989  ;;  %v5303_v30 = vpop.permute.xlu1 %987 }
 0x1ca   : > { %1139 = vrot.lane.b32.xlu0 %v4741_v49, %s4080_s16  ;;  %1137 = vrot.lane.b32.xlu1 %v4721_v62, %s4080_s16 }
 0x1cc   : > { %v5309_v26 = vpop.permute.xlu0 %993  ;;  %v5311_v23 = vpop.permute.xlu1 %991 }
 0x1ce   : > { %1174 = vrot.lane.b32.xlu0 %v4339_v40, %s4081_s25  ;;  %1141 = vrot.lane.b32.xlu1 %v8039_v36, %s4080_s16 }
 0x1d0   : > { %v5317_v32 = vpop.permute.xlu0 %997  ;;  %v5319_v33 = vpop.permute.xlu1 %995 }
 0x1d2   : > { %1178 = vrot.lane.b32.xlu0 %v4351_v44, %s4081_s25  ;;  %1176 = vrot.lane.b32.xlu1 %v4348_v43, %s4081_s25 }
 0x1d4   : > { %v5325_v62 = vpop.permute.xlu0 %1001  ;;  %v5327_v49 = vpop.permute.xlu1 %999 }
 0x1d6   : > { %1182 = vrot.lane.b32.xlu0 %v4363_v48, %s4081_s25  ;;  %1180 = vrot.lane.b32.xlu1 %v4360_v47, %s4081_s25 }
 0x1d8   : > { %v5333_v40 = vpop.permute.xlu0 %1005  ;;  %v5335_v36 = vpop.permute.xlu1 %1003 }
 0x1da   : > { %1186 = vrot.lane.b32.xlu0 %v4375_v52, %s4081_s25  ;;  %1184 = vrot.lane.b32.xlu1 %v4372_v51, %s4081_s25 }
 0x1dc   : > { %v5341_v43 = vpop.permute.xlu0 %1009  ;;  %v5343_v44 = vpop.permute.xlu1 %1007 }
 0x1de   : > { %1190 = vrot.lane.b32.xlu0 %v4387_v56, %s4081_s25  ;;  %1188 = vrot.lane.b32.xlu1 %v4384_v55, %s4081_s25 }
 0x1e0   : > { %v5349_v47 = vpop.permute.xlu0 %1013  ;;  %v5351_v48 = vpop.permute.xlu1 %1011 }
 0x1e2   : > { %1194 = vrot.lane.b32.xlu0 %v4399_v60, %s4081_s25  ;;  %1192 = vrot.lane.b32.xlu1 %v4396_v59, %s4081_s25 }
 0x1e4   : > { %v5357_v51 = vpop.permute.xlu0 %1017  ;;  %v5359_v52 = vpop.permute.xlu1 %1015 }
 0x1e6   : > { %1198 = vrot.lane.b32.xlu0 %v4411_v1, %s4081_s25  ;;  %1196 = vrot.lane.b32.xlu1 %v4408_v63, %s4081_s25 }
 0x1e8   : > { %v5365_v55 = vpop.permute.xlu0 %1021  ;;  %v5367_v56 = vpop.permute.xlu1 %1019 }
 0x1e9   : > { %8058 = vst [vmem:[#allocation187_spill] sm:$0xff] %v5365_v55  ;;  %8059 = vst [vmem:[#allocation188_spill] sm:$0xff] %v5367_v56 }
 0x1ea   : > { %1202 = vrot.lane.b32.xlu0 %v4423_v37, %s4081_s25  ;;  %1200 = vrot.lane.b32.xlu1 %v4420_v35, %s4081_s25 }
 0x1ec   : > { %v5373_v59 = vpop.permute.xlu0 %1025  ;;  %v5375_v60 = vpop.permute.xlu1 %1023 }
 0x1ed   : > { %8060 = vst [vmem:[#allocation189_spill] sm:$0xff] %v5373_v59  ;;  %8061 = vst [vmem:[#allocation190_spill] sm:$0xff] %v5375_v60 }
 0x1ee   : > { %1206 = vrot.lane.b32.xlu0 %v4435_v45, %s4081_s25  ;;  %1204 = vrot.lane.b32.xlu1 %v4432_v42, %s4081_s25 }
 0x1f0   : > { %v5381_v63 = vpop.permute.xlu0 %1029  ;;  %v5383_v1 = vpop.permute.xlu1 %1027 }
 0x1f1   : > { %8062 = vst [vmem:[#allocation191_spill] sm:$0xff] %v5381_v63  ;;  %8063 = vst [vmem:[#allocation192_spill] sm:$0xff] %v5383_v1 }
 0x1f2   : > { %1210 = vrot.lane.b32.xlu0 %v4447_v53, %s4081_s25  ;;  %1208 = vrot.lane.b32.xlu1 %v4444_v50, %s4081_s25  ;;  %v8069_v53 = vld [vmem:[#allocation8_spill] sm:$0xff] }
 0x1f4   : > { %v5389_v35 = vpop.permute.xlu0 %1033  ;;  %v5391_v37 = vpop.permute.xlu1 %1031 }
 0x1f5   : > { %8064 = vst [vmem:[#allocation193_spill] sm:$0xff] %v5389_v35  ;;  %8065 = vst [vmem:[#allocation194_spill] sm:$0xff] %v5391_v37 }
 0x1f6   : > { %1214 = vrot.lane.b32.xlu0 %v7968_v61, %s4081_s25  ;;  %1212 = vrot.lane.b32.xlu1 %v7969_v5, %s4081_s25  ;;  %v8073_v61 = vld [vmem:[#allocation11_spill] sm:$0xff] }
 0x1f8   : > { %v5397_v42 = vpop.permute.xlu0 %1037  ;;  %v5399_v45 = vpop.permute.xlu1 %1035 }
 0x1f9   : > { %8066 = vst [vmem:[#allocation195_spill] sm:$0xff] %v5397_v42  ;;  %8067 = vst [vmem:[#allocation196_spill] sm:$0xff] %v5399_v45 }
 0x1fa   : > { %1218 = vrot.lane.b32.xlu0 %v8068_v25, %s4081_s25  ;;  %1216 = vrot.lane.b32.xlu1 %v8069_v53, %s4081_s25  ;;  %v8077_v25 = vld [vmem:[#allocation13_spill] sm:$0xff] }
 0x1fc   : > { %v5405_v50 = vpop.permute.xlu0 %1041  ;;  %v5407_v29 = vpop.permute.xlu1 %1039 }
 0x1fd   : > { %8070 = vst [vmem:[#allocation9_spill] sm:$0xff] %v5405_v50  ;;  %8071 = vst [vmem:[#allocation8_spill] sm:$0xff] %v5407_v29  ;;  %v8078_v29 = vld [vmem:[#allocation140_spill] sm:$0xff] }
 0x1fe   : > { %1222 = vrot.lane.b32.xlu0 %v8072_v27, %s4081_s25  ;;  %1220 = vrot.lane.b32.xlu1 %v8073_v61, %s4081_s25  ;;  %v8079_v27 = vld [vmem:[#allocation17_spill] sm:$0xff] }
 0x200   : > { %v5413_v5 = vpop.permute.xlu0 %3970  ;;  %v5415_v24 = vpop.permute.xlu1 %1043 }
 0x201   : > { %8074 = vst [vmem:[#allocation12_spill] sm:$0xff] %v5413_v5  ;;  %8075 = vst [vmem:[#allocation11_spill] sm:$0xff] %v5415_v24  ;;  %v8080_v24 = vld [vmem:[#allocation5_spill] sm:$0xff] }
 0x202   : > { %1226 = vrot.lane.b32.xlu0 %v8076_v22, %s4081_s25  ;;  %1224 = vrot.lane.b32.xlu1 %v8077_v25, %s4081_s25  ;;  %v8081_v22 = vld [vmem:[#allocation143_spill] sm:$0xff] }
 0x204   : > { %v5421_v53 = vpop.permute.xlu0 %1083  ;;  %v1082_v50 = vpop.permute.xlu1 %1081 }
 0x206   : > { %1230 = vrot.lane.b32.xlu0 %v8078_v29, %s4081_s25  ;;  %1228 = vrot.lane.b32.xlu1 %v8079_v27, %s4081_s25 }
 0x208   : > { %v5427_v61 = vpop.permute.xlu0 %1087  ;;  %v5429_v5 = vpop.permute.xlu1 %1085 }
 0x20a   : > { %3975 = vrot.lane.b32.xlu0 %v8080_v24, %s4081_s25  ;;  %1232 = vrot.lane.b32.xlu1 %v8081_v22, %s4081_s25 }
 0x20c   : > { %v5435_v25 = vpop.permute.xlu0 %1091  ;;  %v5437_v45 = vpop.permute.xlu1 %1089 }
 0x210   : > { %v5439_v42 = vpop.permute.xlu0 %1095  ;;  %v5441_v29 = vpop.permute.xlu1 %1093 }
 0x214   : > { %v5443_v21 = vpop.permute.xlu0 %1099  ;;  %v5445_v27 = vpop.permute.xlu1 %1097 }
 0x218   : > { %v5447_v20 = vpop.permute.xlu0 %1103  ;;  %v5449_v37 = vpop.permute.xlu1 %1101 }
 0x21c   : > { %v5451_v24 = vpop.permute.xlu0 %1107  ;;  %v5453_v35 = vpop.permute.xlu1 %1105 }
 0x220   : > { %v5455_v22 = vpop.permute.xlu0 %1111  ;;  %v5457_v19 = vpop.permute.xlu1 %1109 }
 0x221   : > { %8082 = vst [vmem:[#allocation14_spill] sm:$0xff] %v5455_v22  ;;  %v8114_v22 = vld [vmem:[#allocation24_spill] sm:$0xff] }
 0x224   : > { %v5459_v18 = vpop.permute.xlu0 %1115  ;;  %v5461_v1 = vpop.permute.xlu1 %1113 }
 0x225   : > { %8083 = vst [vmem:[#allocation13_spill] sm:$0xff] %v5459_v18  ;;  %8084 = vst [vmem:[#allocation140_spill] sm:$0xff] %v5461_v1  ;;  %v8093_v18 = vld [vmem:[#allocation73_spill] sm:$0xff]  ;;  %v8112_v1 = vld [vmem:[#allocation23_spill] sm:$0xff] }
 0x226   : > { %v3967_v55 = vunpack.i.l.bf16 %v8093_v18 }
 0x228   : > { %v5463_v63 = vpop.permute.xlu0 %1119  ;;  %v5465_v17 = vpop.permute.xlu1 %1117 }
 0x229   : > { %8085 = vst [vmem:[#allocation17_spill] sm:$0xff] %v5463_v63  ;;  %8086 = vst [vmem:[#allocation5_spill] sm:$0xff] %v5465_v17  ;;  %v8096_v17 = vld [vmem:[#allocation10_spill] sm:$0xff] }
 0x22c   : > { %v5467_v16 = vpop.permute.xlu0 %1123  ;;  %v5469_v60 = vpop.permute.xlu1 %1121 }
 0x22d   : > { %8087 = vst [vmem:[#allocation143_spill] sm:$0xff] %v5467_v16  ;;  %8088 = vst [vmem:[#allocation197_spill] sm:$0xff] %v5469_v60  ;;  %v1271_v16 = vsel %vm1270_vm3, %v5157_v39, %v8096_v17  ;;  %v8101_v60 = vld [vmem:[#allocation136_spill] sm:$0xff] }
 0x230   : > { %v5471_v59 = vpop.permute.xlu0 %1127  ;;  %v5473_v15 = vpop.permute.xlu1 %1125 }
 0x231   : > { %8089 = vst [vmem:[#allocation198_spill] sm:$0xff] %v5471_v59  ;;  %8090 = vst [vmem:[#allocation199_spill] sm:$0xff] %v5473_v15  ;;  %v3968_v59 = vunpack.i.h.bf16 %v8093_v18  ;;  %v1272_v18 = vsel %vm1270_vm3, %v5145_v34, %v8096_v17  ;;  %v8107_v17 = vld [vmem:[#allocation109_spill] sm:$0xff] }
 0x234   : > { %v5475_v14 = vpop.permute.xlu0 %1131  ;;  %v5477_v56 = vpop.permute.xlu1 %1129 }
 0x235   : > { %8091 = vst [vmem:[#allocation200_spill] sm:$0xff] %v5475_v14  ;;  %8092 = vst [vmem:[#allocation201_spill] sm:$0xff] %v5477_v56  ;;  %v5489_v14 = vsel %vm1303_vm5, %v1271_v16, %v3967_v55  ;;  %v8098_v56 = vld [vmem:[#allocation107_spill] sm:$0xff]  ;;  %v8102_v16 = vld [vmem:[#allocation16_spill] sm:$0xff] }
 0x236   : > { %8097 = vst [vmem:[#allocation10_spill] sm:$0xff] %v5489_v14  ;;  %v1337_v15 = vsel %vm1336_vm4, %v5489_v14, %v8098_v56  ;;  %v8103_v55 = vld [vmem:[#allocation20_spill] sm:$0xff]  ;;  %v8104_v14 = vld [vmem:[#allocation74_spill] sm:$0xff] }
 0x237   : > { %v1370_v39 = vsel %vm1369_vm6, %v1337_v15, %v8101_v60  ;;  %v1273_v12 = vsel %vm1270_vm3, %v8103_v55, %v8102_v16  ;;  %v8106_v60 = vld [vmem:[#allocation108_spill] sm:$0xff] }
 0x238   : > { %v5480_v13 = vpop.permute.xlu0 %1135  ;;  %v5482_v63 = vpop.permute.xlu1 %1133  ;;  %v1403_v56 = vsel %vm1402_vm7, %v1370_v39, %v5140_v57 }
 0x239   : > { %8094 = vst [vmem:[#allocation73_spill] sm:$0xff] %v5480_v13  ;;  %8095 = vst [vmem:[#allocation202_spill] sm:$0xff] %v5482_v63  ;;  %v1436_v15 = vsel %vm1435_vm8, %v1403_v56, %v5290_v28  ;;  %v8111_v56 = vld [vmem:[#allocation15_spill] sm:$0xff] }
 0x23a   : > { %v1469_v57 = vsel %vm1468_vm9, %v1436_v15, %v1082_v50  ;;  %v8115_v15 = vld [vmem:[#allocation171_spill] sm:$0xff] }
 0x23c   : > { %v5494_v13 = vpop.permute.xlu0 %1139  ;;  %v5496_v63 = vpop.permute.xlu1 %1137 }
 0x23d   : > { %8099 = vst [vmem:[#allocation107_spill] sm:$0xff] %v5494_v13  ;;  %8100 = vst [vmem:[#allocation203_spill] sm:$0xff] %v5496_v63  ;;  %v1306_v13 = vsel %vm1303_vm5, %v1273_v12, %v8104_v14  ;;  %v5511_v63 = vsel %vm1303_vm5, %v1272_v18, %v3968_v59  ;;  %v8109_v12 = vld [vmem:[#allocation138_spill] sm:$0xff]  ;;  %v8110_v59 = vld [vmem:[#allocation139_spill] sm:$0xff] }
 0x23e   : > { %8105 = vst [vmem:[#allocation136_spill] sm:$0xff] %v5511_v63  ;;  %v1339_v34 = vsel %vm1336_vm4, %v1306_v13, %v8106_v60  ;;  %v1338_v16 = vsel %vm1336_vm4, %v5511_v63, %v8107_v17  ;;  %v1274_v13 = vsel %vm1270_vm3, %v8112_v1, %v8111_v56  ;;  %v8113_v60 = vld [vmem:[#allocation18_spill] sm:$0xff] }
 0x23f   : > { %v1372_v14 = vsel %vm1369_vm6, %v1339_v34, %v8109_v12  ;;  %v1371_v18 = vsel %vm1369_vm6, %v1338_v16, %v8110_v59  ;;  %v1275_v17 = vsel %vm1270_vm3, %v8114_v22, %v8113_v60  ;;  %v8116_v34 = vld [vmem:[#allocation77_spill] sm:$0xff]  ;;  %v8118_v12 = vld [vmem:[#allocation110_spill] sm:$0xff] }
 0x240   : > { %v1175_v39 = vpop.permute.xlu0 %1174  ;;  %v5521_v55 = vpop.permute.xlu1 %1141  ;;  %v1405_v50 = vsel %vm1402_vm7, %v1372_v14, %v5151_v54  ;;  %v1404_v63 = vsel %vm1402_vm7, %v1371_v18, %v8115_v15  ;;  %v1307_v16 = vsel %vm1303_vm5, %v1274_v13, %v8116_v34  ;;  %v8119_v14 = vld [vmem:[#allocation111_spill] sm:$0xff]  ;;  %v8120_v60 = vld [vmem:[#allocation141_spill] sm:$0xff] }
 0x241   : > { %8108 = vst [vmem:[#allocation16_spill] sm:$0xff] %v5521_v55  ;;  %v1502_v28 = vsel %vm1501_vm10, %v1469_v57, %v1175_v39  ;;  %v8117_v57 = vld [vmem:[#allocation78_spill] sm:$0xff]  ;;  %v1438_v1 = vsel %vm1435_vm8, %v1405_v50, %v5301_v31  ;;  %v1437_v22 = vsel %vm1435_vm8, %v1404_v63, %v5303_v30  ;;  %v1340_v59 = vsel %vm1336_vm4, %v1307_v16, %v8119_v14  ;;  %v8122_v15 = vld [vmem:[#allocation19_spill] sm:$0xff] }
 0x242   : > { %3810 = vmatprep.mubr.msk.f32.mxu0 %vm1546_vm11, %v1502_v28  ;;  %v1308_v39 = vsel %vm1303_vm5, %v1275_v17, %v8117_v57  ;;  %v1470_v18 = vsel %vm1468_vm9, %v1437_v22, %v5421_v53  ;;  %v1471_v28 = vsel %vm1468_vm9, %v1438_v1, %v5429_v5  ;;  %v8121_v17 = vld [vmem:[#allocation142_spill] sm:$0xff]  ;;  %v8123_v34 = vld [vmem:[#allocation27_spill] sm:$0xff]  ;;  %v8124_v53 = vld [vmem:[#allocation21_spill] sm:$0xff] }
 0x243   : > { %v1341_v54 = vsel %vm1336_vm4, %v1308_v39, %v8118_v12  ;;  %v1373_v30 = vsel %vm1369_vm6, %v1340_v59, %v8121_v17  ;;  %v1276_v16 = vsel %vm1270_vm3, %v8123_v34, %v8122_v15  ;;  %v8125_v57 = vld [vmem:[#allocation28_spill] sm:$0xff]  ;;  %v8132_v34 = vld [vmem:[#allocation22_spill] sm:$0xff] }
 0x244   : > { %v1179_v56 = vpop.permute.xlu0 %1178  ;;  %v1177_v13 = vpop.permute.xlu1 %1176  ;;  %v1374_v31 = vsel %vm1369_vm6, %v1341_v54, %v8120_v60  ;;  %v1277_v5 = vsel %vm1270_vm3, %v8125_v57, %v8124_v53  ;;  %v1406_v1 = vsel %vm1402_vm7, %v1373_v30, %v5167_v58  ;;  %v8126_v22 = vld [vmem:[#allocation80_spill] sm:$0xff]  ;;  %v8127_v54 = vld [vmem:[#allocation81_spill] sm:$0xff] }
 0x245   : > { %v1504_v63 = vsel %vm1501_vm10, %v1471_v28, %v1179_v56  ;;  %v1503_v50 = vsel %vm1501_vm10, %v1470_v18, %v1177_v13  ;;  %v1407_v39 = vsel %vm1402_vm7, %v1374_v31, %v5165_v2  ;;  %v1309_v12 = vsel %vm1303_vm5, %v1276_v16, %v8126_v22  ;;  %v8128_v2 = vld [vmem:[#allocation112_spill] sm:$0xff]  ;;  %v8129_v58 = vld [vmem:[#allocation113_spill] sm:$0xff]  ;;  %v8133_v16 = vld [vmem:[#allocation31_spill] sm:$0xff] }
 0x246   : > { %3811 = vmatmul.mubr.msk.f32.vlgmr.msra.gmra.mxu0 %vm1546_vm11, %v1503_v50  ;;  %v1310_v14 = vsel %vm1303_vm5, %v1277_v5, %v8127_v54  ;;  %v1440_v59 = vsel %vm1435_vm8, %v1407_v39, %v5309_v26  ;;  %v1439_v18 = vsel %vm1435_vm8, %v1406_v1, %v5311_v23  ;;  %v1342_v56 = vsel %vm1336_vm4, %v1309_v12, %v8129_v58  ;;  %v8130_v26 = vld [vmem:[#allocation144_spill] sm:$0xff]  ;;  %v8131_v23 = vld [vmem:[#allocation145_spill] sm:$0xff]  ;;  %v8136_v1 = vld [vmem:[#allocation82_spill] sm:$0xff] }
 0x247   : > { %3813 = vmatprep.mubr.msk.f32.mxu0 %vm1546_vm11, %v1504_v63  ;;  %v1343_v28 = vsel %vm1336_vm4, %v1310_v14, %v8128_v2  ;;  %v1472_v13 = vsel %vm1468_vm9, %v1439_v18, %v5427_v61  ;;  %v1473_v60 = vsel %vm1468_vm9, %v1440_v59, %v5437_v45  ;;  %v1375_v63 = vsel %vm1369_vm6, %v1342_v56, %v8131_v23  ;;  %v8134_v61 = vld [vmem:[#allocation25_spill] sm:$0xff]  ;;  %v8135_v57 = vld [vmem:[#allocation32_spill] sm:$0xff]  ;;  %v8137_v12 = vld [vmem:[#allocation83_spill] sm:$0xff] }
 0x248   : > { %v1183_v31 = vpop.permute.xlu0 %1182  ;;  %v1181_v17 = vpop.permute.xlu1 %1180  ;;  %v1376_v30 = vsel %vm1369_vm6, %v1343_v28, %v8130_v26  ;;  %v1278_v53 = vsel %vm1270_vm3, %v8133_v16, %v8132_v34  ;;  %v1279_v45 = vsel %vm1270_vm3, %v8135_v57, %v8134_v61  ;;  %v1408_v39 = vsel %vm1402_vm7, %v1375_v63, %v5174_v41  ;;  %v8139_v41 = vld [vmem:[#allocation115_spill] sm:$0xff]  ;;  %v8146_v16 = vld [vmem:[#allocation84_spill] sm:$0xff]  ;;  %v8147_v61 = vld [vmem:[#allocation85_spill] sm:$0xff] }
 0x249   : > { %v1506_v50 = vsel %vm1501_vm10, %v1473_v60, %v1183_v31  ;;  %v1505_v15 = vsel %vm1501_vm10, %v1472_v13, %v1181_v17  ;;  %v1409_v5 = vsel %vm1402_vm7, %v1376_v30, %v5172_v4  ;;  %v1311_v22 = vsel %vm1303_vm5, %v1278_v53, %v8136_v1  ;;  %v8138_v4 = vld [vmem:[#allocation114_spill] sm:$0xff]  ;;  %v8143_v23 = vld [vmem:[#allocation35_spill] sm:$0xff] }
 0x24a   : > { %3814 = vmatmul.mubr.msk.f32.gmra.mxu0 %vm1546_vm11, %v1505_v15  ;;  %v1312_v54 = vsel %vm1303_vm5, %v1279_v45, %v8137_v12  ;;  %v1442_v14 = vsel %vm1435_vm8, %v1409_v5, %v5317_v32  ;;  %v1441_v59 = vsel %vm1435_vm8, %v1408_v39, %v5319_v33  ;;  %v1344_v2 = vsel %vm1336_vm4, %v1311_v22, %v8139_v41  ;;  %v8140_v32 = vld [vmem:[#allocation146_spill] sm:$0xff]  ;;  %v8141_v33 = vld [vmem:[#allocation147_spill] sm:$0xff] }
 0x24b   : > { %3816 = vmatprep.mubr.msk.f32.mxu0 %vm1546_vm11, %v1506_v50  ;;  %v1345_v18 = vsel %vm1336_vm4, %v1312_v54, %v8138_v4  ;;  %v1474_v28 = vsel %vm1468_vm9, %v1441_v59, %v5435_v25  ;;  %v1475_v58 = vsel %vm1468_vm9, %v1442_v14, %v5441_v29  ;;  %v1377_v31 = vsel %vm1369_vm6, %v1344_v2, %v8141_v33  ;;  %v8142_v30 = vld [vmem:[#allocation26_spill] sm:$0xff]  ;;  %v8144_v25 = vld [vmem:[#allocation29_spill] sm:$0xff]  ;;  %v8145_v50 = vld [vmem:[#allocation36_spill] sm:$0xff] }
 0x24c   : > { %v1187_v56 = vpop.permute.xlu0 %1186  ;;  %v1185_v13 = vpop.permute.xlu1 %1184  ;;  %v1378_v60 = vsel %vm1369_vm6, %v1345_v18, %v8140_v32  ;;  %v1280_v63 = vsel %vm1270_vm3, %v8143_v23, %v8142_v30  ;;  %v1281_v29 = vsel %vm1270_vm3, %v8145_v50, %v8144_v25  ;;  %v1410_v34 = vsel %vm1402_vm7, %v1377_v31, %v5182_v46  ;;  %v8149_v46 = vld [vmem:[#allocation117_spill] sm:$0xff]  ;;  %v8152_v2 = vld [vmem:[#allocation30_spill] sm:$0xff]  ;;  %v8157_v31 = vld [vmem:[#allocation87_spill] sm:$0xff] }
 0x24d   : > { %v1508_v17 = vsel %vm1501_vm10, %v1475_v58, %v1187_v56  ;;  %v1507_v26 = vsel %vm1501_vm10, %v1474_v28, %v1185_v13  ;;  %v1411_v15 = vsel %vm1402_vm7, %v1378_v60, %v5180_v3  ;;  %v1313_v53 = vsel %vm1303_vm5, %v1280_v63, %v8146_v16  ;;  %v8148_v3 = vld [vmem:[#allocation116_spill] sm:$0xff]  ;;  %v8153_v28 = vld [vmem:[#allocation39_spill] sm:$0xff]  ;;  %v8156_v60 = vld [vmem:[#allocation86_spill] sm:$0xff] }
 0x24e   : > { %3817 = vmatmul.mubr.msk.f32.gmra.mxu0 %vm1546_vm11, %v1507_v26  ;;  %v1314_v57 = vsel %vm1303_vm5, %v1281_v29, %v8147_v61  ;;  %v1444_v45 = vsel %vm1435_vm8, %v1411_v15, %v5325_v62  ;;  %v1443_v5 = vsel %vm1435_vm8, %v1410_v34, %v5327_v49  ;;  %v1346_v1 = vsel %vm1336_vm4, %v1313_v53, %v8149_v46  ;;  %v8150_v62 = vld [vmem:[#allocation148_spill] sm:$0xff]  ;;  %v8151_v49 = vld [vmem:[#allocation149_spill] sm:$0xff] }
 0x24f   : > { %3819 = vmatprep.mubr.msk.f32.mxu0 %vm1546_vm11, %v1508_v17  ;;  %v1347_v39 = vsel %vm1336_vm4, %v1314_v57, %v8148_v3  ;;  %v1476_v22 = vsel %vm1468_vm9, %v1443_v5, %v5439_v42  ;;  %v1477_v12 = vsel %vm1468_vm9, %v1444_v45, %v5445_v27  ;;  %v1379_v4 = vsel %vm1369_vm6, %v1346_v1, %v8151_v49  ;;  %v8154_v42 = vld [vmem:[#allocation33_spill] sm:$0xff]  ;;  %v8155_v56 = vld [vmem:[#allocation40_spill] sm:$0xff]  ;;  %v8162_v57 = vld [vmem:[#allocation34_spill] sm:$0xff] }
 0x250   : > { %v1191_v54 = vpop.permute.xlu0 %1190  ;;  %v1189_v14 = vpop.permute.xlu1 %1188  ;;  %v1380_v59 = vsel %vm1369_vm6, %v1347_v39, %v8150_v62  ;;  %v1282_v58 = vsel %vm1270_vm3, %v8153_v28, %v8152_v2  ;;  %v1283_v27 = vsel %vm1270_vm3, %v8155_v56, %v8154_v42  ;;  %v1412_v32 = vsel %vm1402_vm7, %v1379_v4, %v5190_v0  ;;  %v8159_v0 = vld [vmem:[#allocation119_spill] sm:$0xff]  ;;  %v8165_v3 = vld [vmem:[#allocation44_spill] sm:$0xff] }
 0x251   : > { %v1510_v18 = vsel %vm1501_vm10, %v1477_v12, %v1191_v54  ;;  %v1509_v41 = vsel %vm1501_vm10, %v1476_v22, %v1189_v14  ;;  %v1413_v13 = vsel %vm1402_vm7, %v1380_v59, %v5188_v38  ;;  %v1315_v33 = vsel %vm1303_vm5, %v1282_v58, %v8156_v60  ;;  %v8158_v38 = vld [vmem:[#allocation118_spill] sm:$0xff]  ;;  %v8163_v45 = vld [vmem:[#allocation43_spill] sm:$0xff]  ;;  %v8166_v1 = vld [vmem:[#allocation88_spill] sm:$0xff] }
 0x252   : > { %3820 = vmatmul.mubr.msk.f32.gmra.mxu0 %vm1546_vm11, %v1509_v41  ;;  %v1316_v17 = vsel %vm1303_vm5, %v1283_v27, %v8157_v31  ;;  %v1446_v26 = vsel %vm1435_vm8, %v1413_v13, %v5333_v40  ;;  %v1445_v30 = vsel %vm1435_vm8, %v1412_v32, %v5335_v36  ;;  %v1348_v63 = vsel %vm1336_vm4, %v1315_v33, %v8159_v0  ;;  %v8160_v40 = vld [vmem:[#allocation150_spill] sm:$0xff]  ;;  %v8161_v36 = vld [vmem:[#allocation151_spill] sm:$0xff]  ;;  %v8167_v12 = vld [vmem:[#allocation89_spill] sm:$0xff] }
 0x253   : > { %3822 = vmatprep.mubr.msk.f32.mxu0 %vm1546_vm11, %v1510_v18  ;;  %v1349_v23 = vsel %vm1336_vm4, %v1316_v17, %v8158_v38  ;;  %v1478_v25 = vsel %vm1468_vm9, %v1445_v30, %v5443_v21  ;;  %v1479_v50 = vsel %vm1468_vm9, %v1446_v26, %v5449_v37  ;;  %v1381_v16 = vsel %vm1369_vm6, %v1348_v63, %v8161_v36  ;;  %v8164_v21 = vld [vmem:[#allocation37_spill] sm:$0xff]  ;;  %v8172_v27 = vld [vmem:[#allocation38_spill] sm:$0xff]  ;;  %v8173_v13 = vld [vmem:[#allocation47_spill] sm:$0xff] }
 0x254   : > { %v1195_v29 = vpop.permute.xlu0 %1194  ;;  %v1193_v15 = vpop.permute.xlu1 %1192  ;;  %v1382_v34 = vsel %vm1369_vm6, %v1349_v23, %v8160_v40  ;;  %v1284_v5 = vsel %vm1270_vm3, %v8163_v45, %v8162_v57  ;;  %v1285_v37 = vsel %vm1270_vm3, %v8165_v3, %v8164_v21  ;;  %v1414_v46 = vsel %vm1402_vm7, %v1381_v16, %v5198_v7  ;;  %v8169_v7 = vld [vmem:[#allocation121_spill] sm:$0xff]  ;;  %v8175_v60 = vld [vmem:[#allocation48_spill] sm:$0xff]  ;;  %v8176_v17 = vld [vmem:[#allocation90_spill] sm:$0xff] }
 0x255   : > { %v1512_v53 = vsel %vm1501_vm10, %v1479_v50, %v1195_v29  ;;  %v1511_v61 = vsel %vm1501_vm10, %v1478_v25, %v1193_v15  ;;  %v1415_v39 = vsel %vm1402_vm7, %v1382_v34, %v5196_v6  ;;  %v1317_v22 = vsel %vm1303_vm5, %v1284_v5, %v8166_v1  ;;  %v8168_v6 = vld [vmem:[#allocation120_spill] sm:$0xff]  ;;  %v8177_v30 = vld [vmem:[#allocation91_spill] sm:$0xff] }
 0x256   : > { %3823 = vmatmul.mubr.msk.f32.gmra.mxu0 %vm1546_vm11, %v1511_v61  ;;  %v1318_v54 = vsel %vm1303_vm5, %v1285_v37, %v8167_v12  ;;  %v1448_v14 = vsel %vm1435_vm8, %v1415_v39, %v5341_v43  ;;  %v1447_v62 = vsel %vm1435_vm8, %v1414_v46, %v5343_v44  ;;  %v1350_v49 = vsel %vm1336_vm4, %v1317_v22, %v8169_v7  ;;  %v8170_v43 = vld [vmem:[#allocation152_spill] sm:$0xff]  ;;  %v8171_v44 = vld [vmem:[#allocation153_spill] sm:$0xff]  ;;  %v8182_v61 = vld [vmem:[#allocation42_spill] sm:$0xff] }
 0x257   : > { %3825 = vmatprep.mubr.msk.f32.mxu0 %vm1546_vm11, %v1512_v53  ;;  %v1351_v59 = vsel %vm1336_vm4, %v1318_v54, %v8168_v6  ;;  %v1480_v4 = vsel %vm1468_vm9, %v1447_v62, %v5447_v20  ;;  %v1481_v18 = vsel %vm1468_vm9, %v1448_v14, %v5453_v35  ;;  %v1383_v58 = vsel %vm1369_vm6, %v1350_v49, %v8171_v44  ;;  %v8174_v20 = vld [vmem:[#allocation41_spill] sm:$0xff]  ;;  %v8183_v57 = vld [vmem:[#allocation51_spill] sm:$0xff]  ;;  %v8185_v5 = vld [vmem:[#allocation52_spill] sm:$0xff] }
 0x258   : > { %v1199_v41 = vpop.permute.xlu0 %1198  ;;  %v1197_v2 = vpop.permute.xlu1 %1196  ;;  %v1384_v28 = vsel %vm1369_vm6, %v1351_v59, %v8170_v43  ;;  %v1286_v32 = vsel %vm1270_vm3, %v8173_v13, %v8172_v27  ;;  %v1287_v35 = vsel %vm1270_vm3, %v8175_v60, %v8174_v20  ;;  %v1416_v31 = vsel %vm1402_vm7, %v1383_v58, %v5206_v9  ;;  %v8179_v9 = vld [vmem:[#allocation123_spill] sm:$0xff]  ;;  %v8186_v37 = vld [vmem:[#allocation92_spill] sm:$0xff]  ;;  %v8187_v46 = vld [vmem:[#allocation93_spill] sm:$0xff] }
 0x259   : > { %v1514_v42 = vsel %vm1501_vm10, %v1481_v18, %v1199_v41  ;;  %v1513_v56 = vsel %vm1501_vm10, %v1480_v4, %v1197_v2  ;;  %v1417_v33 = vsel %vm1402_vm7, %v1384_v28, %v5204_v8  ;;  %v1319_v26 = vsel %vm1303_vm5, %v1286_v32, %v8176_v17  ;;  %v8178_v8 = vld [vmem:[#allocation122_spill] sm:$0xff]  ;;  %v8191_v59 = vld [vmem:[#allocation140_spill] sm:$0xff]  ;;  %v8195_v44 = vld [vmem:[#allocation55_spill] sm:$0xff] }
 0x25a   : > { %3826 = vmatmul.mubr.msk.f32.gmra.mxu0 %vm1546_vm11, %v1513_v56  ;;  %v1320_v38 = vsel %vm1303_vm5, %v1287_v35, %v8177_v30  ;;  %v1450_v23 = vsel %vm1435_vm8, %v1417_v33, %v5349_v47  ;;  %v1449_v0 = vsel %vm1435_vm8, %v1416_v31, %v5351_v48  ;;  %v1352_v25 = vsel %vm1336_vm4, %v1319_v26, %v8179_v9  ;;  %v8180_v47 = vld [vmem:[#allocation154_spill] sm:$0xff]  ;;  %v8181_v48 = vld [vmem:[#allocation155_spill] sm:$0xff]  ;;  %v8197_v56 = vld [vmem:[#allocation56_spill] sm:$0xff] }
 0x25b   : > { %3828 = vmatprep.mubr.msk.f32.mxu0 %vm1546_vm11, %v1514_v42  ;;  %v1353_v63 = vsel %vm1336_vm4, %v1320_v38, %v8178_v8  ;;  %v1482_v50 = vsel %vm1468_vm9, %v1449_v0, %v5451_v24  ;;  %v1483_v29 = vsel %vm1468_vm9, %v1450_v23, %v5457_v19  ;;  %v1385_v36 = vsel %vm1369_vm6, %v1352_v25, %v8181_v48  ;;  %v8184_v24 = vld [vmem:[#allocation45_spill] sm:$0xff]  ;;  %v8190_v62 = vld [vmem:[#allocation14_spill] sm:$0xff]  ;;  %v8198_v13 = vld [vmem:[#allocation172_spill] sm:$0xff] }
 0x25c   : > { %v1203_v15 = vpop.permute.xlu0 %1202  ;;  %v1201_v40 = vpop.permute.xlu1 %1200  ;;  %v1386_v34 = vsel %vm1369_vm6, %v1353_v63, %v8180_v47  ;;  %v1288_v45 = vsel %vm1270_vm3, %v8183_v57, %v8182_v61  ;;  %v1289_v19 = vsel %vm1270_vm3, %v8185_v5, %v8184_v24  ;;  %v1418_v3 = vsel %vm1402_vm7, %v1385_v36, %v5214_v11  ;;  %v8189_v11 = vld [vmem:[#allocation125_spill] sm:$0xff]  ;;  %v8194_v28 = vld [vmem:[#allocation46_spill] sm:$0xff]  ;;  %v8201_v31 = vld [vmem:[#allocation95_spill] sm:$0xff] }
 0x25d   : > { %v1516_v16 = vsel %vm1501_vm10, %v1483_v29, %v1203_v15  ;;  %v1515_v53 = vsel %vm1501_vm10, %v1482_v50, %v1201_v40  ;;  %v1419_v21 = vsel %vm1402_vm7, %v1386_v34, %v5212_v10  ;;  %v1321_v39 = vsel %vm1303_vm5, %v1288_v45, %v8186_v37  ;;  %v8188_v10 = vld [vmem:[#allocation124_spill] sm:$0xff]  ;;  %v8196_v42 = vld [vmem:[#allocation49_spill] sm:$0xff]  ;;  %v8200_v35 = vld [vmem:[#allocation94_spill] sm:$0xff] }
 0x25e   : > { %3829 = vmatmul.mubr.msk.f32.gmra.mxu0 %vm1546_vm11, %v1515_v53  ;;  %v1322_v1 = vsel %vm1303_vm5, %v1289_v19, %v8187_v46  ;;  %v1452_v22 = vsel %vm1435_vm8, %v1419_v21, %v5357_v51  ;;  %v1451_v12 = vsel %vm1435_vm8, %v1418_v3, %v5359_v52  ;;  %v1354_v14 = vsel %vm1336_vm4, %v1321_v39, %v8189_v11  ;;  %v8192_v51 = vld [vmem:[#allocation156_spill] sm:$0xff]  ;;  %v8193_v52 = vld [vmem:[#allocation157_spill] sm:$0xff]  ;;  %v8202_v26 = vld [vmem:[#allocation187_spill] sm:$0xff] }
 0x25f   : > { %3831 = vmatprep.mubr.msk.f32.mxu0 %vm1546_vm11, %v1516_v16  ;;  %v1355_v54 = vsel %vm1336_vm4, %v1322_v1, %v8188_v10  ;;  %v1484_v6 = vsel %vm1468_vm9, %v1451_v12, %v8190_v62  ;;  %v1485_v7 = vsel %vm1468_vm9, %v1452_v22, %v8191_v59  ;;  %v1387_v41 = vsel %vm1369_vm6, %v1354_v14, %v8193_v52  ;;  %v8199_v20 = vld [vmem:[#allocation173_spill] sm:$0xff]  ;;  %v8203_v38 = vld [vmem:[#allocation188_spill] sm:$0xff]  ;;  %v8204_v0 = vld [vmem:[#allocation126_spill] sm:$0xff] }
 0x260   : > { %v1207_v49 = vpop.permute.xlu0 %1206  ;;  %v1205_v4 = vpop.permute.xlu1 %1204  ;;  %v1388_v18 = vsel %vm1369_vm6, %v1355_v54, %v8192_v51  ;;  %v1290_v58 = vsel %vm1270_vm3, %v8195_v44, %v8194_v28  ;;  %v1291_v27 = vsel %vm1270_vm3, %v8197_v56, %v8196_v42  ;;  %v1420_v60 = vsel %vm1402_vm7, %v1387_v41, %v8199_v20  ;;  %v8205_v63 = vld [vmem:[#allocation127_spill] sm:$0xff]  ;;  %v8206_v25 = vld [vmem:[#allocation13_spill] sm:$0xff]  ;;  %v8208_v34 = vld [vmem:[#allocation158_spill] sm:$0xff] }
 0x261   : > { %v1518_v2 = vsel %vm1501_vm10, %v1485_v7, %v1207_v49  ;;  %v1517_v43 = vsel %vm1501_vm10, %v1484_v6, %v1205_v4  ;;  %v1421_v32 = vsel %vm1402_vm7, %v1388_v18, %v8198_v13  ;;  %v1323_v33 = vsel %vm1303_vm5, %v1290_v58, %v8200_v35  ;;  %v8207_v29 = vld [vmem:[#allocation5_spill] sm:$0xff]  ;;  %v8209_v36 = vld [vmem:[#allocation159_spill] sm:$0xff]  ;;  %v8210_v57 = vld [vmem:[#allocation50_spill] sm:$0xff] }
 0x262   : > { %3832 = vmatmul.mubr.msk.f32.gmra.mxu0 %vm1546_vm11, %v1517_v43  ;;  %v1324_v17 = vsel %vm1303_vm5, %v1291_v27, %v8201_v31  ;;  %v1454_v30 = vsel %vm1435_vm8, %v1421_v32, %v8202_v26  ;;  %v1453_v23 = vsel %vm1435_vm8, %v1420_v60, %v8203_v38  ;;  %v1356_v9 = vsel %vm1336_vm4, %v1323_v33, %v8205_v63  ;;  %v8211_v45 = vld [vmem:[#allocation59_spill] sm:$0xff]  ;;  %v8212_v5 = vld [vmem:[#allocation53_spill] sm:$0xff]  ;;  %v8213_v19 = vld [vmem:[#allocation60_spill] sm:$0xff] }
 0x263   : > { %3834 = vmatprep.mubr.msk.f32.mxu0 %vm1546_vm11, %v1518_v2  ;;  %v1357_v8 = vsel %vm1336_vm4, %v1324_v17, %v8204_v0  ;;  %v1486_v50 = vsel %vm1468_vm9, %v1453_v23, %v8206_v25  ;;  %v1487_v15 = vsel %vm1468_vm9, %v1454_v30, %v8207_v29  ;;  %v1389_v16 = vsel %vm1369_vm6, %v1356_v9, %v8209_v36  ;;  %v8214_v3 = vld [vmem:[#allocation174_spill] sm:$0xff]  ;;  %v8215_v39 = vld [vmem:[#allocation175_spill] sm:$0xff]  ;;  %v8216_v1 = vld [vmem:[#allocation96_spill] sm:$0xff] }
 0x264   : > { %v1211_v40 = vpop.permute.xlu0 %1210  ;;  %v1209_v47 = vpop.permute.xlu1 %1208  ;;  %v1390_v48 = vsel %vm1369_vm6, %v1357_v8, %v8208_v34  ;;  %v1292_v24 = vsel %vm1270_vm3, %v8211_v45, %v8210_v57  ;;  %v1293_v21 = vsel %vm1270_vm3, %v8213_v19, %v8212_v5  ;;  %v1422_v46 = vsel %vm1402_vm7, %v1389_v16, %v8215_v39  ;;  %v8217_v12 = vld [vmem:[#allocation97_spill] sm:$0xff]  ;;  %v8219_v14 = vld [vmem:[#allocation190_spill] sm:$0xff]  ;;  %v8220_v6 = vld [vmem:[#allocation128_spill] sm:$0xff] }
 0x265   : > { %v1520_v53 = vsel %vm1501_vm10, %v1487_v15, %v1211_v40  ;;  %v1519_v61 = vsel %vm1501_vm10, %v1486_v50, %v1209_v47  ;;  %v1423_v37 = vsel %vm1402_vm7, %v1390_v48, %v8214_v3  ;;  %v1325_v22 = vsel %vm1303_vm5, %v1292_v24, %v8216_v1  ;;  %v8218_v54 = vld [vmem:[#allocation189_spill] sm:$0xff]  ;;  %v8224_v43 = vld [vmem:[#allocation160_spill] sm:$0xff]  ;;  %v8226_v27 = vld [vmem:[#allocation54_spill] sm:$0xff] }
 0x266   : > { %3835 = vmatmul.mubr.msk.f32.gmra.mxu0 %vm1546_vm11, %v1519_v61  ;;  %v1326_v10 = vsel %vm1303_vm5, %v1293_v21, %v8217_v12  ;;  %v1456_v11 = vsel %vm1435_vm8, %v1423_v37, %v8218_v54  ;;  %v1455_v62 = vsel %vm1435_vm8, %v1422_v46, %v8219_v14  ;;  %v8221_v7 = vld [vmem:[#allocation129_spill] sm:$0xff]  ;;  %v8227_v13 = vld [vmem:[#allocation63_spill] sm:$0xff]  ;;  %v8229_v60 = vld [vmem:[#allocation64_spill] sm:$0xff] }
 0x267   : > { %3837 = vmatprep.mubr.msk.f32.mxu0 %vm1546_vm11, %v1520_v53  ;;  %v1359_v59 = vsel %vm1336_vm4, %v1326_v10, %v8220_v6  ;;  %v1358_v49 = vsel %vm1336_vm4, %v1325_v22, %v8221_v7  ;;  %v8222_v4 = vld [vmem:[#allocation17_spill] sm:$0xff]  ;;  %v1294_v32 = vsel %vm1270_vm3, %v8227_v13, %v8226_v27  ;;  %v8230_v33 = vld [vmem:[#allocation176_spill] sm:$0xff]  ;;  %v8232_v30 = vld [vmem:[#allocation98_spill] sm:$0xff] }
 0x268   : > { %v1488_v51 = vsel %vm1468_vm9, %v1455_v62, %v8222_v4  ;;  %v8223_v18 = vld [vmem:[#allocation197_spill] sm:$0xff]  ;;  %v1215_v41 = vpop.permute.xlu0 %1214  ;;  %v1213_v2 = vpop.permute.xlu1 %1212  ;;  %v1392_v28 = vsel %vm1369_vm6, %v1359_v59, %v8224_v43  ;;  %v1327_v38 = vsel %vm1303_vm5, %v1294_v32, %v8232_v30  ;;  %v8233_v23 = vld [vmem:[#allocation99_spill] sm:$0xff]  ;;  %v8235_v9 = vld [vmem:[#allocation192_spill] sm:$0xff] }
 0x269   : > { %v1489_v52 = vsel %vm1468_vm9, %v1456_v11, %v8223_v18  ;;  %v8225_v44 = vld [vmem:[#allocation161_spill] sm:$0xff]  ;;  %v1521_v56 = vsel %vm1501_vm10, %v1488_v51, %v1213_v2  ;;  %v1425_v31 = vsel %vm1402_vm7, %v1392_v28, %v8230_v33  ;;  %v8234_v8 = vld [vmem:[#allocation191_spill] sm:$0xff]  ;;  %v8236_v50 = vld [vmem:[#allocation130_spill] sm:$0xff] }
 0x26a   : > { %v1391_v58 = vsel %vm1369_vm6, %v1358_v49, %v8225_v44  ;;  %v1522_v42 = vsel %vm1501_vm10, %v1489_v52, %v1215_v41  ;;  %v8228_v20 = vld [vmem:[#allocation57_spill] sm:$0xff]  ;;  %3838 = vmatmul.mubr.msk.f32.gmra.mxu0 %vm1546_vm11, %v1521_v56  ;;  %v1458_v63 = vsel %vm1435_vm8, %v1425_v31, %v8234_v8  ;;  %v8237_v15 = vld [vmem:[#allocation131_spill] sm:$0xff]  ;;  %v8240_v61 = vld [vmem:[#allocation162_spill] sm:$0xff] }
 0x26b   : > { %v1295_v35 = vsel %vm1270_vm3, %v8229_v60, %v8228_v20  ;;  %v8231_v17 = vld [vmem:[#allocation177_spill] sm:$0xff]  ;;  %3840 = vmatprep.mubr.msk.f32.mxu0 %vm1546_vm11, %v1522_v42  ;;  %v1360_v40 = vsel %vm1336_vm4, %v1327_v38, %v8237_v15  ;;  %v8238_v47 = vld [vmem:[#allocation143_spill] sm:$0xff]  ;;  %v8242_v21 = vld [vmem:[#allocation58_spill] sm:$0xff] }
 0x26c   : > { %v1424_v26 = vsel %vm1402_vm7, %v1391_v58, %v8231_v17  ;;  %v1328_v0 = vsel %vm1303_vm5, %v1295_v35, %v8233_v23  ;;  %v8239_v48 = vld [vmem:[#allocation199_spill] sm:$0xff]  ;;  %v1219_v16 = vpop.permute.xlu0 %1218  ;;  %v1217_v53 = vpop.permute.xlu1 %1216  ;;  %v8244_v39 = vld [vmem:[#allocation61_spill] sm:$0xff]  ;;  %v8245_v46 = vld [vmem:[#allocation68_spill] sm:$0xff] }
 0x26d   : > { %v1457_v25 = vsel %vm1435_vm8, %v1424_v26, %v8235_v9  ;;  %v1361_v29 = vsel %vm1336_vm4, %v1328_v0, %v8236_v50  ;;  %v1491_v36 = vsel %vm1468_vm9, %v1458_v63, %v8239_v48  ;;  %v8241_v45 = vld [vmem:[#allocation163_spill] sm:$0xff]  ;;  %v1297_v1 = vsel %vm1270_vm3, %v8245_v46, %v8244_v39  ;;  %v8246_v22 = vld [vmem:[#allocation178_spill] sm:$0xff]  ;;  %v8248_v11 = vld [vmem:[#allocation100_spill] sm:$0xff] }
 0x26e   : > { %v1490_v34 = vsel %vm1468_vm9, %v1457_v25, %v8238_v47  ;;  %v1394_v57 = vsel %vm1369_vm6, %v1361_v29, %v8240_v61  ;;  %v1393_v24 = vsel %vm1369_vm6, %v1360_v40, %v8241_v45  ;;  %v1524_v5 = vsel %vm1501_vm10, %v1491_v36, %v1219_v16  ;;  %v8243_v3 = vld [vmem:[#allocation67_spill] sm:$0xff]  ;;  %v8249_v62 = vld [vmem:[#allocation101_spill] sm:$0xff]  ;;  %v8251_v49 = vld [vmem:[#allocation194_spill] sm:$0xff] }
 0x26f   : > { %v1523_v19 = vsel %vm1501_vm10, %v1490_v34, %v1217_v53  ;;  %v1296_v37 = vsel %vm1270_vm3, %v8243_v3, %v8242_v21  ;;  %v1427_v12 = vsel %vm1402_vm7, %v1394_v57, %v8246_v22  ;;  %v8247_v10 = vld [vmem:[#allocation179_spill] sm:$0xff]  ;;  %v1330_v6 = vsel %vm1303_vm5, %v1297_v1, %v8249_v62  ;;  %v8250_v59 = vld [vmem:[#allocation193_spill] sm:$0xff]  ;;  %v8252_v51 = vld [vmem:[#allocation132_spill] sm:$0xff] }
 0x270   : > { %v1426_v54 = vsel %vm1402_vm7, %v1393_v24, %v8247_v10  ;;  %3841 = vmatmul.mubr.msk.f32.gmra.mxu0 %vm1546_vm11, %v1523_v19  ;;  %v1329_v14 = vsel %vm1303_vm5, %v1296_v37, %v8248_v11  ;;  %v1460_v7 = vsel %vm1435_vm8, %v1427_v12, %v8250_v59  ;;  %v1363_v18 = vsel %vm1336_vm4, %v1330_v6, %v8252_v51  ;;  %v8253_v52 = vld [vmem:[#allocation133_spill] sm:$0xff]  ;;  %v8254_v2 = vld [vmem:[#allocation198_spill] sm:$0xff]  ;;  %v1223_v58 = vpop.permute.xlu0 %1222  ;;  %v1221_v42 = vpop.permute.xlu1 %1220  ;;  %v8256_v56 = vld [vmem:[#allocation164_spill] sm:$0xff] }
 0x271   : > { %v1459_v4 = vsel %vm1435_vm8, %v1426_v54, %v8251_v49  ;;  %3843 = vmatprep.mubr.msk.f32.mxu0 %vm1546_vm11, %v1524_v5  ;;  %v1362_v41 = vsel %vm1336_vm4, %v1329_v14, %v8253_v52  ;;  %v8255_v28 = vld [vmem:[#allocation201_spill] sm:$0xff]  ;;  %v1396_v27 = vsel %vm1369_vm6, %v1363_v18, %v8256_v56  ;;  %v8258_v35 = vld [vmem:[#allocation62_spill] sm:$0xff]  ;;  %v8259_v33 = vld [vmem:[#allocation71_spill] sm:$0xff] }
 0x272   : > { %v1492_v43 = vsel %vm1468_vm9, %v1459_v4, %v8254_v2  ;;  %v1493_v44 = vsel %vm1468_vm9, %v1460_v7, %v8255_v28  ;;  %v8257_v13 = vld [vmem:[#allocation165_spill] sm:$0xff]  ;;  %v1298_v31 = vsel %vm1270_vm3, %v8259_v33, %v8258_v35  ;;  %v8261_v26 = vld [vmem:[#allocation72_spill] sm:$0xff]  ;;  %v8264_v63 = vld [vmem:[#allocation102_spill] sm:$0xff] }
 0x273   : > { %v1395_v32 = vsel %vm1369_vm6, %v1362_v41, %v8257_v13  ;;  %v1526_v20 = vsel %vm1501_vm10, %v1493_v44, %v1223_v58  ;;  %v1525_v60 = vsel %vm1501_vm10, %v1492_v43, %v1221_v42  ;;  %v8260_v17 = vld [vmem:[#allocation65_spill] sm:$0xff]  ;;  %v8262_v38 = vld [vmem:[#allocation180_spill] sm:$0xff]  ;;  %v1331_v9 = vsel %vm1303_vm5, %v1298_v31, %v8264_v63  ;;  %v8265_v25 = vld [vmem:[#allocation103_spill] sm:$0xff] }
 0x274   : > { %v1299_v30 = vsel %vm1270_vm3, %v8261_v26, %v8260_v17  ;;  %v1429_v23 = vsel %vm1402_vm7, %v1396_v27, %v8262_v38  ;;  %v8263_v0 = vld [vmem:[#allocation181_spill] sm:$0xff]  ;;  %3844 = vmatmul.mubr.msk.f32.gmra.mxu0 %vm1546_vm11, %v1525_v60  ;;  %v8266_v29 = vld [vmem:[#allocation195_spill] sm:$0xff]  ;;  %v8267_v40 = vld [vmem:[#allocation196_spill] sm:$0xff]  ;;  %v1227_v24 = vpop.permute.xlu0 %1226  ;;  %v1225_v5 = vpop.permute.xlu1 %1224 }
 0x275   : > { %v1428_v8 = vsel %vm1402_vm7, %v1395_v32, %v8263_v0  ;;  %v1332_v50 = vsel %vm1303_vm5, %v1299_v30, %v8265_v25  ;;  %v1462_v15 = vsel %vm1435_vm8, %v1429_v23, %v8266_v29  ;;  %3846 = vmatprep.mubr.msk.f32.mxu0 %vm1546_vm11, %v1526_v20  ;;  %v8268_v34 = vld [vmem:[#allocation134_spill] sm:$0xff]  ;;  %v8269_v36 = vld [vmem:[#allocation135_spill] sm:$0xff]  ;;  %v8270_v53 = vld [vmem:[#allocation200_spill] sm:$0xff] }
 0x276   : > { %v1461_v47 = vsel %vm1435_vm8, %v1428_v8, %v8267_v40  ;;  %v1365_v48 = vsel %vm1336_vm4, %v1332_v50, %v8268_v34  ;;  %v1364_v16 = vsel %vm1336_vm4, %v1331_v9, %v8269_v36  ;;  %v8271_v57 = vld [vmem:[#allocation202_spill] sm:$0xff]  ;;  %v8273_v3 = vld [vmem:[#allocation167_spill] sm:$0xff]  ;;  %v8276_v10 = vld [vmem:[#allocation69_spill] sm:$0xff] }
 0x277   : > { %v1494_v61 = vsel %vm1468_vm9, %v1461_v47, %v8270_v53  ;;  %v1495_v45 = vsel %vm1468_vm9, %v1462_v15, %v8271_v57  ;;  %v8272_v19 = vld [vmem:[#allocation166_spill] sm:$0xff]  ;;  %v1397_v37 = vsel %vm1369_vm6, %v1364_v16, %v8273_v3  ;;  %v8275_v22 = vld [vmem:[#allocation75_spill] sm:$0xff]  ;;  %v8277_v54 = vld [vmem:[#allocation76_spill] sm:$0xff] }
 0x278   : > { %v1398_v21 = vsel %vm1369_vm6, %v1365_v48, %v8272_v19  ;;  %v1528_v39 = vsel %vm1501_vm10, %v1495_v45, %v1227_v24  ;;  %v1527_v46 = vsel %vm1501_vm10, %v1494_v61, %v1225_v5  ;;  %v8274_v1 = vld [vmem:[#allocation66_spill] sm:$0xff]  ;;  %v1301_v11 = vsel %vm1270_vm3, %v8277_v54, %v8276_v10  ;;  %v8279_v6 = vld [vmem:[#allocation183_spill] sm:$0xff]  ;;  %v8282_v51 = vld [vmem:[#allocation104_spill] sm:$0xff]  ;;  %v1231_v20 = vpop.permute.xlu0 %1230  ;;  %v1229_v60 = vpop.permute.xlu1 %1228 }
 0x279   : > { %v1300_v12 = vsel %vm1270_vm3, %v8275_v22, %v8274_v1  ;;  %v8278_v14 = vld [vmem:[#allocation182_spill] sm:$0xff]  ;;  %v1430_v59 = vsel %vm1402_vm7, %v1397_v37, %v8279_v6  ;;  %3847 = vmatmul.mubr.msk.f32.gmra.mxu0 %vm1546_vm11, %v1527_v46  ;;  %v8281_v49 = vld [vmem:[#allocation79_spill] sm:$0xff]  ;;  %v8283_v52 = vld [vmem:[#allocation9_spill] sm:$0xff] }
 0x27a   : > { %v1431_v62 = vsel %vm1402_vm7, %v1398_v21, %v8278_v14  ;;  %v8280_v7 = vld [vmem:[#allocation70_spill] sm:$0xff]  ;;  %v1333_v18 = vsel %vm1303_vm5, %v1300_v12, %v8282_v51  ;;  %v8284_v2 = vld [vmem:[#allocation8_spill] sm:$0xff]  ;;  %3849 = vmatprep.mubr.msk.f32.mxu0 %vm1546_vm11, %v1528_v39  ;;  %v8285_v28 = vld [vmem:[#allocation105_spill] sm:$0xff] }
 0x27b   : > { %v1302_v4 = vsel %vm1270_vm3, %v8281_v49, %v8280_v7  ;;  %v1464_v41 = vsel %vm1435_vm8, %v1431_v62, %v8283_v52  ;;  %v1463_v43 = vsel %vm1435_vm8, %v1430_v59, %v8284_v2  ;;  %v1334_v44 = vsel %vm1303_vm5, %v1301_v11, %v8285_v28  ;;  %v8286_v58 = vld [vmem:[#allocation6_spill] sm:$0xff]  ;;  %v8287_v56 = vld [vmem:[#allocation73_spill] sm:$0xff]  ;;  %v8288_v13 = vld [vmem:[#allocation203_spill] sm:$0xff] }
 0x27c   : > { %v1366_v42 = vsel %vm1336_vm4, %v1333_v18, %v8286_v58  ;;  %v1496_v27 = vsel %vm1468_vm9, %v1463_v43, %v8287_v56  ;;  %v1497_v32 = vsel %vm1468_vm9, %v1464_v41, %v8288_v13  ;;  %v8289_v35 = vld [vmem:[#allocation169_spill] sm:$0xff]  ;;  %v8290_v31 = vld [vmem:[#allocation12_spill] sm:$0xff]  ;;  %v8291_v38 = vld [vmem:[#allocation106_spill] sm:$0xff]  ;;  %v6024_v45 = vpop.permute.xlu0 %3975  ;;  %v1233_v24 = vpop.permute.xlu1 %1232 }
 0x27d   : > { %v1399_v33 = vsel %vm1369_vm6, %v1366_v42, %v8289_v35  ;;  %v7737_v17 = vunpack.i.l.bf16 %v8290_v31  ;;  %v1530_v26 = vsel %vm1501_vm10, %v1497_v32, %v1231_v20  ;;  %v1529_v30 = vsel %vm1501_vm10, %v1496_v27, %v1229_v60  ;;  %v8292_v0 = vld [vmem:[#allocation7_spill] sm:$0xff]  ;;  %v8293_v63 = vld [vmem:[#allocation185_spill] sm:$0xff]  ;;  %v8295_v29 = vld [vmem:[#allocation168_spill] sm:$0xff]  ;;  %8300 = vst [vmem:[#allocation20_spill] sm:$0xff] %v6024_v45 }
 0x27e   : > { %v1335_v23 = vsel %vm1303_vm5, %v1302_v4, %v8291_v38  ;;  %v1367_v8 = vsel %vm1336_vm4, %v1334_v44, %v8292_v0  ;;  %v1432_v9 = vsel %vm1402_vm7, %v1399_v33, %v8293_v63  ;;  %3850 = vmatmul.mubr.msk.f32.gmra.mxu0 %vm1546_vm11, %v1529_v30  ;;  %v8294_v25 = vld [vmem:[#allocation137_spill] sm:$0xff]  ;;  %v7736_v40 = vunpack.i.h.bf16 %v8290_v31  ;;  %v8296_v47 = vld [vmem:[#allocation11_spill] sm:$0xff]  ;;  %v8297_v48 = vld [vmem:[#allocation170_spill] sm:$0xff] }
 0x27f   : > { %v1368_v50 = vsel %vm1336_vm4, %v1335_v23, %v8294_v25  ;;  %v1400_v15 = vsel %vm1369_vm6, %v1367_v8, %v8295_v29  ;;  %v1465_v34 = vsel %vm1435_vm8, %v1432_v9, %v8296_v47  ;;  %3852 = vmatprep.mubr.msk.f32.mxu0 %vm1546_vm11, %v1530_v26  ;;  %v8298_v16 = vld [vmem:[#allocation184_spill] sm:$0xff]  ;;  %v8299_v61 = vld [vmem:[#allocation107_spill] sm:$0xff]  ;;  %v7734_v5 = vunpack.i.h.bf16 %v6024_v45  ;;  %v8301_v37 = vld [vmem:[#allocation186_spill] sm:$0xff] }
 0x280   : > { %v1401_v36 = vsel %vm1369_vm6, %v1368_v50, %v8297_v48  ;;  %v1433_v53 = vsel %vm1402_vm7, %v1400_v15, %v8298_v16  ;;  %v1498_v57 = vsel %vm1468_vm9, %v1465_v34, %v8299_v61  ;;  %v7735_v19 = vunpack.i.l.bf16 %v6024_v45  ;;  %v6053_v54 = vld [vmem:[%s7645_s2] ss:$0 sm:$0xff] }
 0x281   : > { %v1531_v21 = vsel %vm1501_vm10, %v1498_v57, %v1233_v24  ;;  %v1466_v3 = vsel %vm1435_vm8, %v1433_v53, %v7737_v17  ;;  %v1434_v39 = vsel %vm1402_vm7, %v1401_v36, %v8301_v37 }
 0x282   : > { %3853 = vmatmul.mubr.msk.f32.gmra.mxu0 %vm1546_vm11, %v1531_v21  ;;  %v1499_v46 = vsel %vm1468_vm9, %v1466_v3, %v5521_v55  ;;  %v1467_v22 = vsel %vm1435_vm8, %v1434_v39, %v7736_v40 }
 0x283   : > { %v1532_v1 = vsel %vm1501_vm10, %v1499_v46, %v7735_v19  ;;  %v1500_v12 = vsel %vm1468_vm9, %v1467_v22, %v5521_v55 }
 0x284   : > { %3855 = vmatprep.mubr.msk.f32.mxu0 %vm1546_vm11, %v1532_v1  ;;  %v1533_v10 = vsel %vm1501_vm10, %v1500_v12, %v7734_v5 }
 0x286   : > { %3856 = vmatmul.mubr.msk.f32.gmra.mxu0 %vm1546_vm11, %v1533_v10 }
 0x306   : > { %v3812_v11 = vpop.f32.mrf.mxu0 }
 0x307   : > { %v1719_v14 = vadd.f32 %v3812_v11, %v6053_v54 }
 0x308   : > { %v1713_v62 = vpop.f32.mrf.mxu0 }
 0x309   : > { %v6056_v6 = vmax.f32 %v1719_v14, 0.0  ;;  %v1714_v59 = vadd.f32 %v6053_v54, %v1713_v62 }
 0x30a   : > { %v3815_v7 = vpop.f32.mrf.mxu0 }
 0x30b   : > { %v6059_v49 = vmax.f32 %v1714_v59, 0.0  ;;  %v1729_v4 = vadd.f32 %v3815_v7, %v6053_v54  ;;  %2113 = vrot.lane.b32.xlu0 %v6056_v6, %s4074_s30 }
 0x30c   : > { %v1723_v51 = vpop.f32.mrf.mxu0 }
 0x30d   : > { %v6064_v18 = vmax.f32 %v1729_v4, 0.0  ;;  %v1724_v52 = vadd.f32 %v6053_v54, %v1723_v51  ;;  %2111 = vrot.lane.b32.xlu1 %v6059_v49, %s4074_s30 }
 0x30e   : > { %v3818_v41 = vpop.f32.mrf.mxu0 }
 0x30f   : > { %v6069_v2 = vmax.f32 %v1724_v52, 0.0  ;;  %v1739_v43 = vadd.f32 %v3818_v41, %v6053_v54  ;;  %2117 = vrot.lane.b32.xlu0 %v6064_v18, %s4074_s30 }
 0x310   : > { %v1733_v28 = vpop.f32.mrf.mxu0 }
 0x311   : > { %v6074_v44 = vmax.f32 %v1739_v43, 0.0  ;;  %v1734_v58 = vadd.f32 %v6053_v54, %v1733_v28  ;;  %2115 = vrot.lane.b32.xlu1 %v6069_v2, %s4074_s30 }
 0x312   : > { %v3821_v42 = vpop.f32.mrf.mxu0 }
 0x313   : > { %v6079_v56 = vmax.f32 %v1734_v58, 0.0  ;;  %v1749_v27 = vadd.f32 %v3821_v42, %v6053_v54  ;;  %2121 = vrot.lane.b32.xlu0 %v6074_v44, %s4074_s30 }
 0x314   : > { %v1743_v13 = vpop.f32.mrf.mxu0 }
 0x315   : > { %v6084_v32 = vmax.f32 %v1749_v27, 0.0  ;;  %v1744_v20 = vadd.f32 %v6053_v54, %v1743_v13  ;;  %2119 = vrot.lane.b32.xlu1 %v6079_v56, %s4074_s30 }
 0x316   : > { %v3824_v60 = vpop.f32.mrf.mxu0 }
 0x317   : > { %v6089_v35 = vmax.f32 %v1744_v20, 0.0  ;;  %v1759_v33 = vadd.f32 %v3824_v60, %v6053_v54  ;;  %2125 = vrot.lane.b32.xlu0 %v6084_v32, %s4074_s30 }
 0x318   : > { %v1753_v26 = vpop.f32.mrf.mxu0 }
 0x319   : > { %v6094_v30 = vmax.f32 %v1759_v33, 0.0  ;;  %v1754_v38 = vadd.f32 %v6053_v54, %v1753_v26  ;;  %2123 = vrot.lane.b32.xlu1 %v6089_v35, %s4074_s30 }
 0x31a   : > { %v3827_v23 = vpop.f32.mrf.mxu0 }
 0x31b   : > { %v6099_v0 = vmax.f32 %v1754_v38, 0.0  ;;  %v1769_v8 = vadd.f32 %v3827_v23, %v6053_v54  ;;  %2129 = vrot.lane.b32.xlu0 %v6094_v30, %s4074_s30 }
 0x31c   : > { %v1763_v63 = vpop.f32.mrf.mxu0 }
 0x31d   : > { %v6104_v9 = vmax.f32 %v1769_v8, 0.0  ;;  %v1764_v25 = vadd.f32 %v6053_v54, %v1763_v63  ;;  %2127 = vrot.lane.b32.xlu1 %v6099_v0, %s4074_s30 }
 0x31e   : > { %v3830_v50 = vpop.f32.mrf.mxu0 }
 0x31f   : > { %v6109_v29 = vmax.f32 %v1764_v25, 0.0  ;;  %v1779_v15 = vadd.f32 %v3830_v50, %v6053_v54  ;;  %2133 = vrot.lane.b32.xlu0 %v6104_v9, %s4074_s30 }
 0x320   : > { %v1773_v47 = vpop.f32.mrf.mxu0 }
 0x321   : > { %v6114_v34 = vmax.f32 %v1779_v15, 0.0  ;;  %v1774_v48 = vadd.f32 %v6053_v54, %v1773_v47  ;;  %2131 = vrot.lane.b32.xlu1 %v6109_v29, %s4074_s30 }
 0x322   : > { %v3833_v36 = vpop.f32.mrf.mxu0 }
 0x323   : > { %v6119_v16 = vmax.f32 %v1774_v48, 0.0  ;;  %v1789_v53 = vadd.f32 %v3833_v36, %v6053_v54  ;;  %2137 = vrot.lane.b32.xlu0 %v6114_v34, %s4074_s30 }
 0x324   : > { %v1783_v61 = vpop.f32.mrf.mxu0 }
 0x325   : > { %v6124_v57 = vmax.f32 %v1789_v53, 0.0  ;;  %v1784_v24 = vadd.f32 %v6053_v54, %v1783_v61  ;;  %2135 = vrot.lane.b32.xlu1 %v6119_v16, %s4074_s30 }
 0x326   : > { %v3836_v21 = vpop.f32.mrf.mxu0 }
 0x327   : > { %8302 = vst [vmem:[#allocation74_spill] sm:$0xff] %v6124_v57  ;;  %v6129_v3 = vmax.f32 %v1784_v24, 0.0  ;;  %v1799_v37 = vadd.f32 %v3836_v21, %v6053_v54  ;;  %2141 = vrot.lane.b32.xlu0 %v6124_v57, %s4074_s30 }
 0x328   : > { %v1793_v39 = vpop.f32.mrf.mxu0 }
 0x329   : > { %8303 = vst [vmem:[#allocation108_spill] sm:$0xff] %v6129_v3  ;;  %v6134_v46 = vmax.f32 %v1799_v37, 0.0  ;;  %v1794_v1 = vadd.f32 %v6053_v54, %v1793_v39  ;;  %2139 = vrot.lane.b32.xlu1 %v6129_v3, %s4074_s30  ;;  %v2025_v37 = vrot.slane %v6056_v6, 1 }
 0x32a   : > { %v3839_v22 = vpop.f32.mrf.mxu0 }
 0x32b   : > { %8304 = vst [vmem:[#allocation109_spill] sm:$0xff] %v6134_v46  ;;  %v6139_v12 = vmax.f32 %v1794_v1, 0.0  ;;  %v1809_v10 = vadd.f32 %v3839_v22, %v6053_v54  ;;  %2145 = vrot.lane.b32.xlu0 %v6134_v46, %s4074_s30  ;;  %v2024_v1 = vrot.slane %v6059_v49, 1  ;;  %v6208_v22 = vsel %vm382_vm0, %v2025_v37, 0.0 }
 0x32c   : > { %v1803_v11 = vpop.f32.mrf.mxu0 }
 0x32d   : > { %8305 = vst [vmem:[#allocation138_spill] sm:$0xff] %v6139_v12  ;;  %v6144_v14 = vmax.f32 %v1809_v10, 0.0  ;;  %v1804_v62 = vadd.f32 %v6053_v54, %v1803_v11  ;;  %2143 = vrot.lane.b32.xlu1 %v6139_v12, %s4074_s30  ;;  %v2028_v10 = vrot.slane %v6064_v18, 1  ;;  %v6214_v11 = vsel %vm382_vm0, %v2024_v1, %v2025_v37 }
 0x32e   : > { %v2046_v1 = vrot.slane %v6124_v57, 1 }
 0x32f   : > { %8306 = vst [vmem:[#allocation139_spill] sm:$0xff] %v6144_v14  ;;  %v6149_v7 = vmax.f32 %v1804_v62, 0.0  ;;  %2149 = vrot.lane.b32.xlu0 %v6144_v14, %s4074_s30  ;;  %v2027_v62 = vrot.slane %v6069_v2, 1 }
 0x330   : > { %v3842_v59 = vpop.f32.mrf.mxu0 }
 0x331   : > { %8307 = vst [vmem:[#allocation15_spill] sm:$0xff] %v6149_v7  ;;  %v1819_v4 = vadd.f32 %v3842_v59, %v6053_v54  ;;  %2147 = vrot.lane.b32.xlu1 %v6149_v7, %s4074_s30  ;;  %v6220_v59 = vsel %vm382_vm0, %v2028_v10, 0.0 }
 0x332   : > { %v1813_v51 = vpop.f32.mrf.mxu0 }
 0x333   : > { %v6154_v52 = vmax.f32 %v1819_v4, 0.0  ;;  %v1814_v41 = vadd.f32 %v6053_v54, %v1813_v51  ;;  %v2031_v4 = vrot.slane %v6074_v44, 1  ;;  %v6226_v51 = vsel %vm382_vm0, %v2027_v62, %v2028_v10 }
 0x334   : > { %v3845_v43 = vpop.f32.mrf.mxu0  ;;  %v2045_v62 = vrot.slane %v6129_v3, 1 }
 0x335   : > { %8308 = vst [vmem:[#allocation23_spill] sm:$0xff] %v6154_v52  ;;  %v6159_v28 = vmax.f32 %v1814_v41, 0.0  ;;  %v1829_v58 = vadd.f32 %v3845_v43, %v6053_v54  ;;  %2153 = vrot.lane.b32.xlu0 %v6154_v52, %s4074_s30  ;;  %v2030_v41 = vrot.slane %v6079_v56, 1  ;;  %v6232_v43 = vsel %vm382_vm0, %v2031_v4, 0.0 }
 0x336   : > { %v1823_v42 = vpop.f32.mrf.mxu0 }
 0x337   : > { %8309 = vst [vmem:[#allocation18_spill] sm:$0xff] %v6159_v28  ;;  %v6164_v27 = vmax.f32 %v1829_v58, 0.0  ;;  %v1824_v13 = vadd.f32 %v6053_v54, %v1823_v42  ;;  %2151 = vrot.lane.b32.xlu1 %v6159_v28, %s4074_s30  ;;  %v2034_v58 = vrot.slane %v6084_v32, 1  ;;  %v6238_v42 = vsel %vm382_vm0, %v2030_v41, %v2031_v4 }
 0x338   : > { %v6292_v4 = vsel %vm382_vm0, %v2046_v1, 0.0  ;;  %v2049_v41 = vrot.slane %v6134_v46, 1 }
 0x339   : > { %8310 = vst [vmem:[#allocation24_spill] sm:$0xff] %v6164_v27  ;;  %v3848_v20 = vpop.f32.mrf.mxu0  ;;  %v6169_v60 = vmax.f32 %v1824_v13, 0.0  ;;  %2157 = vrot.lane.b32.xlu0 %v6164_v27, %s4074_s30  ;;  %v2033_v13 = vrot.slane %v6089_v35, 1  ;;  %8318 = vst [vmem:[#allocation19_spill] sm:$0xff] %v6292_v4 }
 0x33a   : > { %v1839_v33 = vadd.f32 %v3848_v20, %v6053_v54  ;;  %v6244_v20 = vsel %vm382_vm0, %v2034_v58, 0.0 }
 0x33b   : > { %8311 = vst [vmem:[#allocation171_spill] sm:$0xff] %v6169_v60  ;;  %v1833_v26 = vpop.f32.mrf.mxu0  ;;  %2155 = vrot.lane.b32.xlu1 %v6169_v60, %s4074_s30  ;;  %v2057_v19 = vrot.slane %v6169_v60, 1 }
 0x33c   : > { %v6174_v38 = vmax.f32 %v1839_v33, 0.0  ;;  %v1834_v23 = vadd.f32 %v6053_v54, %v1833_v26  ;;  %v2037_v33 = vrot.slane %v6094_v30, 1  ;;  %v6250_v26 = vsel %vm382_vm0, %v2033_v13, %v2034_v58 }
 0x33d   : > { %v6298_v58 = vsel %vm382_vm0, %v2045_v62, %v2046_v1  ;;  %v2048_v13 = vrot.slane %v6139_v12, 1  ;;  %v2054_v62 = vrot.slane %v6159_v28, 1 }
 0x33e   : > { %8312 = vst [vmem:[#allocation77_spill] sm:$0xff] %v6174_v38  ;;  %v3851_v8 = vpop.f32.mrf.mxu0  ;;  %v6179_v63 = vmax.f32 %v1834_v23, 0.0  ;;  %2161 = vrot.lane.b32.xlu0 %v6174_v38, %s4074_s30  ;;  %v2036_v23 = vrot.slane %v6099_v0, 1  ;;  %8319 = vst [vmem:[#allocation27_spill] sm:$0xff] %v6298_v58 }
 0x33f   : > { %v1849_v25 = vadd.f32 %v3851_v8, %v6053_v54  ;;  %v6256_v8 = vsel %vm382_vm0, %v2037_v33, 0.0 }
 0x340   : > { %8313 = vst [vmem:[#allocation78_spill] sm:$0xff] %v6179_v63  ;;  %v1843_v50 = vpop.f32.mrf.mxu0  ;;  %2159 = vrot.lane.b32.xlu1 %v6179_v63, %s4074_s30  ;;  %v2060_v17 = vrot.slane %v6179_v63, 1 }
 0x341   : > { %v6184_v15 = vmax.f32 %v1849_v25, 0.0  ;;  %v1844_v47 = vadd.f32 %v6053_v54, %v1843_v50  ;;  %v2040_v25 = vrot.slane %v6104_v9, 1  ;;  %v6262_v50 = vsel %vm382_vm0, %v2036_v23, %v2037_v33 }
 0x342   : > { %v3854_v48 = vpop.f32.mrf.mxu0  ;;  %v6304_v33 = vsel %vm382_vm0, %v2049_v41, 0.0  ;;  %v2052_v23 = vrot.slane %v6144_v14, 1 }
 0x343   : > { %8314 = vst [vmem:[#allocation110_spill] sm:$0xff] %v6184_v15  ;;  %v6189_v36 = vmax.f32 %v1844_v47, 0.0  ;;  %v1859_v53 = vadd.f32 %v3854_v48, %v6053_v54  ;;  %2165 = vrot.lane.b32.xlu0 %v6184_v15, %s4074_s30  ;;  %v2039_v47 = vrot.slane %v6109_v29, 1  ;;  %v6268_v48 = vsel %vm382_vm0, %v2040_v25, 0.0  ;;  %8320 = vst [vmem:[#allocation21_spill] sm:$0xff] %v6304_v33 }
 0x344   : > { %v1853_v61 = vpop.f32.mrf.mxu0 }
 0x345   : > { %8315 = vst [vmem:[#allocation111_spill] sm:$0xff] %v6189_v36  ;;  %v6194_v24 = vmax.f32 %v1859_v53, 0.0  ;;  %v1854_v21 = vadd.f32 %v6053_v54, %v1853_v61  ;;  %2163 = vrot.lane.b32.xlu1 %v6189_v36, %s4074_s30  ;;  %v2043_v53 = vrot.slane %v6114_v34, 1  ;;  %v6274_v61 = vsel %vm382_vm0, %v2039_v47, %v2040_v25 }
 0x346   : > { %v6310_v25 = vsel %vm382_vm0, %v2048_v13, %v2049_v41  ;;  %v2051_v47 = vrot.slane %v6149_v7, 1  ;;  %v2058_v13 = vrot.slane %v6164_v27, 1  ;;  %v2063_v55 = vrot.slane %v6189_v36, 1 }
 0x347   : > { %8316 = vst [vmem:[#allocation141_spill] sm:$0xff] %v6194_v24  ;;  %v6200_v39 = vmax.f32 %v1854_v21, 0.0  ;;  %2169 = vrot.lane.b32.xlu0 %v6194_v24, %s4074_s30  ;;  %v2042_v21 = vrot.slane %v6119_v16, 1  ;;  %v6280_v37 = vsel %vm382_vm0, %v2043_v53, 0.0  ;;  %8321 = vst [vmem:[#allocation28_spill] sm:$0xff] %v6310_v25 }
 0x348   : > { %v6322_v1 = vsel %vm382_vm0, %v2051_v47, %v2052_v23  ;;  %v2061_v47 = vrot.slane %v6174_v38, 1  ;;  %v6346_v40 = vsel %vm382_vm0, %v2057_v19, %v2058_v13 }
 0x349   : > { %8317 = vst [vmem:[#allocation142_spill] sm:$0xff] %v6200_v39  ;;  %2167 = vrot.lane.b32.xlu1 %v6200_v39, %s4074_s30  ;;  %v6286_v10 = vsel %vm382_vm0, %v2042_v21, %v2043_v53  ;;  %v6316_v53 = vsel %vm382_vm0, %v2052_v23, 0.0  ;;  %v2055_v21 = vrot.slane %v6154_v52, 1  ;;  %8323 = vst [vmem:[#allocation81_spill] sm:$0xff] %v6322_v1  ;;  %v6340_v23 = vsel %vm382_vm0, %v2058_v13, 0.0 }
 0x34a   : > { %8322 = vst [vmem:[#allocation80_spill] sm:$0xff] %v6316_v53  ;;  %8326 = vst [vmem:[#allocation144_spill] sm:$0xff] %v6340_v23  ;;  %v6358_v45 = vsel %vm382_vm0, %v2060_v17, %v2061_v47  ;;  %v2067_v13 = vrot.slane %v6194_v24, 1 }
 0x34b   : > { %2218 = vrot.lane.b32.xlu0 %v6208_v22, %s4075_s11  ;;  %v6328_v41 = vsel %vm382_vm0, %v2055_v21, 0.0  ;;  %v6334_v5 = vsel %vm382_vm0, %v2054_v62, %v2055_v21  ;;  %8327 = vst [vmem:[#allocation145_spill] sm:$0xff] %v6346_v40  ;;  %v6352_v21 = vsel %vm382_vm0, %v2061_v47, 0.0  ;;  %v2064_v62 = vrot.slane %v6184_v15, 1  ;;  %8329 = vst [vmem:[#allocation31_spill] sm:$0xff] %v6358_v45 }
 0x34c   : > { %8324 = vst [vmem:[#allocation112_spill] sm:$0xff] %v6328_v41  ;;  %8325 = vst [vmem:[#allocation113_spill] sm:$0xff] %v6334_v5  ;;  %v1934_v47 = vrot.slane %v6059_v49, 7 }
 0x34d   : > { %2216 = vrot.lane.b32.xlu1 %v6214_v11, %s4075_s11  ;;  %8328 = vst [vmem:[#allocation22_spill] sm:$0xff] %v6352_v21  ;;  %v6364_v19 = vsel %vm382_vm0, %v2064_v62, 0.0  ;;  %v6370_v31 = vsel %vm382_vm0, %v2063_v55, %v2064_v62  ;;  %v1935_v55 = vrot.slane %v6056_v6, 7 }
 0x34e   : > { %8330 = vst [vmem:[#allocation25_spill] sm:$0xff] %v6364_v19  ;;  %8331 = vst [vmem:[#allocation32_spill] sm:$0xff] %v6370_v31 }
 0x34f   : > { %2222 = vrot.lane.b32.xlu0 %v6220_v59, %s4075_s11 }
 0x351   : > { %2220 = vrot.lane.b32.xlu1 %v6226_v51, %s4075_s11 }
 0x353   : > { %2226 = vrot.lane.b32.xlu0 %v6232_v43, %s4075_s11 }
 0x355   : > { %2224 = vrot.lane.b32.xlu1 %v6238_v42, %s4075_s11 }
 0x357   : > { %2230 = vrot.lane.b32.xlu0 %v6244_v20, %s4075_s11 }
 0x359   : > { %2228 = vrot.lane.b32.xlu1 %v6250_v26, %s4075_s11 }
 0x35b   : > { %2234 = vrot.lane.b32.xlu0 %v6256_v8, %s4075_s11 }
 0x35d   : > { %2232 = vrot.lane.b32.xlu1 %v6262_v50, %s4075_s11 }
 0x35f   : > { %2238 = vrot.lane.b32.xlu0 %v6268_v48, %s4075_s11 }
 0x361   : > { %2236 = vrot.lane.b32.xlu1 %v6274_v61, %s4075_s11 }
 0x363   : > { %2242 = vrot.lane.b32.xlu0 %v6280_v37, %s4075_s11 }
 0x365   : > { %2240 = vrot.lane.b32.xlu1 %v6286_v10, %s4075_s11 }
 0x367   : > { %2246 = vrot.lane.b32.xlu0 %v6292_v4, %s4075_s11 }
 0x369   : > { %2244 = vrot.lane.b32.xlu1 %v6298_v58, %s4075_s11 }
 0x36b   : > { %2250 = vrot.lane.b32.xlu0 %v6304_v33, %s4075_s11 }
 0x36d   : > { %2248 = vrot.lane.b32.xlu1 %v6310_v25, %s4075_s11 }
 0x36f   : > { %2254 = vrot.lane.b32.xlu0 %v6316_v53, %s4075_s11  ;;  %v1941_v53 = vrot.slane %v6074_v44, 7 }
 0x371   : > { %2252 = vrot.lane.b32.xlu1 %v6322_v1, %s4075_s11 }
 0x373   : > { %2258 = vrot.lane.b32.xlu0 %v6328_v41, %s4075_s11 }
 0x375   : > { %2256 = vrot.lane.b32.xlu1 %v6334_v5, %s4075_s11 }
 0x377   : > { %2262 = vrot.lane.b32.xlu0 %v6340_v23, %s4075_s11 }
 0x379   : > { %2260 = vrot.lane.b32.xlu1 %v6346_v40, %s4075_s11  ;;  %v1937_v40 = vrot.slane %v6069_v2, 7 }
 0x37b   : > { %2266 = vrot.lane.b32.xlu0 %v6352_v21, %s4075_s11  ;;  %v2066_v21 = vrot.slane %v6200_v39, 1 }
 0x37d   : > { %2264 = vrot.lane.b32.xlu1 %v6358_v45, %s4075_s11  ;;  %v6373_v17 = vpop.permute.xlu0 %2113  ;;  %v6379_v45 = vsel %vm382_vm0, %v2067_v13, 0.0  ;;  %v6387_v62 = vsel %vm382_vm0, %v2066_v21, %v2067_v13  ;;  %v1938_v21 = vrot.slane %v6064_v18, 7 }
 0x37e   : > { %8332 = vst [vmem:[#allocation82_spill] sm:$0xff] %v6373_v17  ;;  %8333 = vst [vmem:[#allocation83_spill] sm:$0xff] %v6379_v45 }
 0x37f   : > { %2270 = vrot.lane.b32.xlu0 %v6364_v19, %s4075_s11  ;;  %v6381_v23 = vpop.permute.xlu1 %2111  ;;  %8335 = vst [vmem:[#allocation115_spill] sm:$0xff] %v6387_v62 }
 0x380   : > { %8334 = vst [vmem:[#allocation114_spill] sm:$0xff] %v6381_v23 }
 0x381   : > { %2268 = vrot.lane.b32.xlu1 %v6370_v31, %s4075_s11  ;;  %v6389_v19 = vpop.permute.xlu0 %2117  ;;  %v6394_v31 = vsel %vm286_vm1, %v1934_v47, %v1935_v55  ;;  %v6410_v55 = vsel %vm286_vm1, %v1937_v40, %v1938_v21 }
 0x382   : > { %8336 = vst [vmem:[#allocation146_spill] sm:$0xff] %v6389_v19  ;;  %8337 = vst [vmem:[#allocation147_spill] sm:$0xff] %v6394_v31 }
 0x383   : > { %2274 = vrot.lane.b32.xlu0 %v6379_v45, %s4075_s11  ;;  %v6399_v41 = vpop.permute.xlu1 %2115  ;;  %v6402_v45 = vsel %vm286_vm1, 0.0, %v1934_v47  ;;  %v6418_v47 = vsel %vm286_vm1, 0.0, %v1937_v40 }
 0x384   : > { %8338 = vst [vmem:[#allocation26_spill] sm:$0xff] %v6399_v41  ;;  %8339 = vst [vmem:[#allocation35_spill] sm:$0xff] %v6402_v45 }
 0x385   : > { %2272 = vrot.lane.b32.xlu1 %v6387_v62, %s4075_s11  ;;  %v6405_v13 = vpop.permute.xlu0 %2121  ;;  %v1940_v62 = vrot.slane %v6079_v56, 7 }
 0x386   : > { %8340 = vst [vmem:[#allocation29_spill] sm:$0xff] %v6405_v13  ;;  %v1943_v13 = vrot.slane %v6089_v35, 7 }
 0x387   : > { %2324 = vrot.lane.b32.xlu0 %v6394_v31, %s4076_s12  ;;  %v6413_v5 = vpop.permute.xlu1 %2119  ;;  %v6426_v21 = vsel %vm286_vm1, %v1940_v62, %v1941_v53  ;;  %v6434_v40 = vsel %vm286_vm1, 0.0, %v1940_v62 }
 0x388   : > { %8341 = vst [vmem:[#allocation36_spill] sm:$0xff] %v6413_v5  ;;  %v1944_v5 = vrot.slane %v6084_v32, 7  ;;  %v6450_v62 = vsel %vm286_vm1, 0.0, %v1943_v13 }
 0x389   : > { %2322 = vrot.lane.b32.xlu1 %v6402_v45, %s4076_s12  ;;  %v6421_v19 = vpop.permute.xlu0 %2125 }
 0x38a   : > { %8342 = vst [vmem:[#allocation84_spill] sm:$0xff] %v6421_v19  ;;  %v6442_v53 = vsel %vm286_vm1, %v1943_v13, %v1944_v5  ;;  %v1946_v19 = vrot.slane %v6099_v0, 7 }
 0x38b   : > { %2328 = vrot.lane.b32.xlu0 %v6410_v55, %s4076_s12  ;;  %v6429_v1 = vpop.permute.xlu1 %2123 }
 0x38c   : > { %8343 = vst [vmem:[#allocation85_spill] sm:$0xff] %v6429_v1  ;;  %v1947_v1 = vrot.slane %v6094_v30, 7  ;;  %v6466_v13 = vsel %vm286_vm1, 0.0, %v1946_v19 }
 0x38d   : > { %2326 = vrot.lane.b32.xlu1 %v6418_v47, %s4076_s12  ;;  %v6437_v41 = vpop.permute.xlu0 %2129 }
 0x38e   : > { %8344 = vst [vmem:[#allocation116_spill] sm:$0xff] %v6437_v41  ;;  %v6458_v5 = vsel %vm286_vm1, %v1946_v19, %v1947_v1  ;;  %v1949_v41 = vrot.slane %v6109_v29, 7 }
 0x38f   : > { %2332 = vrot.lane.b32.xlu0 %v6426_v21, %s4076_s12  ;;  %v6445_v33 = vpop.permute.xlu1 %2127 }
 0x390   : > { %8345 = vst [vmem:[#allocation117_spill] sm:$0xff] %v6445_v33  ;;  %v1950_v33 = vrot.slane %v6104_v9, 7  ;;  %v6482_v19 = vsel %vm286_vm1, 0.0, %v1949_v41 }
 0x391   : > { %2330 = vrot.lane.b32.xlu1 %v6434_v40, %s4076_s12  ;;  %v6453_v31 = vpop.permute.xlu0 %2133 }
 0x392   : > { %8346 = vst [vmem:[#allocation148_spill] sm:$0xff] %v6453_v31  ;;  %v6474_v1 = vsel %vm286_vm1, %v1949_v41, %v1950_v33  ;;  %v1952_v31 = vrot.slane %v6119_v16, 7 }
 0x393   : > { %2336 = vrot.lane.b32.xlu0 %v6442_v53, %s4076_s12  ;;  %v6461_v17 = vpop.permute.xlu1 %2131  ;;  %8349 = vst [vmem:[#allocation39_spill] sm:$0xff] %v6474_v1 }
 0x394   : > { %8347 = vst [vmem:[#allocation149_spill] sm:$0xff] %v6461_v17  ;;  %v1953_v17 = vrot.slane %v6114_v34, 7  ;;  %v6498_v41 = vsel %vm286_vm1, 0.0, %v1952_v31 }
 0x395   : > { %2334 = vrot.lane.b32.xlu1 %v6450_v62, %s4076_s12  ;;  %v6469_v45 = vpop.permute.xlu0 %2137  ;;  %8354 = vst [vmem:[#allocation118_spill] sm:$0xff] %v6498_v41 }
 0x396   : > { %8348 = vst [vmem:[#allocation30_spill] sm:$0xff] %v6469_v45  ;;  %v6490_v33 = vsel %vm286_vm1, %v1952_v31, %v1953_v17  ;;  %v1955_v45 = vrot.slane %v6129_v3, 7 }
 0x397   : > { %2340 = vrot.lane.b32.xlu0 %v6458_v5, %s4076_s12  ;;  %v6477_v23 = vpop.permute.xlu1 %2135  ;;  %8352 = vst [vmem:[#allocation86_spill] sm:$0xff] %v6490_v33 }
 0x398   : > { %8350 = vst [vmem:[#allocation33_spill] sm:$0xff] %v6477_v23  ;;  %v1956_v23 = vrot.slane %v6124_v57, 7  ;;  %v6514_v31 = vsel %vm286_vm1, 0.0, %v1955_v45 }
 0x399   : > { %2338 = vrot.lane.b32.xlu1 %v6466_v13, %s4076_s12  ;;  %v6485_v25 = vpop.permute.xlu0 %2141  ;;  %8358 = vst [vmem:[#allocation34_spill] sm:$0xff] %v6514_v31 }
 0x39a   : > { %8351 = vst [vmem:[#allocation40_spill] sm:$0xff] %v6485_v25  ;;  %v6506_v17 = vsel %vm286_vm1, %v1955_v45, %v1956_v23  ;;  %v1958_v25 = vrot.slane %v6139_v12, 7 }
 0x39b   : > { %2344 = vrot.lane.b32.xlu0 %v6474_v1, %s4076_s12  ;;  %v6493_v4 = vpop.permute.xlu1 %2139  ;;  %8356 = vst [vmem:[#allocation150_spill] sm:$0xff] %v6506_v17 }
 0x39c   : > { %8353 = vst [vmem:[#allocation87_spill] sm:$0xff] %v6493_v4  ;;  %v1959_v4 = vrot.slane %v6134_v46, 7  ;;  %v6530_v45 = vsel %vm286_vm1, 0.0, %v1958_v25 }
 0x39d   : > { %2342 = vrot.lane.b32.xlu1 %v6482_v19, %s4076_s12  ;;  %v6501_v58 = vpop.permute.xlu0 %2145 }
 0x39e   : > { %8355 = vst [vmem:[#allocation119_spill] sm:$0xff] %v6501_v58  ;;  %v6522_v23 = vsel %vm286_vm1, %v1958_v25, %v1959_v4  ;;  %v1961_v58 = vrot.slane %v6149_v7, 7 }
 0x39f   : > { %2348 = vrot.lane.b32.xlu0 %v6490_v33, %s4076_s12  ;;  %v6509_v3 = vpop.permute.xlu1 %2143  ;;  %8360 = vst [vmem:[#allocation37_spill] sm:$0xff] %v6522_v23 }
 0x3a0   : > { %8357 = vst [vmem:[#allocation151_spill] sm:$0xff] %v6509_v3  ;;  %v1962_v3 = vrot.slane %v6144_v14, 7  ;;  %v6546_v25 = vsel %vm286_vm1, 0.0, %v1961_v58 }
 0x3a1   : > { %2346 = vrot.lane.b32.xlu1 %v6498_v41, %s4076_s12  ;;  %v6517_v57 = vpop.permute.xlu0 %2149  ;;  %8364 = vst [vmem:[#allocation120_spill] sm:$0xff] %v6546_v25 }
 0x3a2   : > { %8359 = vst [vmem:[#allocation43_spill] sm:$0xff] %v6517_v57  ;;  %v6538_v4 = vsel %vm286_vm1, %v1961_v58, %v1962_v3  ;;  %v1964_v57 = vrot.slane %v6159_v28, 7  ;;  %v3857_v28 = vpop.f32.mrf.mxu0 }
 0x3a3   : > { %2352 = vrot.lane.b32.xlu0 %v6506_v17, %s4076_s12  ;;  %v6525_v12 = vpop.permute.xlu1 %2147 }
 0x3a4   : > { %8361 = vst [vmem:[#allocation44_spill] sm:$0xff] %v6525_v12  ;;  %v1965_v12 = vrot.slane %v6154_v52, 7  ;;  %v6562_v58 = vsel %vm286_vm1, 0.0, %v1964_v57  ;;  %v1968_v52 = vrot.slane %v6164_v27, 7  ;;  %v1971_v27 = vrot.slane %v6174_v38, 7 }
 0x3a5   : > { %2350 = vrot.lane.b32.xlu1 %v6514_v31, %s4076_s12  ;;  %8367 = vst [vmem:[#allocation153_spill] sm:$0xff] %v6562_v58 }
 0x3a6   : > { %v6554_v3 = vsel %vm286_vm1, %v1964_v57, %v1965_v12 }
 0x3a7   : > { %2356 = vrot.lane.b32.xlu0 %v6522_v23, %s4076_s12  ;;  %v6533_v46 = vpop.permute.xlu0 %2153 }
 0x3a8   : > { %8362 = vst [vmem:[#allocation88_spill] sm:$0xff] %v6533_v46  ;;  %v1967_v46 = vrot.slane %v6169_v60, 7  ;;  %v1970_v60 = vrot.slane %v6179_v63, 7 }
 0x3a9   : > { %2354 = vrot.lane.b32.xlu1 %v6530_v45, %s4076_s12  ;;  %v6541_v7 = vpop.permute.xlu1 %2151 }
 0x3aa   : > { %8363 = vst [vmem:[#allocation89_spill] sm:$0xff] %v6541_v7  ;;  %v6570_v12 = vsel %vm286_vm1, %v1967_v46, %v1968_v52  ;;  %v6578_v57 = vsel %vm286_vm1, 0.0, %v1967_v46  ;;  %v6587_v63 = vsel %vm286_vm1, %v1970_v60, %v1971_v27  ;;  %v1869_v46 = vadd.f32 %v3857_v28, %v6053_v54 }
 0x3ab   : > { %2360 = vrot.lane.b32.xlu0 %v6538_v4, %s4076_s12  ;;  %v6549_v14 = vpop.permute.xlu0 %2157  ;;  %8370 = vst [vmem:[#allocation41_spill] sm:$0xff] %v6578_v57  ;;  %v6596_v38 = vsel %vm286_vm1, 0.0, %v1970_v60  ;;  %v1977_v60 = vrot.slane %v6194_v24, 7 }
 0x3ac   : > { %8365 = vst [vmem:[#allocation121_spill] sm:$0xff] %v6549_v14 }
 0x3ad   : > { %2358 = vrot.lane.b32.xlu1 %v6546_v25, %s4076_s12  ;;  %v6557_v7 = vpop.permute.xlu1 %2155  ;;  %v1863_v25 = vpop.f32.mrf.mxu0 }
 0x3ae   : > { %8366 = vst [vmem:[#allocation152_spill] sm:$0xff] %v6557_v7  ;;  %v1864_v52 = vadd.f32 %v6053_v54, %v1863_v25  ;;  %v6613_v54 = vmax.f32 %v1869_v46, 0.0 }
 0x3af   : > { %2364 = vrot.lane.b32.xlu0 %v6554_v3, %s4076_s12 }
 0x3b0   : > { %v6565_v14 = vpop.permute.xlu0 %2161  ;;  %v6603_v27 = vmax.f32 %v1864_v52, 0.0  ;;  %8377 = vst [vmem:[#allocation155_spill] sm:$0xff] %v6613_v54  ;;  %v2102_v46 = vrot.slane %v6613_v54, 7 }
 0x3b1   : > { %8368 = vst [vmem:[#allocation38_spill] sm:$0xff] %v6565_v14  ;;  %2362 = vrot.lane.b32.xlu1 %v6562_v58, %s4076_s12 }
 0x3b2   : > { %v6573_v7 = vpop.permute.xlu1 %2159  ;;  %8374 = vst [vmem:[#allocation122_spill] sm:$0xff] %v6603_v27  ;;  %v2101_v52 = vrot.slane %v6603_v27, 7 }
 0x3b3   : > { %8369 = vst [vmem:[#allocation47_spill] sm:$0xff] %v6573_v7  ;;  %2368 = vrot.lane.b32.xlu0 %v6570_v12, %s4076_s12  ;;  %v1973_v7 = vrot.slane %v6189_v36, 7 }
 0x3b4   : > { %v6647_v27 = vsel %vm286_vm1, 0.0, %v2101_v52 }
 0x3b5   : > { %v6581_v14 = vpop.permute.xlu0 %2165  ;;  %2366 = vrot.lane.b32.xlu1 %v6578_v57, %s4076_s12  ;;  %v6616_v28 = vsel %vm286_vm1, 0.0, %v1973_v7  ;;  %8382 = vst [vmem:[#allocation92_spill] sm:$0xff] %v6647_v27 }
 0x3b6   : > { %8371 = vst [vmem:[#allocation48_spill] sm:$0xff] %v6581_v14  ;;  %v1974_v14 = vrot.slane %v6184_v15, 7  ;;  %8378 = vst [vmem:[#allocation42_spill] sm:$0xff] %v6616_v28  ;;  %v3137_v15 = vld [vmem:[%s7646_s3 + $0x20] sm:$0xf] }
 0x3b7   : > { %v6590_v58 = vpop.permute.xlu1 %2163  ;;  %2372 = vrot.lane.b32.xlu0 %v6587_v63, %s4076_s12  ;;  %3858 = vmatprep.subr.msk.mxu1 %vm1643_vm2, %v3137_v15 }
 0x3b8   : > { %8372 = vst [vmem:[#allocation90_spill] sm:$0xff] %v6590_v58  ;;  %v6606_v25 = vsel %vm286_vm1, %v1973_v7, %v1974_v14  ;;  %v1976_v58 = vrot.slane %v6200_v39, 7  ;;  %3859 = vmatpush3.msk.msra.mxu1 %vm1643_vm2, %v3137_v15  ;;  %v3134_v15 = vld [vmem:[%s7646_s3 + $0x8] sm:$0xff] }
 0x3b9   : > { %v6599_v57 = vpop.permute.xlu0 %2169  ;;  %2370 = vrot.lane.b32.xlu1 %v6596_v38, %s4076_s12  ;;  %8375 = vst [vmem:[#allocation123_spill] sm:$0xff] %v6606_v25 }
 0x3ba   : > { %8373 = vst [vmem:[#allocation91_spill] sm:$0xff] %v6599_v57  ;;  %v6624_v14 = vsel %vm286_vm1, %v1976_v58, %v1977_v60  ;;  %v6632_v7 = vsel %vm286_vm1, 0.0, %v1976_v58  ;;  %v6640_v60 = vsel %vm286_vm1, %v2101_v52, %v2102_v46 }
 0x3bb   : > { %v6609_v36 = vpop.permute.xlu1 %2167  ;;  %2376 = vrot.lane.b32.xlu0 %v6606_v25, %s4076_s12  ;;  %8379 = vst [vmem:[#allocation51_spill] sm:$0xff] %v6624_v14  ;;  %8380 = vst [vmem:[#allocation45_spill] sm:$0xff] %v6632_v7 }
 0x3bc   : > { %8376 = vst [vmem:[#allocation154_spill] sm:$0xff] %v6609_v36  ;;  %8381 = vst [vmem:[#allocation52_spill] sm:$0xff] %v6640_v60 }
 0x3bd   : > { %v6619_v57 = vpop.permute.xlu0 %2218  ;;  %2374 = vrot.lane.b32.xlu1 %v6616_v28, %s4076_s12 }
 0x3bf   : > { %v6627_v36 = vpop.permute.xlu1 %2216  ;;  %2380 = vrot.lane.b32.xlu0 %v6624_v14, %s4076_s12 }
 0x3c1   : > { %v6635_v24 = vpop.permute.xlu0 %2222  ;;  %2378 = vrot.lane.b32.xlu1 %v6632_v7, %s4076_s12 }
 0x3c3   : > { %v6642_v39 = vpop.permute.xlu1 %2220  ;;  %2384 = vrot.lane.b32.xlu0 %v6640_v60, %s4076_s12 }
 0x3c5   : > { %v6649_v58 = vpop.permute.xlu0 %2226  ;;  %2382 = vrot.lane.b32.xlu1 %v6647_v27, %s4076_s12 }
 0x3c7   : > { %v6653_v54 = vpop.permute.xlu1 %2224  ;;  %2420 = vrot.lane.b32.xlu0 %v6056_v6, %s4077_s13 }
 0x3c9   : > { %v6657_v46 = vpop.permute.xlu0 %2230  ;;  %2418 = vrot.lane.b32.xlu1 %v6059_v49, %s4077_s13 }
 0x3cb   : > { %v6661_v7 = vpop.permute.xlu1 %2228  ;;  %2424 = vrot.lane.b32.xlu0 %v6064_v18, %s4077_s13 }
 0x3cd   : > { %v6665_v52 = vpop.permute.xlu0 %2234  ;;  %2422 = vrot.lane.b32.xlu1 %v6069_v2, %s4077_s13 }
 0x3cf   : > { %v6669_v27 = vpop.permute.xlu1 %2232  ;;  %2428 = vrot.lane.b32.xlu0 %v6074_v44, %s4077_s13 }
 0x3d1   : > { %v6673_v6 = vpop.permute.xlu0 %2238  ;;  %2426 = vrot.lane.b32.xlu1 %v6079_v56, %s4077_s13 }
 0x3d2   : > { %8383 = vst [vmem:[#allocation93_spill] sm:$0xff] %v6673_v6 }
 0x3d3   : > { %v6677_v49 = vpop.permute.xlu1 %2236  ;;  %2432 = vrot.lane.b32.xlu0 %v6084_v32, %s4077_s13 }
 0x3d5   : > { %v6681_v60 = vpop.permute.xlu0 %2242  ;;  %2430 = vrot.lane.b32.xlu1 %v6089_v35, %s4077_s13 }
 0x3d6   : > { %8384 = vst [vmem:[#allocation124_spill] sm:$0xff] %v6681_v60  ;;  %v3136_v60 = vld [vmem:[%s7646_s3 + $0x18] sm:$0xff] }
 0x3d7   : > { %v6685_v14 = vpop.permute.xlu1 %2240  ;;  %2436 = vrot.lane.b32.xlu0 %v6094_v30, %s4077_s13  ;;  %3860 = vmatprep.subr.mxu1 %v3136_v60 }
 0x3d8   : > { %8385 = vst [vmem:[#allocation125_spill] sm:$0xff] %v6685_v14  ;;  %3861 = vmatpush3.msra.mxu1 %v3136_v60  ;;  %v3133_v60 = vld [vmem:[%s7646_s3] sm:$0xff] }
 0x3d9   : > { %v6692_v6 = vpop.permute.xlu0 %2246  ;;  %2434 = vrot.lane.b32.xlu1 %v6099_v0, %s4077_s13 }
 0x3da   : > { %8386 = vst [vmem:[#allocation14_spill] sm:$0xff] %v6692_v6  ;;  %v3135_v6 = vld [vmem:[%s7646_s3 + $0x10] sm:$0xff] }
 0x3db   : > { %v6701_v14 = vpop.permute.xlu1 %2244  ;;  %2440 = vrot.lane.b32.xlu0 %v6104_v9, %s4077_s13  ;;  %3862 = vmatprep.subr.mxu1 %v3135_v6 }
 0x3dc   : > { %8387 = vst [vmem:[#allocation140_spill] sm:$0xff] %v6701_v14  ;;  %3863 = vmatpush3.msra.mxu1 %v3135_v6 }
 0x3dd   : > { %v6708_v28 = vpop.permute.xlu0 %2250  ;;  %2438 = vrot.lane.b32.xlu1 %v6109_v29, %s4077_s13  ;;  %3864 = vmatprep.subr.mxu1 %v3134_v15 }
 0x3de   : > { %8388 = vst [vmem:[#allocation156_spill] sm:$0xff] %v6708_v28  ;;  %3865 = vmatpush3.msra.mxu1 %v3134_v15 }
 0x3df   : > { %v6715_v14 = vpop.permute.xlu1 %2248  ;;  %2515 = vrot.lane.b32.xlu0 %v6214_v11, %s4078_s14  ;;  %3866 = vmatprep.subr.mxu1 %v3133_v60 }
 0x3e0   : > { %8389 = vst [vmem:[#allocation157_spill] sm:$0xff] %v6715_v14  ;;  %3867 = vmatpush3.msra.mxu1 %v3133_v60 }
 0x3e1   : > { %v6722_v28 = vpop.permute.xlu0 %2254  ;;  %2442 = vrot.lane.b32.xlu1 %v6119_v16, %s4077_s13 }
 0x3e2   : > { %8390 = vst [vmem:[#allocation46_spill] sm:$0xff] %v6722_v28 }
 0x3e3   : > { %v6726_v25 = vpop.permute.xlu1 %2252  ;;  %2611 = vrot.lane.b32.xlu0 %v6418_v47, %s4079_s15 }
 0x3e4   : > { %8391 = vst [vmem:[#allocation55_spill] sm:$0xff] %v6726_v25 }
 0x3e5   : > { %v6730_v6 = vpop.permute.xlu0 %2258  ;;  %2517 = vrot.lane.b32.xlu1 %v6208_v22, %s4078_s14 }
 0x3e6   : > { %8392 = vst [vmem:[#allocation49_spill] sm:$0xff] %v6730_v6 }
 0x3e7   : > { %v6734_v11 = vpop.permute.xlu1 %2256  ;;  %2701 = vrot.lane.b32.xlu0 %v6069_v2, %s4080_s16 }
 0x3e8   : > { %8393 = vst [vmem:[#allocation56_spill] sm:$0xff] %v6734_v11 }
 0x3e9   : > { %v6738_v15 = vpop.permute.xlu0 %2262  ;;  %2613 = vrot.lane.b32.xlu1 %v6410_v55, %s4079_s15 }
 0x3ea   : > { %8394 = vst [vmem:[#allocation172_spill] sm:$0xff] %v6738_v15 }
 0x3eb   : > { %v6742_v60 = vpop.permute.xlu1 %2260  ;;  %2791 = vrot.lane.b32.xlu0 %v6226_v51, %s4081_s25 }
 0x3ec   : > { %8395 = vst [vmem:[#allocation173_spill] sm:$0xff] %v6742_v60 }
 0x3ed   : > { %v6746_v28 = vpop.permute.xlu0 %2266  ;;  %2703 = vrot.lane.b32.xlu1 %v6064_v18, %s4080_s16 }
 0x3ee   : > { %8396 = vst [vmem:[#allocation94_spill] sm:$0xff] %v6746_v28 }
 0x3ef   : > { %v6750_v22 = vpop.permute.xlu1 %2264  ;;  %2793 = vrot.lane.b32.xlu0 %v6220_v59, %s4081_s25 }
 0x3f0   : > { %8397 = vst [vmem:[#allocation95_spill] sm:$0xff] %v6750_v22 }
 0x3f1   : > { %v6754_v2 = vpop.permute.xlu0 %2270  ;;  %2519 = vrot.lane.b32.xlu1 %v6226_v51, %s4078_s14 }
 0x3f2   : > { %8398 = vst [vmem:[#allocation187_spill] sm:$0xff] %v6754_v2 }
 0x3f3   : > { %v6758_v15 = vpop.permute.xlu1 %2268  ;;  %2615 = vrot.lane.b32.xlu0 %v6434_v40, %s4079_s15 }
 0x3f4   : > { %8399 = vst [vmem:[#allocation188_spill] sm:$0xff] %v6758_v15 }
 0x3f5   : > { %v6762_v60 = vpop.permute.xlu0 %2274  ;;  %2521 = vrot.lane.b32.xlu1 %v6220_v59, %s4078_s14 }
 0x3f6   : > { %8400 = vst [vmem:[#allocation126_spill] sm:$0xff] %v6762_v60 }
 0x3f7   : > { %v6766_v18 = vpop.permute.xlu1 %2272  ;;  %2705 = vrot.lane.b32.xlu0 %v6079_v56, %s4080_s16 }
 0x3f8   : > { %8401 = vst [vmem:[#allocation127_spill] sm:$0xff] %v6766_v18 }
 0x3f9   : > { %v6770_v28 = vpop.permute.xlu0 %2324  ;;  %2617 = vrot.lane.b32.xlu1 %v6426_v21, %s4079_s15 }
 0x3fb   : > { %v6774_v51 = vpop.permute.xlu1 %2322  ;;  %2795 = vrot.lane.b32.xlu0 %v6238_v42, %s4081_s25 }
 0x3fd   : > { %2707 = vrot.lane.b32.xlu1 %v6074_v44, %s4080_s16  ;;  %v6780_v60 = vpop.permute.xlu0 %2328 }
 0x3ff   : > { %v6782_v59 = vpop.permute.xlu1 %2326  ;;  %2797 = vrot.lane.b32.xlu0 %v6232_v43, %s4081_s25 }
 0x401   : > { %2523 = vrot.lane.b32.xlu1 %v6238_v42, %s4078_s14  ;;  %v6788_v56 = vpop.permute.xlu0 %2332 }
 0x403   : > { %v6790_v2 = vpop.permute.xlu1 %2330  ;;  %2619 = vrot.lane.b32.xlu0 %v6450_v62, %s4079_s15 }
 0x405   : > { %2525 = vrot.lane.b32.xlu1 %v6232_v43, %s4078_s14  ;;  %v6796_v44 = vpop.permute.xlu0 %2336 }
 0x407   : > { %v6798_v18 = vpop.permute.xlu1 %2334  ;;  %2709 = vrot.lane.b32.xlu0 %v6089_v35, %s4080_s16 }
 0x409   : > { %2621 = vrot.lane.b32.xlu1 %v6442_v53, %s4079_s15  ;;  %v6804_v42 = vpop.permute.xlu0 %2340 }
 0x40b   : > { %v6806_v15 = vpop.permute.xlu1 %2338  ;;  %2799 = vrot.lane.b32.xlu0 %v6250_v26, %s4081_s25 }
 0x40d   : > { %2711 = vrot.lane.b32.xlu1 %v6084_v32, %s4080_s16  ;;  %v6812_v43 = vpop.permute.xlu0 %2344 }
 0x40f   : > { %v6814_v22 = vpop.permute.xlu1 %2342  ;;  %2801 = vrot.lane.b32.xlu0 %v6244_v20, %s4081_s25 }
 0x411   : > { %2527 = vrot.lane.b32.xlu1 %v6250_v26, %s4078_s14  ;;  %v6820_v35 = vpop.permute.xlu0 %2348 }
 0x412   : > { %8402 = vst [vmem:[#allocation13_spill] sm:$0xff] %v6820_v35 }
 0x413   : > { %v6822_v6 = vpop.permute.xlu1 %2346  ;;  %2623 = vrot.lane.b32.xlu0 %v6466_v13, %s4079_s15 }
 0x414   : > { %8403 = vst [vmem:[#allocation5_spill] sm:$0xff] %v6822_v6 }
 0x415   : > { %2529 = vrot.lane.b32.xlu1 %v6244_v20, %s4078_s14  ;;  %v6828_v32 = vpop.permute.xlu0 %2352 }
 0x416   : > { %8404 = vst [vmem:[#allocation158_spill] sm:$0xff] %v6828_v32  ;;  %v8426_v32 = vld [vmem:[#allocation19_spill] sm:$0xff] }
 0x417   : > { %v6830_v11 = vpop.permute.xlu1 %2350  ;;  %2713 = vrot.lane.b32.xlu0 %v6099_v0, %s4080_s16 }
 0x418   : > { %8405 = vst [vmem:[#allocation159_spill] sm:$0xff] %v6830_v11 }
 0x419   : > { %2625 = vrot.lane.b32.xlu1 %v6458_v5, %s4079_s15  ;;  %v6836_v26 = vpop.permute.xlu0 %2356 }
 0x41a   : > { %8406 = vst [vmem:[#allocation50_spill] sm:$0xff] %v6836_v26 }
 0x41b   : > { %v6838_v25 = vpop.permute.xlu1 %2354  ;;  %2803 = vrot.lane.b32.xlu0 %v6262_v50, %s4081_s25 }
 0x41c   : > { %8407 = vst [vmem:[#allocation59_spill] sm:$0xff] %v6838_v25 }
 0x41d   : > { %2715 = vrot.lane.b32.xlu1 %v6094_v30, %s4080_s16  ;;  %v6844_v20 = vpop.permute.xlu0 %2360 }
 0x41e   : > { %8408 = vst [vmem:[#allocation53_spill] sm:$0xff] %v6844_v20 }
 0x41f   : > { %v6846_v14 = vpop.permute.xlu1 %2358  ;;  %2805 = vrot.lane.b32.xlu0 %v6256_v8, %s4081_s25 }
 0x420   : > { %8409 = vst [vmem:[#allocation60_spill] sm:$0xff] %v6846_v14  ;;  %v8424_v14 = vld [vmem:[#allocation74_spill] sm:$0xff] }
 0x421   : > { %2531 = vrot.lane.b32.xlu1 %v6262_v50, %s4078_s14  ;;  %v6852_v0 = vpop.permute.xlu0 %2364 }
 0x422   : > { %8410 = vst [vmem:[#allocation174_spill] sm:$0xff] %v6852_v0 }
 0x423   : > { %v6854_v26 = vpop.permute.xlu1 %2362  ;;  %2627 = vrot.lane.b32.xlu0 %v6482_v19, %s4079_s15 }
 0x424   : > { %8411 = vst [vmem:[#allocation175_spill] sm:$0xff] %v6854_v26  ;;  %v8423_v26 = vld [vmem:[#allocation27_spill] sm:$0xff] }
 0x425   : > { %2533 = vrot.lane.b32.xlu1 %v6256_v8, %s4078_s14  ;;  %v6860_v30 = vpop.permute.xlu0 %2368 }
 0x426   : > { %8412 = vst [vmem:[#allocation96_spill] sm:$0xff] %v6860_v30 }
 0x427   : > { %v6862_v20 = vpop.permute.xlu1 %2366  ;;  %2717 = vrot.lane.b32.xlu0 %v6109_v29, %s4080_s16 }
 0x428   : > { %8413 = vst [vmem:[#allocation97_spill] sm:$0xff] %v6862_v20 }
 0x429   : > { %2629 = vrot.lane.b32.xlu1 %v6474_v1, %s4079_s15  ;;  %v6868_v50 = vpop.permute.xlu0 %2372 }
 0x42a   : > { %8414 = vst [vmem:[#allocation189_spill] sm:$0xff] %v6868_v50 }
 0x42b   : > { %v6870_v0 = vpop.permute.xlu1 %2370  ;;  %2807 = vrot.lane.b32.xlu0 %v6274_v61, %s4081_s25 }
 0x42c   : > { %8415 = vst [vmem:[#allocation190_spill] sm:$0xff] %v6870_v0  ;;  %v8422_v0 = vld [vmem:[#allocation108_spill] sm:$0xff] }
 0x42d   : > { %2719 = vrot.lane.b32.xlu1 %v6104_v9, %s4080_s16  ;;  %v6876_v8 = vpop.permute.xlu0 %2376 }
 0x42e   : > { %8416 = vst [vmem:[#allocation128_spill] sm:$0xff] %v6876_v8 }
 0x42f   : > { %v6878_v30 = vpop.permute.xlu1 %2374  ;;  %2809 = vrot.lane.b32.xlu0 %v6268_v48, %s4081_s25 }
 0x430   : > { %8417 = vst [vmem:[#allocation129_spill] sm:$0xff] %v6878_v30 }
 0x431   : > { %2535 = vrot.lane.b32.xlu1 %v6274_v61, %s4078_s14  ;;  %v6884_v29 = vpop.permute.xlu0 %2380 }
 0x432   : > { %8418 = vst [vmem:[#allocation17_spill] sm:$0xff] %v6884_v29 }
 0x433   : > { %v6886_v50 = vpop.permute.xlu1 %2378  ;;  %2631 = vrot.lane.b32.xlu0 %v6498_v41, %s4079_s15 }
 0x434   : > { %8419 = vst [vmem:[#allocation197_spill] sm:$0xff] %v6886_v50 }
 0x435   : > { %2537 = vrot.lane.b32.xlu1 %v6268_v48, %s4078_s14  ;;  %v6892_v9 = vpop.permute.xlu0 %2384 }
 0x436   : > { %8420 = vst [vmem:[#allocation160_spill] sm:$0xff] %v6892_v9 }
 0x437   : > { %v6894_v8 = vpop.permute.xlu1 %2382  ;;  %2721 = vrot.lane.b32.xlu0 %v6119_v16, %s4080_s16 }
 0x438   : > { %8421 = vst [vmem:[#allocation161_spill] sm:$0xff] %v6894_v8 }
 0x439   : > { %2633 = vrot.lane.b32.xlu1 %v6490_v33, %s4079_s15  ;;  %v2421_v61 = vpop.permute.xlu0 %2420  ;;  %v8427_v33 = vld [vmem:[#allocation10_spill] sm:$0xff] }
 0x43a   : > { %v2941_v11 = vsel %vm1336_vm4, %v8427_v33, %v6774_v51 }
 0x43b   : > { %v2419_v29 = vpop.permute.xlu1 %2418  ;;  %2811 = vrot.lane.b32.xlu0 %v6286_v10, %s4081_s25 }
 0x43c   : > { %v2973_v35 = vsel %vm1369_vm6, %v2941_v11, %v2419_v29 }
 0x43d   : > { %2723 = vrot.lane.b32.xlu1 %v6114_v34, %s4080_s16  ;;  %v6904_v50 = vpop.permute.xlu0 %2424 }
 0x43f   : > { %v2423_v48 = vpop.permute.xlu1 %2422  ;;  %2539 = vrot.lane.b32.xlu0 %v6286_v10, %s4078_s14 }
 0x441   : > { %2444 = vrot.lane.b32.xlu1 %v6114_v34, %s4077_s13  ;;  %v6910_v16 = vpop.permute.xlu0 %2428 }
 0x443   : > { %v6912_v9 = vpop.permute.xlu1 %2426  ;;  %2541 = vrot.lane.b32.xlu0 %v6280_v37, %s4078_s14 }
 0x445   : > { %2813 = vrot.lane.b32.xlu1 %v6280_v37, %s4081_s25  ;;  %v6918_v8 = vpop.permute.xlu0 %2432 }
 0x447   : > { %v6920_v30 = vpop.permute.xlu1 %2430  ;;  %2637 = vrot.lane.b32.xlu0 %v6506_v17, %s4079_s15 }
 0x449   : > { %2635 = vrot.lane.b32.xlu1 %v6514_v31, %s4079_s15  ;;  %v6926_v34 = vpop.permute.xlu0 %2436 }
 0x44b   : > { %v6928_v10 = vpop.permute.xlu1 %2434  ;;  %2446 = vrot.lane.b32.xlu0 %v8422_v0, %s4077_s13 }
 0x44d   : > { %2725 = vrot.lane.b32.xlu1 %v8422_v0, %s4080_s16  ;;  %v6934_v37 = vpop.permute.xlu0 %2440 }
 0x44f   : > { %v6936_v20 = vpop.permute.xlu1 %2438  ;;  %2815 = vrot.lane.b32.xlu0 %v8423_v26, %s4081_s25 }
 0x451   : > { %2727 = vrot.lane.b32.xlu1 %v8424_v14, %s4080_s16  ;;  %v2516_v17 = vpop.permute.xlu0 %2515 }
 0x453   : > { %v6942_v25 = vpop.permute.xlu1 %2442  ;;  %2543 = vrot.lane.b32.xlu0 %v8423_v26, %s4078_s14  ;;  %v3005_v26 = vsel %vm1402_vm7, %v2973_v35, %v2516_v17 }
 0x454   : > { %8425 = vst [vmem:[#allocation54_spill] sm:$0xff] %v6942_v25 }
 0x455   : > { %2448 = vrot.lane.b32.xlu1 %v8424_v14, %s4077_s13  ;;  %v2612_v0 = vpop.permute.xlu0 %2611  ;;  %v8428_v14 = vld [vmem:[#allocation136_spill] sm:$0xff] }
 0x456   : > { %v2942_v25 = vsel %vm1336_vm4, %v8428_v14, %v6770_v28  ;;  %v3037_v6 = vsel %vm1435_vm8, %v3005_v26, %v2612_v0  ;;  %v8433_v26 = vld [vmem:[#allocation109_spill] sm:$0xff] }
 0x457   : > { %v2518_v31 = vpop.permute.xlu1 %2517  ;;  %2545 = vrot.lane.b32.xlu0 %v8426_v32, %s4078_s14  ;;  %v2974_v33 = vsel %vm1369_vm6, %v2942_v25, %v2421_v61  ;;  %v8432_v61 = vld [vmem:[#allocation35_spill] sm:$0xff] }
 0x458   : > { %v3006_v17 = vsel %vm1402_vm7, %v2974_v33, %v2518_v31  ;;  %v8430_v31 = vld [vmem:[#allocation28_spill] sm:$0xff] }
 0x459   : > { %2817 = vrot.lane.b32.xlu1 %v8426_v32, %s4081_s25  ;;  %v2702_v41 = vpop.permute.xlu0 %2701 }
 0x45a   : > { %v3069_v51 = vsel %vm1468_vm9, %v3037_v6, %v2702_v41 }
 0x45b   : > { %v2614_v1 = vpop.permute.xlu1 %2613  ;;  %2641 = vrot.lane.b32.xlu0 %v6522_v23, %s4079_s15  ;;  %v8429_v23 = vld [vmem:[#allocation138_spill] sm:$0xff] }
 0x45c   : > { %v3038_v32 = vsel %vm1435_vm8, %v3006_v17, %v2614_v1  ;;  %v8431_v1 = vld [vmem:[#allocation114_spill] sm:$0xff] }
 0x45d   : > { %2639 = vrot.lane.b32.xlu1 %v6530_v45, %s4079_s15  ;;  %v2792_v11 = vpop.permute.xlu0 %2791  ;;  %v2881_v0 = vsel %vm1270_vm3, %v8432_v61, %v8431_v1 }
 0x45e   : > { %v3101_v35 = vsel %vm1501_vm10, %v3069_v51, %v2792_v11 }
 0x45f   : > { %v2704_v29 = vpop.permute.xlu1 %2703  ;;  %2450 = vrot.lane.b32.xlu0 %v8429_v23, %s4077_s13  ;;  %3868 = vmatprep.mubr.msk.f32.mxu1 %vm1546_vm11, %v3101_v35 }
 0x460   : > { %v3070_v25 = vsel %vm1468_vm9, %v3038_v32, %v2704_v29  ;;  %v8434_v32 = vld [vmem:[#allocation82_spill] sm:$0xff]  ;;  %v8435_v29 = vld [vmem:[#allocation147_spill] sm:$0xff] }
 0x461   : > { %2729 = vrot.lane.b32.xlu1 %v8429_v23, %s4080_s16  ;;  %v2794_v41 = vpop.permute.xlu0 %2793  ;;  %v2911_v23 = vsel %vm1303_vm5, %v2881_v0, %v6627_v36 }
 0x462   : > { %v3102_v28 = vsel %vm1501_vm10, %v3070_v25, %v2794_v41  ;;  %v2943_v33 = vsel %vm1336_vm4, %v2911_v23, %v6782_v59  ;;  %v2882_v25 = vsel %vm1270_vm3, %v8435_v29, %v8434_v32  ;;  %v8436_v41 = vld [vmem:[#allocation21_spill] sm:$0xff] }
 0x463   : > { %v2520_v6 = vpop.permute.xlu1 %2519  ;;  %2819 = vrot.lane.b32.xlu0 %v8430_v31, %s4081_s25  ;;  %3869 = vmatmul.mubr.msk.f32.vlgmr.msra.gmra.mxu1 %vm1546_vm11, %v3102_v28  ;;  %v2975_v11 = vsel %vm1369_vm6, %v2943_v33, %v2423_v48  ;;  %v2912_v36 = vsel %vm1303_vm5, %v2882_v25, %v6619_v57 }
 0x464   : > { %v3007_v17 = vsel %vm1402_vm7, %v2975_v11, %v2520_v6  ;;  %v2944_v48 = vsel %vm1336_vm4, %v2912_v36, %v6780_v60  ;;  %v8439_v11 = vld [vmem:[#allocation26_spill] sm:$0xff]  ;;  %v8440_v36 = vld [vmem:[#allocation81_spill] sm:$0xff] }
 0x465   : > { %2731 = vrot.lane.b32.xlu1 %v8433_v26, %s4080_s16  ;;  %v2616_v14 = vpop.permute.xlu0 %2615  ;;  %v2976_v6 = vsel %vm1369_vm6, %v2944_v48, %v6904_v50  ;;  %v8437_v50 = vld [vmem:[#allocation120_spill] sm:$0xff] }
 0x466   : > { %v3039_v28 = vsel %vm1435_vm8, %v3007_v17, %v2616_v14  ;;  %v2883_v17 = vsel %vm1270_vm3, %v6418_v47, %v8439_v11  ;;  %v8441_v47 = vld [vmem:[#allocation139_spill] sm:$0xff]  ;;  %v8445_v11 = vld [vmem:[#allocation153_spill] sm:$0xff] }
 0x467   : > { %v2522_v51 = vpop.permute.xlu1 %2521  ;;  %2547 = vrot.lane.b32.xlu0 %v8430_v31, %s4078_s14  ;;  %v2913_v32 = vsel %vm1303_vm5, %v2883_v17, %v6642_v39 }
 0x468   : > { %v3008_v57 = vsel %vm1402_vm7, %v2976_v6, %v2522_v51  ;;  %v8438_v51 = vld [vmem:[#allocation15_spill] sm:$0xff]  ;;  %v2945_v29 = vsel %vm1336_vm4, %v2913_v32, %v6790_v2 }
 0x469   : > { %2452 = vrot.lane.b32.xlu1 %v8433_v26, %s4077_s13  ;;  %v2706_v35 = vpop.permute.xlu0 %2705 }
 0x46a   : > { %v3071_v31 = vsel %vm1468_vm9, %v3039_v28, %v2706_v35  ;;  %v8442_v28 = vld [vmem:[#allocation146_spill] sm:$0xff] }
 0x46b   : > { %v2618_v59 = vpop.permute.xlu1 %2617  ;;  %2549 = vrot.lane.b32.xlu0 %v8436_v41, %s4078_s14  ;;  %v2884_v39 = vsel %vm1270_vm3, %v6410_v55, %v8442_v28 }
 0x46c   : > { %v3040_v0 = vsel %vm1435_vm8, %v3008_v57, %v2618_v59  ;;  %v2977_v59 = vsel %vm1369_vm6, %v2945_v29, %v6912_v9  ;;  %v2914_v2 = vsel %vm1303_vm5, %v2884_v39, %v6635_v24 }
 0x46d   : > { %2821 = vrot.lane.b32.xlu1 %v8436_v41, %s4081_s25  ;;  %v2796_v1 = vpop.permute.xlu0 %2795  ;;  %v2946_v9 = vsel %vm1336_vm4, %v2914_v2, %v6788_v56  ;;  %v8443_v56 = vld [vmem:[#allocation80_spill] sm:$0xff] }
 0x46e   : > { %v3103_v61 = vsel %vm1501_vm10, %v3071_v31, %v2796_v1  ;;  %v2978_v1 = vsel %vm1369_vm6, %v2946_v9, %v6910_v16 }
 0x46f   : > { %v2708_v26 = vpop.permute.xlu1 %2707  ;;  %2645 = vrot.lane.b32.xlu0 %v6538_v4, %s4079_s15  ;;  %3871 = vmatprep.mubr.msk.f32.mxu1 %vm1546_vm11, %v3103_v61 }
 0x470   : > { %v3072_v60 = vsel %vm1468_vm9, %v3040_v0, %v2708_v26 }
 0x471   : > { %2643 = vrot.lane.b32.xlu1 %v8437_v50, %s4079_s15  ;;  %v2798_v14 = vpop.permute.xlu0 %2797 }
 0x472   : > { %v3104_v23 = vsel %vm1501_vm10, %v3072_v60, %v2798_v14 }
 0x473   : > { %v2524_v33 = vpop.permute.xlu1 %2523  ;;  %2454 = vrot.lane.b32.xlu0 %v8438_v51, %s4077_s13  ;;  %3872 = vmatmul.mubr.msk.f32.gmra.mxu1 %vm1546_vm11, %v3104_v23 }
 0x474   : > { %v3009_v41 = vsel %vm1402_vm7, %v2977_v59, %v2524_v33  ;;  %v8444_v33 = vld [vmem:[#allocation36_spill] sm:$0xff] }
 0x475   : > { %2733 = vrot.lane.b32.xlu1 %v8438_v51, %s4080_s16  ;;  %v2620_v35 = vpop.permute.xlu0 %2619  ;;  %v2885_v51 = vsel %vm1270_vm3, %v6434_v40, %v8444_v33 }
 0x476   : > { %v3041_v31 = vsel %vm1435_vm8, %v3009_v41, %v2620_v35  ;;  %v2915_v35 = vsel %vm1303_vm5, %v2885_v51, %v6653_v54  ;;  %v8447_v41 = vld [vmem:[#allocation29_spill] sm:$0xff]  ;;  %v8453_v51 = vld [vmem:[#allocation84_spill] sm:$0xff] }
 0x477   : > { %v2526_v25 = vpop.permute.xlu1 %2525  ;;  %2823 = vrot.lane.b32.xlu0 %v8440_v36, %s4081_s25  ;;  %v2947_v32 = vsel %vm1336_vm4, %v2915_v35, %v6798_v18  ;;  %v2886_v54 = vsel %vm1270_vm3, %v6426_v21, %v8447_v41  ;;  %v8454_v35 = vld [vmem:[#allocation171_spill] sm:$0xff]  ;;  %v8456_v41 = vld [vmem:[#allocation24_spill] sm:$0xff] }
 0x478   : > { %v3010_v24 = vsel %vm1402_vm7, %v2978_v1, %v2526_v25  ;;  %v8446_v25 = vld [vmem:[#allocation18_spill] sm:$0xff]  ;;  %v2916_v18 = vsel %vm1303_vm5, %v2886_v54, %v6649_v58 }
 0x479   : > { %2735 = vrot.lane.b32.xlu1 %v8441_v47, %s4080_s16  ;;  %v2710_v48 = vpop.permute.xlu0 %2709 }
 0x47a   : > { %v3073_v57 = vsel %vm1468_vm9, %v3041_v31, %v2710_v48  ;;  %v8448_v48 = vld [vmem:[#allocation113_spill] sm:$0xff] }
 0x47b   : > { %v2622_v6 = vpop.permute.xlu1 %2621  ;;  %2551 = vrot.lane.b32.xlu0 %v8440_v36, %s4078_s14  ;;  %v2979_v36 = vsel %vm1369_vm6, %v2947_v32, %v6920_v30  ;;  %v2948_v30 = vsel %vm1336_vm4, %v2916_v18, %v6796_v44 }
 0x47c   : > { %v3042_v0 = vsel %vm1435_vm8, %v3010_v24, %v2622_v6  ;;  %v2980_v39 = vsel %vm1369_vm6, %v2948_v30, %v6918_v8  ;;  %v8449_v6 = vld [vmem:[#allocation23_spill] sm:$0xff]  ;;  %v8450_v24 = vld [vmem:[#allocation112_spill] sm:$0xff] }
 0x47d   : > { %2456 = vrot.lane.b32.xlu1 %v8441_v47, %s4077_s13  ;;  %v2800_v55 = vpop.permute.xlu0 %2799 }
 0x47e   : > { %v3105_v61 = vsel %vm1501_vm10, %v3073_v57, %v2800_v55 }
 0x47f   : > { %v2712_v26 = vpop.permute.xlu1 %2711  ;;  %2553 = vrot.lane.b32.xlu0 %v8443_v56, %s4078_s14  ;;  %3874 = vmatprep.mubr.msk.f32.mxu1 %vm1546_vm11, %v3105_v61  ;;  %v8451_v61 = vld [vmem:[#allocation85_spill] sm:$0xff] }
 0x480   : > { %v3074_v16 = vsel %vm1468_vm9, %v3042_v0, %v2712_v26  ;;  %v2887_v0 = vsel %vm1270_vm3, %v6450_v62, %v8451_v61  ;;  %v8452_v62 = vld [vmem:[#allocation41_spill] sm:$0xff] }
 0x481   : > { %2825 = vrot.lane.b32.xlu1 %v8443_v56, %s4081_s25  ;;  %v2802_v60 = vpop.permute.xlu0 %2801  ;;  %v2917_v56 = vsel %vm1303_vm5, %v2887_v0, %v6661_v7  ;;  %v2888_v7 = vsel %vm1270_vm3, %v6442_v53, %v8453_v51  ;;  %v8463_v51 = vld [vmem:[#allocation149_spill] sm:$0xff] }
 0x482   : > { %v3106_v14 = vsel %vm1501_vm10, %v3074_v16, %v2802_v60  ;;  %v2949_v16 = vsel %vm1336_vm4, %v2917_v56, %v6806_v15  ;;  %v2918_v15 = vsel %vm1303_vm5, %v2888_v7, %v6657_v46  ;;  %v8461_v56 = vld [vmem:[#allocation31_spill] sm:$0xff]  ;;  %v2891_v7 = vsel %vm1270_vm3, %v6482_v19, %v8463_v51  ;;  %v8482_v51 = vld [vmem:[#allocation45_spill] sm:$0xff] }
 0x483   : > { %v2528_v23 = vpop.permute.xlu1 %2527  ;;  %2649 = vrot.lane.b32.xlu0 %v6554_v3, %s4079_s15  ;;  %3875 = vmatmul.mubr.msk.f32.gmra.mxu1 %vm1546_vm11, %v3106_v14  ;;  %v2981_v14 = vsel %vm1369_vm6, %v2949_v16, %v6928_v10  ;;  %v2950_v10 = vsel %vm1336_vm4, %v2918_v15, %v6804_v42  ;;  %v8455_v42 = vld [vmem:[#allocation145_spill] sm:$0xff]  ;;  %v2921_v15 = vsel %vm1303_vm5, %v2891_v7, %v6677_v49  ;;  %v8467_v49 = vld [vmem:[#allocation123_spill] sm:$0xff] }
 0x484   : > { %v3011_v59 = vsel %vm1402_vm7, %v2979_v36, %v2528_v23 }
 0x485   : > { %2647 = vrot.lane.b32.xlu1 %v8445_v11, %s4079_s15  ;;  %v2624_v17 = vpop.permute.xlu0 %2623 }
 0x486   : > { %v3043_v28 = vsel %vm1435_vm8, %v3011_v59, %v2624_v17 }
 0x487   : > { %v2530_v29 = vpop.permute.xlu1 %2529  ;;  %2458 = vrot.lane.b32.xlu0 %v8446_v25, %s4077_s13 }
 0x488   : > { %v3012_v58 = vsel %vm1402_vm7, %v2980_v39, %v2530_v29  ;;  %v2982_v29 = vsel %vm1369_vm6, %v2950_v10, %v6926_v34  ;;  %v8465_v10 = vld [vmem:[#allocation5_spill] sm:$0xff] }
 0x489   : > { %2737 = vrot.lane.b32.xlu1 %v8446_v25, %s4080_s16  ;;  %v2714_v40 = vpop.permute.xlu0 %2713 }
 0x48a   : > { %v3075_v2 = vsel %vm1468_vm9, %v3043_v28, %v2714_v40 }
 0x48b   : > { %v2626_v47 = vpop.permute.xlu1 %2625  ;;  %2827 = vrot.lane.b32.xlu0 %v8448_v48, %s4081_s25 }
 0x48c   : > { %v3044_v31 = vsel %vm1435_vm8, %v3012_v58, %v2626_v47 }
 0x48d   : > { %2739 = vrot.lane.b32.xlu1 %v8449_v6, %s4080_s16  ;;  %v2804_v21 = vpop.permute.xlu0 %2803 }
 0x48e   : > { %v3107_v9 = vsel %vm1501_vm10, %v3075_v2, %v2804_v21  ;;  %v8458_v21 = vld [vmem:[#allocation144_spill] sm:$0xff] }
 0x48f   : > { %v2716_v1 = vpop.permute.xlu1 %2715  ;;  %2555 = vrot.lane.b32.xlu0 %v8448_v48, %s4078_s14  ;;  %3877 = vmatprep.mubr.msk.f32.mxu1 %vm1546_vm11, %v3107_v9  ;;  %v8457_v48 = vld [vmem:[#allocation117_spill] sm:$0xff] }
 0x490   : > { %v3076_v44 = vsel %vm1468_vm9, %v3044_v31, %v2716_v1  ;;  %v2889_v30 = vsel %vm1270_vm3, %v6466_v13, %v8457_v48  ;;  %v8471_v48 = vld [vmem:[#allocation111_spill] sm:$0xff] }
 0x491   : > { %2460 = vrot.lane.b32.xlu1 %v8449_v6, %s4077_s13  ;;  %v2806_v8 = vpop.permute.xlu0 %2805  ;;  %v2919_v39 = vsel %vm1303_vm5, %v2889_v30, %v6669_v27  ;;  %v8472_v30 = vld [vmem:[#allocation93_spill] sm:$0xff] }
 0x492   : > { %v3108_v57 = vsel %vm1501_vm10, %v3076_v44, %v2806_v8  ;;  %v2951_v2 = vsel %vm1336_vm4, %v2919_v39, %v6814_v22  ;;  %v8459_v8 = vld [vmem:[#allocation78_spill] sm:$0xff]  ;;  %v8473_v39 = vld [vmem:[#allocation13_spill] sm:$0xff] }
 0x493   : > { %v2532_v55 = vpop.permute.xlu1 %2531  ;;  %2557 = vrot.lane.b32.xlu0 %v8450_v24, %s4078_s14  ;;  %3878 = vmatmul.mubr.msk.f32.gmra.mxu1 %vm1546_vm11, %v3108_v57  ;;  %v2983_v58 = vsel %vm1369_vm6, %v2951_v2, %v6936_v20  ;;  %v8460_v57 = vld [vmem:[#allocation116_spill] sm:$0xff] }
 0x494   : > { %v3013_v23 = vsel %vm1402_vm7, %v2981_v14, %v2532_v55  ;;  %v2890_v55 = vsel %vm1270_vm3, %v6458_v5, %v8460_v57  ;;  %v8462_v5 = vld [vmem:[#allocation77_spill] sm:$0xff] }
 0x495   : > { %2829 = vrot.lane.b32.xlu1 %v8450_v24, %s4081_s25  ;;  %v2628_v26 = vpop.permute.xlu0 %2627  ;;  %v2920_v61 = vsel %vm1303_vm5, %v2890_v55, %v6665_v52  ;;  %v8476_v57 = vld [vmem:[#allocation33_spill] sm:$0xff]  ;;  %v8477_v55 = vld [vmem:[#allocation118_spill] sm:$0xff] }
 0x496   : > { %v3045_v32 = vsel %vm1435_vm8, %v3013_v23, %v2628_v26  ;;  %v2952_v0 = vsel %vm1336_vm4, %v2920_v61, %v6812_v43  ;;  %v8478_v61 = vld [vmem:[#allocation125_spill] sm:$0xff] }
 0x497   : > { %v2534_v60 = vpop.permute.xlu1 %2533  ;;  %2653 = vrot.lane.b32.xlu0 %v6570_v12, %s4079_s15  ;;  %v2984_v16 = vsel %vm1369_vm6, %v2952_v0, %v6934_v37 }
 0x498   : > { %v3014_v46 = vsel %vm1402_vm7, %v2982_v29, %v2534_v60  ;;  %v8466_v29 = vld [vmem:[#allocation54_spill] sm:$0xff] }
 0x499   : > { %2651 = vrot.lane.b32.xlu1 %v8452_v62, %s4079_s15  ;;  %v2718_v33 = vpop.permute.xlu0 %2717 }
 0x49a   : > { %v3077_v25 = vsel %vm1468_vm9, %v3045_v32, %v2718_v33  ;;  %v2953_v32 = vsel %vm1336_vm4, %v2921_v15, %v8465_v10 }
 0x49b   : > { %v2630_v17 = vpop.permute.xlu1 %2629  ;;  %2462 = vrot.lane.b32.xlu0 %v8454_v35, %s4077_s13 }
 0x49c   : > { %v3046_v59 = vsel %vm1435_vm8, %v3014_v46, %v2630_v17 }
 0x49d   : > { %2741 = vrot.lane.b32.xlu1 %v8454_v35, %s4080_s16  ;;  %v2808_v53 = vpop.permute.xlu0 %2807  ;;  %v8464_v35 = vld [vmem:[#allocation22_spill] sm:$0xff] }
 0x49e   : > { %v3109_v36 = vsel %vm1501_vm10, %v3077_v25, %v2808_v53  ;;  %v2985_v25 = vsel %vm1369_vm6, %v2953_v32, %v8466_v29  ;;  %v8485_v29 = vld [vmem:[#allocation142_spill] sm:$0xff] }
 0x49f   : > { %v2720_v40 = vpop.permute.xlu1 %2719  ;;  %2831 = vrot.lane.b32.xlu0 %v8455_v42, %s4081_s25  ;;  %3880 = vmatprep.mubr.msk.f32.mxu1 %vm1546_vm11, %v3109_v36 }
 0x4a0   : > { %v3078_v34 = vsel %vm1468_vm9, %v3046_v59, %v2720_v40  ;;  %v8468_v40 = vld [vmem:[#allocation42_spill] sm:$0xff] }
 0x4a1   : > { %2743 = vrot.lane.b32.xlu1 %v8456_v41, %s4080_s16  ;;  %v2810_v54 = vpop.permute.xlu0 %2809 }
 0x4a2   : > { %v3110_v18 = vsel %vm1501_vm10, %v3078_v34, %v2810_v54  ;;  %v8470_v54 = vld [vmem:[#allocation39_spill] sm:$0xff] }
 0x4a3   : > { %v2536_v47 = vpop.permute.xlu1 %2535  ;;  %2559 = vrot.lane.b32.xlu0 %v8455_v42, %s4078_s14  ;;  %3881 = vmatmul.mubr.msk.f32.gmra.mxu1 %vm1546_vm11, %v3110_v18 }
 0x4a4   : > { %v3015_v9 = vsel %vm1402_vm7, %v2983_v58, %v2536_v47 }
 0x4a5   : > { %2464 = vrot.lane.b32.xlu1 %v8456_v41, %s4077_s13  ;;  %v2632_v28 = vpop.permute.xlu0 %2631  ;;  %v8469_v41 = vld [vmem:[#allocation148_spill] sm:$0xff] }
 0x4a6   : > { %v3047_v27 = vsel %vm1435_vm8, %v3015_v9, %v2632_v28  ;;  %v2892_v18 = vsel %vm1270_vm3, %v8470_v54, %v8469_v41  ;;  %v8474_v9 = vld [vmem:[#allocation32_spill] sm:$0xff]  ;;  %v8489_v54 = vld [vmem:[#allocation141_spill] sm:$0xff] }
 0x4a7   : > { %v2538_v6 = vpop.permute.xlu1 %2537  ;;  %2561 = vrot.lane.b32.xlu0 %v8458_v21, %s4078_s14  ;;  %v2922_v28 = vsel %vm1303_vm5, %v2892_v18, %v8472_v30 }
 0x4a8   : > { %v3016_v60 = vsel %vm1402_vm7, %v2984_v16, %v2538_v6  ;;  %v2954_v2 = vsel %vm1336_vm4, %v2922_v28, %v8473_v39  ;;  %v8480_v16 = vld [vmem:[#allocation159_spill] sm:$0xff] }
 0x4a9   : > { %2833 = vrot.lane.b32.xlu1 %v8458_v21, %s4081_s25  ;;  %v2722_v13 = vpop.permute.xlu0 %2721 }
 0x4aa   : > { %v3079_v22 = vsel %vm1468_vm9, %v3047_v27, %v2722_v13 }
 0x4ab   : > { %v2634_v31 = vpop.permute.xlu1 %2633  ;;  %2657 = vrot.lane.b32.xlu0 %v6587_v63, %s4079_s15 }
 0x4ac   : > { %v3048_v23 = vsel %vm1435_vm8, %v3016_v60, %v2634_v31  ;;  %v8475_v31 = vld [vmem:[#allocation110_spill] sm:$0xff] }
 0x4ad   : > { %2655 = vrot.lane.b32.xlu1 %v6596_v38, %s4079_s15  ;;  %v2812_v1 = vpop.permute.xlu0 %2811 }
 0x4ae   : > { %v3111_v20 = vsel %vm1501_vm10, %v3079_v22, %v2812_v1 }
 0x4af   : > { %v2724_v44 = vpop.permute.xlu1 %2723  ;;  %2466 = vrot.lane.b32.xlu0 %v8459_v8, %s4077_s13  ;;  %3883 = vmatprep.mubr.msk.f32.mxu1 %vm1546_vm11, %v3111_v20 }
 0x4b0   : > { %v3080_v52 = vsel %vm1468_vm9, %v3048_v23, %v2724_v44 }
 0x4b1   : > { %2745 = vrot.lane.b32.xlu1 %v8459_v8, %s4080_s16  ;;  %v2540_v24 = vpop.permute.xlu0 %2539 }
 0x4b2   : > { %v3017_v46 = vsel %vm1402_vm7, %v2985_v25, %v2540_v24  ;;  %v2893_v24 = vsel %vm1270_vm3, %v8477_v55, %v8476_v57  ;;  %v8486_v25 = vld [vmem:[#allocation124_spill] sm:$0xff] }
 0x4b3   : > { %v2445_v26 = vpop.permute.xlu1 %2444  ;;  %2835 = vrot.lane.b32.xlu0 %v8461_v56, %s4081_s25  ;;  %v2923_v0 = vsel %vm1303_vm5, %v2893_v24, %v8478_v61  ;;  %v8495_v55 = vld [vmem:[#allocation52_spill] sm:$0xff] }
 0x4b4   : > { %v2986_v21 = vsel %vm1369_vm6, %v2954_v2, %v2445_v26  ;;  %v2955_v60 = vsel %vm1336_vm4, %v2923_v0, %v8480_v16  ;;  %v8490_v2 = vld [vmem:[#allocation87_spill] sm:$0xff]  ;;  %v8496_v61 = vld [vmem:[#allocation92_spill] sm:$0xff] }
 0x4b5   : > { %2747 = vrot.lane.b32.xlu1 %v8462_v5, %s4080_s16  ;;  %v2542_v14 = vpop.permute.xlu0 %2541 }
 0x4b6   : > { %v3018_v13 = vsel %vm1402_vm7, %v2986_v21, %v2542_v14 }
 0x4b7   : > { %v2814_v33 = vpop.permute.xlu1 %2813  ;;  %2563 = vrot.lane.b32.xlu0 %v8461_v56, %s4078_s14  ;;  %v8479_v56 = vld [vmem:[#allocation25_spill] sm:$0xff] }
 0x4b8   : > { %v3112_v43 = vsel %vm1501_vm10, %v3080_v52, %v2814_v33 }
 0x4b9   : > { %2468 = vrot.lane.b32.xlu1 %v8462_v5, %s4077_s13  ;;  %v2638_v37 = vpop.permute.xlu0 %2637  ;;  %3884 = vmatmul.mubr.msk.f32.gmra.mxu1 %vm1546_vm11, %v3112_v43  ;;  %v8481_v43 = vld [vmem:[#allocation51_spill] sm:$0xff] }
 0x4ba   : > { %v3050_v22 = vsel %vm1435_vm8, %v3018_v13, %v2638_v37 }
 0x4bb   : > { %v2636_v17 = vpop.permute.xlu1 %2635  ;;  %2565 = vrot.lane.b32.xlu0 %v8464_v35, %s4078_s14 }
 0x4bc   : > { %v3049_v19 = vsel %vm1435_vm8, %v3017_v46, %v2636_v17  ;;  %v8483_v17 = vld [vmem:[#allocation30_spill] sm:$0xff] }
 0x4bd   : > { %2837 = vrot.lane.b32.xlu1 %v8464_v35, %s4081_s25  ;;  %v2447_v53 = vpop.permute.xlu0 %2446  ;;  %v8484_v35 = vld [vmem:[#allocation86_spill] sm:$0xff] }
 0x4be   : > { %v2987_v5 = vsel %vm1369_vm6, %v2955_v60, %v2447_v53  ;;  %v2894_v10 = vsel %vm1270_vm3, %v8484_v35, %v8483_v17  ;;  %v8487_v46 = vld [vmem:[#allocation158_spill] sm:$0xff]  ;;  %v8498_v60 = vld [vmem:[#allocation40_spill] sm:$0xff] }
 0x4bf   : > { %v2726_v36 = vpop.permute.xlu1 %2725  ;;  %2661 = vrot.lane.b32.xlu0 %v8467_v49, %s4079_s15  ;;  %v2924_v53 = vsel %vm1303_vm5, %v2894_v10, %v8486_v25 }
 0x4c0   : > { %v3081_v59 = vsel %vm1468_vm9, %v3049_v19, %v2726_v36  ;;  %v2956_v19 = vsel %vm1336_vm4, %v2924_v53, %v8487_v46 }
 0x4c1   : > { %2659 = vrot.lane.b32.xlu1 %v8468_v40, %s4079_s15  ;;  %v2816_v42 = vpop.permute.xlu0 %2815 }
 0x4c2   : > { %v3113_v34 = vsel %vm1501_vm10, %v3081_v59, %v2816_v42 }
 0x4c3   : > { %v2728_v47 = vpop.permute.xlu1 %2727  ;;  %2470 = vrot.lane.b32.xlu0 %v8471_v48, %s4077_s13  ;;  %3886 = vmatprep.mubr.msk.f32.mxu1 %vm1546_vm11, %v3113_v34  ;;  %v8488_v34 = vld [vmem:[#allocation115_spill] sm:$0xff] }
 0x4c4   : > { %v3082_v1 = vsel %vm1468_vm9, %v3050_v22, %v2728_v47 }
 0x4c5   : > { %2749 = vrot.lane.b32.xlu1 %v8471_v48, %s4080_s16  ;;  %v2544_v6 = vpop.permute.xlu0 %2543 }
 0x4c6   : > { %v3019_v23 = vsel %vm1402_vm7, %v2987_v5, %v2544_v6  ;;  %v8491_v6 = vld [vmem:[#allocation34_spill] sm:$0xff] }
 0x4c7   : > { %v2449_v58 = vpop.permute.xlu1 %2448  ;;  %2839 = vrot.lane.b32.xlu0 %v8474_v9, %s4081_s25  ;;  %v2895_v21 = vsel %vm1270_vm3, %v8491_v6, %v8490_v2  ;;  %v8499_v5 = vld [vmem:[#allocation150_spill] sm:$0xff] }
 0x4c8   : > { %v2988_v59 = vsel %vm1369_vm6, %v2956_v19, %v2449_v58  ;;  %v8492_v58 = vld [vmem:[#allocation140_spill] sm:$0xff] }
 0x4c9   : > { %2751 = vrot.lane.b32.xlu1 %v8475_v31, %s4080_s16  ;;  %v2546_v27 = vpop.permute.xlu0 %2545 }
 0x4ca   : > { %v3020_v41 = vsel %vm1402_vm7, %v2988_v59, %v2546_v27  ;;  %v8494_v27 = vld [vmem:[#allocation59_spill] sm:$0xff] }
 0x4cb   : > { %v2818_v20 = vpop.permute.xlu1 %2817  ;;  %2567 = vrot.lane.b32.xlu0 %v8474_v9, %s4078_s14  ;;  %v2925_v9 = vsel %vm1303_vm5, %v2895_v21, %v8492_v58 }
 0x4cc   : > { %v3114_v44 = vsel %vm1501_vm10, %v3082_v1, %v2818_v20  ;;  %v2957_v22 = vsel %vm1336_vm4, %v2925_v9, %v8494_v27  ;;  %v8507_v27 = vld [vmem:[#allocation37_spill] sm:$0xff] }
 0x4cd   : > { %2472 = vrot.lane.b32.xlu1 %v8475_v31, %s4077_s13  ;;  %v2642_v8 = vpop.permute.xlu0 %2641  ;;  %3887 = vmatmul.mubr.msk.f32.gmra.mxu1 %vm1546_vm11, %v3114_v44  ;;  %v8493_v31 = vld [vmem:[#allocation83_spill] sm:$0xff] }
 0x4ce   : > { %v3052_v47 = vsel %vm1435_vm8, %v3020_v41, %v2642_v8 }
 0x4cf   : > { %v2640_v26 = vpop.permute.xlu1 %2639  ;;  %2569 = vrot.lane.b32.xlu0 %v8479_v56, %s4078_s14 }
 0x4d0   : > { %v3051_v52 = vsel %vm1435_vm8, %v3019_v23, %v2640_v26 }
 0x4d1   : > { %2841 = vrot.lane.b32.xlu1 %v8479_v56, %s4081_s25  ;;  %v2451_v14 = vpop.permute.xlu0 %2450  ;;  %v8497_v56 = vld [vmem:[#allocation122_spill] sm:$0xff] }
 0x4d2   : > { %v2989_v1 = vsel %vm1369_vm6, %v2957_v22, %v2451_v14  ;;  %v2106_v16 = vrot.slane %v8497_v56, 1  ;;  %v2896_v14 = vsel %vm1270_vm3, %v8499_v5, %v8498_v60 }
 0x4d3   : > { %v2730_v33 = vpop.permute.xlu1 %2729  ;;  %2665 = vrot.lane.b32.xlu0 %v8481_v43, %s4079_s15 }
 0x4d4   : > { %v3083_v37 = vsel %vm1468_vm9, %v3051_v52, %v2730_v33  ;;  %v8500_v52 = vld [vmem:[#allocation14_spill] sm:$0xff] }
 0x4d5   : > { %2663 = vrot.lane.b32.xlu1 %v8482_v51, %s4079_s15  ;;  %v2820_v7 = vpop.permute.xlu0 %2819  ;;  %v2926_v33 = vsel %vm1303_vm5, %v2896_v14, %v8500_v52 }
 0x4d6   : > { %v3115_v15 = vsel %vm1501_vm10, %v3083_v37, %v2820_v7  ;;  %v8501_v37 = vld [vmem:[#allocation155_spill] sm:$0xff] }
 0x4d7   : > { %v2732_v32 = vpop.permute.xlu1 %2731  ;;  %2474 = vrot.lane.b32.xlu0 %v8485_v29, %s4077_s13  ;;  %3889 = vmatprep.mubr.msk.f32.mxu1 %vm1546_vm11, %v3115_v15  ;;  %v2107_v7 = vrot.slane %v8501_v37, 1  ;;  %v8502_v15 = vld [vmem:[#allocation50_spill] sm:$0xff] }
 0x4d8   : > { %v3084_v48 = vsel %vm1468_vm9, %v3052_v47, %v2732_v32  ;;  %v2958_v17 = vsel %vm1336_vm4, %v2926_v33, %v8502_v15  ;;  %v8511_v33 = vld [vmem:[#allocation55_spill] sm:$0xff] }
 0x4d9   : > { %2753 = vrot.lane.b32.xlu1 %v8485_v29, %s4080_s16  ;;  %v2548_v36 = vpop.permute.xlu0 %2547  ;;  %v2108_v32 = vsel %vm382_vm0, %v2106_v16, %v2107_v7  ;;  %v8512_v15 = vld [vmem:[#allocation175_spill] sm:$0xff] }
 0x4da   : > { %v3021_v44 = vsel %vm1402_vm7, %v2989_v1, %v2548_v36 }
 0x4db   : > { %v2453_v42 = vpop.permute.xlu1 %2452  ;;  %2843 = vrot.lane.b32.xlu0 %v8488_v34, %s4081_s25 }
 0x4dc   : > { %v2990_v10 = vsel %vm1369_vm6, %v2958_v17, %v2453_v42 }
 0x4dd   : > { %2755 = vrot.lane.b32.xlu1 %v8489_v54, %s4080_s16  ;;  %v2550_v18 = vpop.permute.xlu0 %2549 }
 0x4de   : > { %v3022_v25 = vsel %vm1402_vm7, %v2990_v10, %v2550_v18  ;;  %v8504_v18 = vld [vmem:[#allocation157_spill] sm:$0xff] }
 0x4df   : > { %v2822_v30 = vpop.permute.xlu1 %2821  ;;  %2571 = vrot.lane.b32.xlu0 %v8488_v34, %s4078_s14  ;;  %v8503_v34 = vld [vmem:[#allocation151_spill] sm:$0xff] }
 0x4e0   : > { %v3116_v28 = vsel %vm1501_vm10, %v3084_v48, %v2822_v30  ;;  %v2897_v41 = vsel %vm1270_vm3, %v6530_v45, %v8503_v34  ;;  %v8505_v30 = vld [vmem:[#allocation60_spill] sm:$0xff] }
 0x4e1   : > { %2476 = vrot.lane.b32.xlu1 %v8489_v54, %s4077_s13  ;;  %v2646_v39 = vpop.permute.xlu0 %2645  ;;  %3890 = vmatmul.mubr.msk.f32.gmra.mxu1 %vm1546_vm11, %v3116_v28  ;;  %v2110_v54 = vsel %vm382_vm0, %v2107_v7, 0.0  ;;  %v2927_v47 = vsel %vm1303_vm5, %v2897_v41, %v8504_v18  ;;  %v8515_v41 = vld [vmem:[#allocation174_spill] sm:$0xff] }
 0x4e2   : > { %v3054_v46 = vsel %vm1435_vm8, %v3022_v25, %v2646_v39  ;;  %v2959_v28 = vsel %vm1336_vm4, %v2927_v47, %v8505_v30 }
 0x4e3   : > { %v2644_v13 = vpop.permute.xlu1 %2643  ;;  %2573 = vrot.lane.b32.xlu0 %v8493_v31, %s4078_s14 }
 0x4e4   : > { %v3053_v8 = vsel %vm1435_vm8, %v3021_v44, %v2644_v13 }
 0x4e5   : > { %2845 = vrot.lane.b32.xlu1 %v8493_v31, %s4081_s25  ;;  %v2455_v20 = vpop.permute.xlu0 %2454  ;;  %v8506_v31 = vld [vmem:[#allocation119_spill] sm:$0xff] }
 0x4e6   : > { %v2991_v39 = vsel %vm1369_vm6, %v2959_v28, %v2455_v20  ;;  %v2898_v22 = vsel %vm1270_vm3, %v8507_v27, %v8506_v31  ;;  %v8508_v20 = vld [vmem:[#allocation156_spill] sm:$0xff]  ;;  %v8518_v27 = vld [vmem:[#allocation97_spill] sm:$0xff] }
 0x4e7   : > { %v2734_v57 = vpop.permute.xlu1 %2733  ;;  %2669 = vrot.lane.b32.xlu0 %v8495_v55, %s4079_s15  ;;  %v2928_v44 = vsel %vm1303_vm5, %v2898_v22, %v8508_v20 }
 0x4e8   : > { %v3085_v24 = vsel %vm1468_vm9, %v3053_v8, %v2734_v57  ;;  %v8509_v8 = vld [vmem:[#allocation53_spill] sm:$0xff] }
 0x4e9   : > { %2667 = vrot.lane.b32.xlu1 %v8496_v61, %s4079_s15  ;;  %v2824_v0 = vpop.permute.xlu0 %2823  ;;  %v2960_v57 = vsel %vm1336_vm4, %v2928_v44, %v8509_v8  ;;  %s215_s15 = sand.u32 1, %s4063_s19  }
 0x4ea   : > { %v3117_v26 = vsel %vm1501_vm10, %v3085_v24, %v2824_v0  ;;  %s3571_s9 = scalar_lea.sflag [#allocation3], %s215_s15 }
 0x4eb   : > { %v2736_v23 = vpop.permute.xlu1 %2735  ;;  %2478 = vrot.lane.b32.xlu0 %v8497_v56, %s4077_s13  ;;  %3892 = vmatprep.mubr.msk.f32.mxu1 %vm1546_vm11, %v3117_v26 }
 0x4ec   : > { %v3086_v19 = vsel %vm1468_vm9, %v3054_v46, %v2736_v23  ;;  %v8510_v23 = vld [vmem:[#allocation44_spill] sm:$0xff] }
 0x4ed   : > { %2757 = vrot.lane.b32.xlu1 %v8497_v56, %s4080_s16  ;;  %v2552_v35 = vpop.permute.xlu0 %2551  ;;  %v2899_v52 = vsel %vm1270_vm3, %v8437_v50, %v8510_v23 }
 0x4ee   : > { %v3023_v6 = vsel %vm1402_vm7, %v2991_v39, %v2552_v35 }
 0x4ef   : > { %v2457_v29 = vpop.permute.xlu1 %2456  ;;  %2847 = vrot.lane.b32.xlu0 %v2108_v32, %s4081_s25 }
 0x4f0   : > { %v2992_v24 = vsel %vm1369_vm6, %v2960_v57, %v2457_v29 }
 0x4f1   : > { %2759 = vrot.lane.b32.xlu1 %v8501_v37, %s4080_s16  ;;  %v2554_v53 = vpop.permute.xlu0 %2553  ;;  %s3648_s16 = sshll.u32 %s215_s15, 3 }
 0x4f2   : > { %v3024_v0 = vsel %vm1402_vm7, %v2992_v24, %v2554_v53  ;;  %s217_s30 = scalar_lea.vmem [#allocation2], %s3648_s16 }
 0x4f3   : > { %v2826_v36 = vpop.permute.xlu1 %2825  ;;  %2575 = vrot.lane.b32.xlu0 %v2108_v32, %s4078_s14  ;;  %s3585_s11 = sshll.u32 %s217_s30, 4  ;;  %s3586_s11 = int_to_ptr.vmem [resolvable:$true] %s3585_s11 }
 0x4f4   : > { %v3118_v59 = vsel %vm1501_vm10, %v3086_v19, %v2826_v36  ;;  %v8513_v19 = vld [vmem:[#allocation43_spill] sm:$0xff]  ;;  %s4011_s17 = scalar_lea.vmem %s3586_s11, 128 }
 0x4f5   : > { %2480 = vrot.lane.b32.xlu1 %v8501_v37, %s4077_s13  ;;  %v2650_v42 = vpop.permute.xlu0 %2649  ;;  %3893 = vmatmul.mubr.msk.f32.gmra.mxu1 %vm1546_vm11, %v3118_v59  ;;  %v2929_v37 = vsel %vm1303_vm5, %v2899_v52, %v8511_v33  ;;  %v2900_v36 = vsel %vm1270_vm3, %v6538_v4, %v8513_v19  ;;  %v3979_v33 = vld [vmem:[%s4172_s10] sm:$0xff]  ;;  %p4012_p11 = scmp.ne.s32.totalorder %s3586_s11, %s4011_s17 }
 0x4f6   : > { %v3056_v56 = vsel %vm1435_vm8, %v3024_v0, %v2650_v42  ;;  %v2961_v17 = vsel %vm1336_vm4, %v2929_v37, %v8512_v15  ;;  %v8514_v42 = vld [vmem:[#allocation46_spill] sm:$0xff] }
 0x4f7   : > { %v2648_v48 = vpop.permute.xlu1 %2647  ;;  %2577 = vrot.lane.b32.xlu0 %v2110_v54, %s4078_s14  ;;  %v2930_v34 = vsel %vm1303_vm5, %v2900_v36, %v8514_v42  ;;  %p4013_p12 = pnand %p4012_p11, %p4151_p5 }
 0x4f8   : > { %v3055_v45 = vsel %vm1435_vm8, %v3023_v6, %v2648_v48 }
 0x4f9   : > { %2849 = vrot.lane.b32.xlu1 %v2110_v54, %s4081_s25  ;;  %v2459_v2 = vpop.permute.xlu0 %2458  ;;  %v2962_v54 = vsel %vm1336_vm4, %v2930_v34, %v8515_v41  ;;  %v8523_v34 = vld [vmem:[#allocation173_spill] sm:$0xff]  ;;  %s3725_s25 = sshll.u32 %s4134_s22, 7  ;;  %p4014_p13 = pneg %p4013_p12 }
 0x4fa   : > { %v2993_v35 = vsel %vm1369_vm6, %v2961_v17, %v2459_v2  ;;  %s3583_s8 = scalar_lea.hbm %s7648_s5, %s3725_s25 }
 0x4fb   : > { %v2738_v21 = vpop.permute.xlu1 %2737 }
 0x4fc   : > { %v3087_v58 = vsel %vm1468_vm9, %v3055_v45, %v2738_v21  ;;  %v8516_v21 = vld [vmem:[#allocation89_spill] sm:$0xff] }
 0x4fd   : > { %v2828_v9 = vpop.permute.xlu0 %2827 }
 0x4fe   : > { %v3119_v13 = vsel %vm1501_vm10, %v3087_v58, %v2828_v9  ;;  %v2901_v58 = vsel %vm1270_vm3, %v8445_v11, %v8516_v21  ;;  %v8517_v9 = vld [vmem:[#allocation56_spill] sm:$0xff]  ;;  %v7414_v11 = vld [vmem:[%s7647_s4] ss:$0 sm:$0xff]  ;;  %v3981_v21 = vld [vmem:[%s4172_s10 + $0x10] sm:$0xff] }
 0x4ff   : > { %v2740_v1 = vpop.permute.xlu1 %2739  ;;  %3895 = vmatprep.mubr.msk.f32.mxu1 %vm1546_vm11, %v3119_v13  ;;  %v2931_v13 = vsel %vm1303_vm5, %v2901_v58, %v8517_v9 }
 0x500   : > { %v3088_v16 = vsel %vm1468_vm9, %v3056_v56, %v2740_v1  ;;  %v2963_v22 = vsel %vm1336_vm4, %v2931_v13, %v8518_v27  ;;  %v8525_v27 = vld [vmem:[#allocation121_spill] sm:$0xff] }
 0x501   : > { %v2556_v55 = vpop.permute.xlu0 %2555 }
 0x502   : > { %v3025_v32 = vsel %vm1402_vm7, %v2993_v35, %v2556_v55 }
 0x503   : > { %v2461_v61 = vpop.permute.xlu1 %2460 }
 0x504   : > { %v2994_v47 = vsel %vm1369_vm6, %v2962_v54, %v2461_v61 }
 0x505   : > { %v2558_v26 = vpop.permute.xlu0 %2557 }
 0x506   : > { %v3026_v30 = vsel %vm1402_vm7, %v2994_v47, %v2558_v26  ;;  %v8524_v47 = vld [vmem:[#allocation190_spill] sm:$0xff] }
 0x507   : > { %v2830_v60 = vpop.permute.xlu1 %2829 }
 0x508   : > { %v3120_v5 = vsel %vm1501_vm10, %v3088_v16, %v2830_v60  ;;  %v8519_v16 = vld [vmem:[#allocation88_spill] sm:$0xff] }
 0x509   : > { %v2654_v14 = vpop.permute.xlu0 %2653  ;;  %3896 = vmatmul.mubr.msk.f32.gmra.mxu1 %vm1546_vm11, %v3120_v5  ;;  %v2902_v60 = vsel %vm1270_vm3, %v6554_v3, %v8519_v16 }
 0x50a   : > { %v3058_v39 = vsel %vm1435_vm8, %v3026_v30, %v2654_v14  ;;  %v8520_v14 = vld [vmem:[#allocation49_spill] sm:$0xff] }
 0x50b   : > { %v2652_v7 = vpop.permute.xlu1 %2651  ;;  %v2932_v23 = vsel %vm1303_vm5, %v2902_v60, %v8520_v14 }
 0x50c   : > { %v3057_v29 = vsel %vm1435_vm8, %v3025_v32, %v2652_v7  ;;  %v8521_v7 = vld [vmem:[#allocation96_spill] sm:$0xff] }
 0x50d   : > { %v2463_v10 = vpop.permute.xlu0 %2462  ;;  %v2964_v15 = vsel %vm1336_vm4, %v2932_v23, %v8521_v7  ;;  %v3980_v32 = vld [vmem:[%s4172_s10 + $0x8] sm:$0xff] }
 0x50e   : > { %v2995_v1 = vsel %vm1369_vm6, %v2963_v22, %v2463_v10  ;;  %v2904_v22 = vsel %vm1270_vm3, %v6570_v12, %v8525_v27 }
 0x50f   : > { %v2742_v25 = vpop.permute.xlu1 %2741 }
 0x510   : > { %v3089_v53 = vsel %vm1468_vm9, %v3057_v29, %v2742_v25 }
 0x511   : > { %v2832_v46 = vpop.permute.xlu0 %2831 }
 0x512   : > { %v3121_v50 = vsel %vm1501_vm10, %v3089_v53, %v2832_v46 }
 0x513   : > { %v2744_v59 = vpop.permute.xlu1 %2743  ;;  %3898 = vmatprep.mubr.msk.f32.mxu1 %vm1546_vm11, %v3121_v50 }
 0x514   : > { %v3090_v4 = vsel %vm1468_vm9, %v3058_v39, %v2744_v59  ;;  %v8522_v59 = vld [vmem:[#allocation152_spill] sm:$0xff] }
 0x515   : > { %v2560_v18 = vpop.permute.xlu0 %2559  ;;  %v2903_v42 = vsel %vm1270_vm3, %v8452_v62, %v8522_v59  ;;  %v3984_v59 = vld [vmem:[%s4172_s10 + $0x28] sm:$0xff] }
 0x516   : > { %v3027_v44 = vsel %vm1402_vm7, %v2995_v1, %v2560_v18  ;;  %v2933_v41 = vsel %vm1303_vm5, %v2903_v42, %v8523_v34 }
 0x517   : > { %v2465_v48 = vpop.permute.xlu1 %2464 }
 0x518   : > { %v2996_v35 = vsel %vm1369_vm6, %v2964_v15, %v2465_v48  ;;  %v2965_v48 = vsel %vm1336_vm4, %v2933_v41, %v8524_v47 }
 0x519   : > { %v2562_v28 = vpop.permute.xlu0 %2561 }
 0x51a   : > { %v3028_v29 = vsel %vm1402_vm7, %v2996_v35, %v2562_v28 }
 0x51b   : > { %v2834_v2 = vpop.permute.xlu1 %2833 }
 0x51c   : > { %v3122_v6 = vsel %vm1501_vm10, %v3090_v4, %v2834_v2 }
 0x51d   : > { %v2658_v45 = vpop.permute.xlu0 %2657  ;;  %3899 = vmatmul.mubr.msk.f32.gmra.mxu1 %vm1546_vm11, %v3122_v6 }
 0x51e   : > { %v3060_v53 = vsel %vm1435_vm8, %v3028_v29, %v2658_v45 }
 0x51f   : > { %v2656_v31 = vpop.permute.xlu1 %2655 }
 0x520   : > { %v3059_v8 = vsel %vm1435_vm8, %v3027_v44, %v2656_v31 }
 0x521   : > { %v2467_v20 = vpop.permute.xlu0 %2466 }
 0x522   : > { %v2997_v30 = vsel %vm1369_vm6, %v2965_v48, %v2467_v20  ;;  %v8526_v20 = vld [vmem:[#allocation172_spill] sm:$0xff] }
 0x523   : > { %v2746_v57 = vpop.permute.xlu1 %2745  ;;  %v3870_v55 = vpop.f32.mrf.mxu1  ;;  %v2934_v44 = vsel %vm1303_vm5, %v2904_v22, %v8526_v20 }
 0x524   : > { %v3091_v24 = vsel %vm1468_vm9, %v3059_v8, %v2746_v57  ;;  %v3316_v52 = vadd.f32 %v3870_v55, %v7414_v11  ;;  %v3982_v8 = vld [vmem:[%s4172_s10 + $0x18] sm:$0xff]  ;;  %v8527_v55 = vld [vmem:[#allocation189_spill] sm:$0xff] }
 0x525   : > { %v3310_v61 = vpop.f32.mrf.mxu1  ;;  %v2836_v0 = vpop.permute.xlu0 %2835 }
 0x526   : > { %v3311_v26 = vadd.f32 %v7414_v11, %v3310_v61  ;;  %v3123_v56 = vsel %vm1501_vm10, %v3091_v24, %v2836_v0  ;;  %v3470_v3 = vadd.f32 %v3980_v32, %v3316_v52  ;;  %v2966_v24 = vsel %vm1336_vm4, %v2934_v44, %v8527_v55  ;;  %v8530_v32 = vld [vmem:[#allocation129_spill] sm:$0xff] }
 0x527   : > { %v2748_v5 = vpop.permute.xlu1 %2747  ;;  %3901 = vmatprep.mubr.msk.f32.mxu1 %vm1546_vm11, %v3123_v56 }
 0x528   : > { %v3469_v37 = vadd.f32 %v3979_v33, %v3311_v26  ;;  %v3092_v46 = vsel %vm1468_vm9, %v3060_v53, %v2748_v5 }
 0x529   : > { %v2564_v17 = vpop.permute.xlu0 %2563 }
 0x52a   : > { %3501 = vxpose.xlu1.b32.start [1/16] (narrow) %v3469_v37, 8  ;;  %v3029_v4 = vsel %vm1402_vm7, %v2997_v30, %v2564_v17  ;;  %v8528_v37 = vld [vmem:[#allocation47_spill] sm:$0xff]  ;;  %v8532_v30 = vld [vmem:[#allocation94_spill] sm:$0xff] }
 0x52b   : > { %v2469_v10 = vpop.permute.xlu1 %2468  ;;  %v2905_v7 = vsel %vm1270_vm3, %v6596_v38, %v8528_v37  ;;  %v8529_v17 = vld [vmem:[#allocation95_spill] sm:$0xff]  ;;  %v8537_v37 = vld [vmem:[#allocation154_spill] sm:$0xff] }
 0x52c   : > { %v2998_v0 = vsel %vm1369_vm6, %v2966_v24, %v2469_v10  ;;  %v2935_v35 = vsel %vm1303_vm5, %v2905_v7, %v8529_v17  ;;  %v8535_v24 = vld [vmem:[#allocation188_spill] sm:$0xff]  ;;  %v2909_v7 = vsel %vm1270_vm3, %v8482_v51, %v8537_v37 }
 0x52d   : > { %v2566_v25 = vpop.permute.xlu0 %2565  ;;  %v8538_v17 = vld [vmem:[#allocation48_spill] sm:$0xff] }
 0x52e   : > { %3502 = vxpose.xlu1.b32.cont [2/16] (narrow) %v3470_v3, 8  ;;  %v3030_v56 = vsel %vm1402_vm7, %v2998_v0, %v2566_v25  ;;  %v2967_v3 = vsel %vm1336_vm4, %v2935_v35, %v8530_v32  ;;  %v3983_v25 = vld [vmem:[%s4172_s10 + $0x20] sm:$0xff]  ;;  %v2908_v35 = vsel %vm1270_vm3, %v8467_v49, %v8538_v17 }
 0x52f   : > { %v2838_v50 = vpop.permute.xlu1 %2837  ;;  %v3991_v17 = vld [vmem:[%s4172_s10 + $0x60] sm:$0xff] }
 0x530   : > { %v3124_v19 = vsel %vm1501_vm10, %v3092_v46, %v2838_v50 }
 0x531   : > { %v2662_v36 = vpop.permute.xlu0 %2661  ;;  %3902 = vmatmul.mubr.msk.f32.gmra.mxu1 %vm1546_vm11, %v3124_v19 }
 0x532   : > { %v3062_v16 = vsel %vm1435_vm8, %v3030_v56, %v2662_v36 }
 0x533   : > { %v2660_v54 = vpop.permute.xlu1 %2659  ;;  %v3873_v18 = vpop.f32.mrf.mxu1 }
 0x534   : > { %v3061_v6 = vsel %vm1435_vm8, %v3029_v4, %v2660_v54  ;;  %v3326_v45 = vadd.f32 %v3873_v18, %v7414_v11  ;;  %v8531_v18 = vld [vmem:[#allocation38_spill] sm:$0xff] }
 0x535   : > { %v3320_v28 = vpop.f32.mrf.mxu1  ;;  %v2471_v39 = vpop.permute.xlu0 %2470  ;;  %v2906_v47 = vsel %vm1270_vm3, %v6587_v63, %v8531_v18 }
 0x536   : > { %v3321_v2 = vadd.f32 %v7414_v11, %v3320_v28  ;;  %v3472_v57 = vadd.f32 %v3982_v8, %v3326_v45  ;;  %v2999_v46 = vsel %vm1369_vm6, %v2967_v3, %v2471_v39  ;;  %v2936_v28 = vsel %vm1303_vm5, %v2906_v47, %v8532_v30  ;;  %v8533_v39 = vld [vmem:[#allocation128_spill] sm:$0xff] }
 0x537   : > { %v2750_v62 = vpop.permute.xlu1 %2749  ;;  %v2968_v4 = vsel %vm1336_vm4, %v2936_v28, %v8533_v39 }
 0x538   : > { %v3471_v58 = vadd.f32 %v3981_v21, %v3321_v2  ;;  %v3093_v9 = vsel %vm1468_vm9, %v3061_v6, %v2750_v62 }
 0x539   : > { %v2840_v13 = vpop.permute.xlu0 %2839 }
 0x53a   : > { %v3125_v31 = vsel %vm1501_vm10, %v3093_v9, %v2840_v13  ;;  %3503 = vxpose.xlu1.b32.cont [3/16] (narrow) %v3471_v58, 8 }
 0x53b   : > { %v2752_v1 = vpop.permute.xlu1 %2751  ;;  %3904 = vmatprep.mubr.msk.f32.mxu1 %vm1546_vm11, %v3125_v31 }
 0x53c   : > { %v3094_v60 = vsel %vm1468_vm9, %v3062_v16, %v2752_v1  ;;  %v3985_v1 = vld [vmem:[%s4172_s10 + $0x30] sm:$0xff] }
 0x53d   : > { %v2568_v61 = vpop.permute.xlu0 %2567 }
 0x53e   : > { %3504 = vxpose.xlu1.b32.cont [4/16] (narrow) %v3472_v57, 8  ;;  %v3031_v19 = vsel %vm1402_vm7, %v2999_v46, %v2568_v61  ;;  %v8534_v57 = vld [vmem:[#allocation90_spill] sm:$0xff]  ;;  %v8541_v46 = vld [vmem:[#allocation161_spill] sm:$0xff] }
 0x53f   : > { %v2473_v26 = vpop.permute.xlu1 %2472  ;;  %v2907_v55 = vsel %vm1270_vm3, %v8468_v40, %v8534_v57  ;;  %v3988_v57 = vld [vmem:[%s4172_s10 + $0x48] sm:$0xff] }
 0x540   : > { %v3000_v6 = vsel %vm1369_vm6, %v2968_v4, %v2473_v26  ;;  %v2937_v61 = vsel %vm1303_vm5, %v2907_v55, %v8535_v24  ;;  %v8536_v26 = vld [vmem:[#allocation197_spill] sm:$0xff] }
 0x541   : > { %v2570_v12 = vpop.permute.xlu0 %2569  ;;  %v2969_v56 = vsel %vm1336_vm4, %v2937_v61, %v8536_v26 }
 0x542   : > { %v3032_v21 = vsel %vm1402_vm7, %v3000_v6, %v2570_v12  ;;  %v3986_v12 = vld [vmem:[%s4172_s10 + $0x38] sm:$0xff]  ;;  %v3987_v6 = vld [vmem:[%s4172_s10 + $0x40] sm:$0xff] }
 0x543   : > { %v2842_v5 = vpop.permute.xlu1 %2841  ;;  %v3876_v14 = vpop.f32.mrf.mxu1 }
 0x544   : > { %v3126_v23 = vsel %vm1501_vm10, %v3094_v60, %v2842_v5  ;;  %v3336_v29 = vadd.f32 %v3876_v14, %v7414_v11 }
 0x545   : > { %v2666_v52 = vpop.permute.xlu0 %2665  ;;  %v3330_v33 = vpop.f32.mrf.mxu1  ;;  %3905 = vmatmul.mubr.msk.f32.gmra.mxu1 %vm1546_vm11, %v3126_v23 }
 0x546   : > { %v3331_v15 = vadd.f32 %v7414_v11, %v3330_v33  ;;  %v3474_v42 = vadd.f32 %v3984_v59, %v3336_v29  ;;  %v3064_v63 = vsel %vm1435_vm8, %v3032_v21, %v2666_v52 }
 0x547   : > { %v2664_v10 = vpop.permute.xlu1 %2663 }
 0x548   : > { %v3473_v53 = vadd.f32 %v3983_v25, %v3331_v15  ;;  %v3063_v38 = vsel %vm1435_vm8, %v3031_v19, %v2664_v10  ;;  %v8539_v10 = vld [vmem:[#allocation127_spill] sm:$0xff] }
 0x549   : > { %v2475_v50 = vpop.permute.xlu0 %2474  ;;  %v2939_v32 = vsel %vm1303_vm5, %v2909_v7, %v8539_v10  ;;  %v8540_v25 = vld [vmem:[#allocation187_spill] sm:$0xff]  ;;  %v3992_v10 = vld [vmem:[%s4172_s10 + $0x68] sm:$0xff] }
 0x54a   : > { %3505 = vxpose.xlu1.b32.cont [5/16] (narrow) %v3473_v53, 8  ;;  %v3001_v60 = vsel %vm1369_vm6, %v2969_v56, %v2475_v50  ;;  %v2938_v53 = vsel %vm1303_vm5, %v2908_v35, %v8540_v25  ;;  %v2971_v51 = vsel %vm1336_vm4, %v2939_v32, %v8541_v46  ;;  %v8542_v50 = vld [vmem:[#allocation91_spill] sm:$0xff]  ;;  %v3993_v46 = vld [vmem:[%s4172_s10 + $0x70] sm:$0xff] }
 0x54b   : > { %v2754_v36 = vpop.permute.xlu1 %2753  ;;  %v2910_v19 = vsel %vm1270_vm3, %v8481_v43, %v8542_v50  ;;  %v8546_v43 = vld [vmem:[#allocation12_spill] sm:$0xff]  ;;  %v3994_v50 = vld [vmem:[%s4172_s10 + $0x78] sm:$0xff] }
 0x54c   : > { %v3095_v34 = vsel %vm1468_vm9, %v3063_v38, %v2754_v36  ;;  %v8543_v38 = vld [vmem:[#allocation17_spill] sm:$0xff]  ;;  %v8547_v28 = vunpack.i.l.bf16 %v8546_v43 }
 0x54d   : > { %v2844_v41 = vpop.permute.xlu0 %2843  ;;  %v2970_v49 = vsel %vm1336_vm4, %v2938_v53, %v8543_v38 }
 0x54e   : > { %v3127_v54 = vsel %vm1501_vm10, %v3095_v34, %v2844_v41  ;;  %3506 = vxpose.xlu1.b32.cont [6/16] (narrow) %v3474_v42, 8  ;;  %v8544_v34 = vld [vmem:[#allocation126_spill] sm:$0xff] }
 0x54f   : > { %v2756_v48 = vpop.permute.xlu1 %2755  ;;  %3907 = vmatprep.mubr.msk.f32.mxu1 %vm1546_vm11, %v3127_v54  ;;  %v2940_v41 = vsel %vm1303_vm5, %v2910_v19, %v8544_v34 }
 0x550   : > { %v3096_v31 = vsel %vm1468_vm9, %v3064_v63, %v2756_v48  ;;  %v8545_v48 = vld [vmem:[#allocation160_spill] sm:$0xff] }
 0x551   : > { %v2572_v2 = vpop.permute.xlu0 %2571  ;;  %v2972_v30 = vsel %vm1336_vm4, %v2940_v41, %v8545_v48  ;;  %v3996_v41 = vld [vmem:[%s4172_s10 + $0x88] sm:$0xff] }
 0x552   : > { %v3033_v14 = vsel %vm1402_vm7, %v3001_v60, %v2572_v2 }
 0x553   : > { %v2477_v62 = vpop.permute.xlu1 %2476  ;;  %v3879_v45 = vpop.f32.mrf.mxu1 }
 0x554   : > { %v3346_v22 = vadd.f32 %v3879_v45, %v7414_v11  ;;  %v3002_v54 = vsel %vm1369_vm6, %v2970_v49, %v2477_v62 }
 0x555   : > { %v2574_v58 = vpop.permute.xlu0 %2573  ;;  %v3340_v9 = vpop.f32.mrf.mxu1 }
 0x556   : > { %v3341_v13 = vadd.f32 %v7414_v11, %v3340_v9  ;;  %v3476_v16 = vadd.f32 %v3986_v12, %v3346_v22  ;;  %v3034_v62 = vsel %vm1402_vm7, %v3002_v54, %v2574_v58 }
 0x557   : > { %v2846_v27 = vpop.permute.xlu1 %2845 }
 0x558   : > { %v3475_v20 = vadd.f32 %v3985_v1, %v3341_v13  ;;  %v3128_v44 = vsel %vm1501_vm10, %v3096_v31, %v2846_v27  ;;  %v8548_v31 = vld [vmem:[#allocation16_spill] sm:$0xff]  ;;  %v8549_v1 = vunpack.i.h.bf16 %v8546_v43  ;;  %v3997_v43 = vld [vmem:[%s4172_s10 + $0x90] sm:$0xff] }
 0x559   : > { %v2670_v8 = vpop.permute.xlu0 %2669  ;;  %3908 = vmatmul.mubr.msk.f32.gmra.mxu1 %vm1546_vm11, %v3128_v44 }
 0x55a   : > { %3507 = vxpose.xlu1.b32.cont [7/16] (narrow) %v3475_v20, 8  ;;  %v3066_v63 = vsel %vm1435_vm8, %v3034_v62, %v2670_v8  ;;  %v8550_v8 = vld [vmem:[#allocation20_spill] sm:$0xff]  ;;  %v3999_v62 = vld [vmem:[%s4172_s10 + $0xa0] sm:$0xff] }
 0x55b   : > { %v2668_v0 = vpop.permute.xlu1 %2667  ;;  %v8551_v24 = vunpack.i.l.bf16 %v8550_v8  ;;  %v8552_v26 = vunpack.i.h.bf16 %v8550_v8 }
 0x55c   : > { %v3065_v23 = vsel %vm1435_vm8, %v3033_v14, %v2668_v0  ;;  %v3989_v14 = vld [vmem:[%s4172_s10 + $0x50] sm:$0xff] }
 0x55d   : > { %v2479_v5 = vpop.permute.xlu0 %2478 }
 0x55e   : > { %3508 = vxpose.xlu1.b32.cont [8/16] (narrow) %v3476_v16, 8  ;;  %v3003_v36 = vsel %vm1369_vm6, %v2971_v51, %v2479_v5 }
 0x55f   : > { %v2758_v52 = vpop.permute.xlu1 %2757 }
 0x560   : > { %v3097_v40 = vsel %vm1468_vm9, %v3065_v23, %v2758_v52  ;;  %v3990_v52 = vld [vmem:[%s4172_s10 + $0x58] sm:$0xff] }
 0x561   : > { %v2848_v33 = vpop.permute.xlu0 %2847 }
 0x562   : > { %v3129_v15 = vsel %vm1501_vm10, %v3097_v40, %v2848_v33 }
 0x563   : > { %v2760_v3 = vpop.permute.xlu1 %2759  ;;  %v3882_v29 = vpop.f32.mrf.mxu1  ;;  %3910 = vmatprep.mubr.msk.f32.mxu1 %vm1546_vm11, %v3129_v15 }
 0x564   : > { %v3356_v2 = vadd.f32 %v3882_v29, %v7414_v11  ;;  %v3098_v22 = vsel %vm1468_vm9, %v3066_v63, %v2760_v3  ;;  %v4000_v63 = vld [vmem:[%s4172_s10 + $0xa8] sm:$0xff] }
 0x565   : > { %v2576_v59 = vpop.permute.xlu0 %2575  ;;  %v3350_v42 = vpop.f32.mrf.mxu1 }
 0x566   : > { %v3035_v18 = vsel %vm1402_vm7, %v3003_v36, %v2576_v59  ;;  %v3351_v47 = vadd.f32 %v7414_v11, %v3350_v42  ;;  %v3478_v55 = vadd.f32 %v3988_v57, %v3356_v2  ;;  %v3995_v42 = vld [vmem:[%s4172_s10 + $0x80] sm:$0xff]  ;;  %v4002_v57 = vld [vmem:[%s4172_s10 + $0xb8] sm:$0xff] }
 0x567   : > { %v3067_v39 = vsel %vm1435_vm8, %v3035_v18, %v8547_v28  ;;  %v2481_v4 = vpop.permute.xlu1 %2480 }
 0x568   : > { %v3477_v45 = vadd.f32 %v3987_v6, %v3351_v47  ;;  %v3004_v21 = vsel %vm1369_vm6, %v2972_v30, %v2481_v4  ;;  %v3099_v27 = vsel %vm1468_vm9, %v3067_v39, %v8548_v31  ;;  %v3998_v39 = vld [vmem:[%s4172_s10 + $0x98] sm:$0xff] }
 0x569   : > { %v2578_v9 = vpop.permute.xlu0 %2577  ;;  %v3131_v61 = vsel %vm1501_vm10, %v3099_v27, %v8551_v24 }
 0x56a   : > { %v3036_v13 = vsel %vm1402_vm7, %v3004_v21, %v2578_v9  ;;  %3509 = vxpose.xlu1.b32.cont [9/16] (narrow) %v3477_v45, 8 }
 0x56b   : > { %v3068_v20 = vsel %vm1435_vm8, %v3036_v13, %v8549_v1  ;;  %v2850_v44 = vpop.permute.xlu1 %2849 }
 0x56c   : > { %v3130_v58 = vsel %vm1501_vm10, %v3098_v22, %v2850_v44  ;;  %v3100_v0 = vsel %vm1468_vm9, %v3068_v20, %v8548_v31  ;;  %v4001_v20 = vld [vmem:[%s4172_s10 + $0xb0] sm:$0xff] }
 0x56d   : > { %3911 = vmatmul.mubr.msk.f32.gmra.mxu1 %vm1546_vm11, %v3130_v58  ;;  %v3132_v56 = vsel %vm1501_vm10, %v3100_v0, %v8552_v26  ;;  %v4003_v0 = vld [vmem:[%s4172_s10 + $0xc0] sm:$0xff] }
 0x56e   : > { %3913 = vmatprep.mubr.msk.f32.mxu1 %vm1546_vm11, %v3131_v61  ;;  %3510 = vxpose.xlu1.b32.cont [10/16] (narrow) %v3478_v55, 8 }
 0x571   : > { %3914 = vmatmul.mubr.msk.f32.gmra.mxu1 %vm1546_vm11, %v3132_v56  ;;  %v4004_v56 = vld [vmem:[%s4172_s10 + $0xc8] sm:$0xff] }
 0x579   : > { %v3885_v12 = vpop.f32.mrf.mxu1 }
 0x57a   : > { %v3366_v5 = vadd.f32 %v3885_v12, %v7414_v11 }
 0x57b   : > { %v3360_v16 = vpop.f32.mrf.mxu1 }
 0x57c   : > { %v3361_v60 = vadd.f32 %v7414_v11, %v3360_v16  ;;  %v3480_v40 = vadd.f32 %v3990_v52, %v3366_v5 }
 0x57e   : > { %v3479_v23 = vadd.f32 %v3989_v14, %v3361_v60 }
 0x580   : > { %3511 = vxpose.xlu1.b32.cont [11/16] (narrow) %v3479_v23, 8  ;;  %v4005_v23 = vld [vmem:[%s4172_s10 + $0xd0] sm:$0xff] }
 0x584   : > { %3512 = vxpose.xlu1.b32.cont [12/16] (narrow) %v3480_v40, 8  ;;  %v4006_v40 = vld [vmem:[%s4172_s10 + $0xd8] sm:$0xff] }
 0x58d   : > { %v3888_v33 = vpop.f32.mrf.mxu1 }
 0x58e   : > { %v3376_v15 = vadd.f32 %v3888_v33, %v7414_v11 }
 0x58f   : > { %v3370_v37 = vpop.f32.mrf.mxu1 }
 0x590   : > { %v3371_v7 = vadd.f32 %v7414_v11, %v3370_v37  ;;  %v3482_v32 = vadd.f32 %v3992_v10, %v3376_v15  ;;  %v4007_v10 = vld [vmem:[%s4172_s10 + $0xe0] sm:$0xff] }
 0x592   : > { %v3481_v35 = vadd.f32 %v3991_v17, %v3371_v7 }
 0x594   : > { %3513 = vxpose.xlu1.b32.cont [13/16] (narrow) %v3481_v35, 8 }
 0x598   : > { %3514 = vxpose.xlu1.b32.cont [14/16] (narrow) %v3482_v32, 8 }
 0x5a1   : > { %v3891_v3 = vpop.f32.mrf.mxu1 }
 0x5a2   : > { %v3386_v53 = vadd.f32 %v3891_v3, %v7414_v11 }
 0x5a3   : > { %v3380_v29 = vpop.f32.mrf.mxu1 }
 0x5a4   : > { %v3381_v25 = vadd.f32 %v7414_v11, %v3380_v29  ;;  %v3484_v19 = vadd.f32 %v3994_v50, %v3386_v53  ;;  %v4008_v29 = vld [vmem:[%s4172_s10 + $0xe8] sm:$0xff] }
 0x5a6   : > { %v3483_v51 = vadd.f32 %v3993_v46, %v3381_v25 }
 0x5a8   : > { %3515 = vxpose.xlu1.b32.cont [15/16] (narrow) %v3483_v51, 8  ;;  %v4009_v51 = vld [vmem:[%s4172_s10 + $0xf0] sm:$0xff] }
 0x5ac   : > { %3516 = vxpose.xlu1.b32.end [16/16] (narrow) %v3484_v19, 8  ;;  %v4010_v19 = vld [vmem:[%s4172_s10 + $0xf8] sm:$0xff]  ;;  %s4082_s10 = smov [#allocation2]  }
 0x5ad   : > { %s4015_s23 = sshll.u32 %s4082_s10, 4  ;;  %s4016_s23 = int_to_ptr.vmem [resolvable:$false] %s4015_s23 }
 0x5ae   : > { %s4017_s22 = scalar_lea.vmem %s4016_s23, 256  ;;  %p4018_p0 = scmp.lt.s32.totalorder %s3586_s11, %s4016_s23 }
 0x5af   : > { %p4019_p1 = scmp.lt.s32.totalorder %s4017_s22, %s4011_s17 }
 0x5b1   : > { %p4020_p2 = por %p4019_p1, %p4018_p0 }
 0x5b3   : > { %p4021_p3 = pnand %p4020_p2, %p4014_p13 }
 0x5b5   : > { %v3894_v38 = vpop.f32.mrf.mxu1 }
 0x5b6   : > { %v3396_v59 = vadd.f32 %v3894_v38, %v7414_v11 }
 0x5b7   : > { %v3390_v49 = vpop.f32.mrf.mxu1 }
 0x5b8   : > { %v3391_v36 = vadd.f32 %v7414_v11, %v3390_v49  ;;  %v3486_v54 = vadd.f32 %v3996_v41, %v3396_v59 }
 0x5ba   : > { %v3485_v34 = vadd.f32 %v3995_v42, %v3391_v36 }
 0x5bc   : > { %3533 = vxpose.xlu0.b32.start [1/16] (narrow) %v3485_v34, 8 }
 0x5c0   : > { %3534 = vxpose.xlu0.b32.cont [2/16] (narrow) %v3486_v54, 8 }
 0x5c9   : > { %v3897_v18 = vpop.f32.mrf.mxu1 }
 0x5ca   : > { %v3406_v30 = vadd.f32 %v3897_v18, %v7414_v11 }
 0x5cb   : > { %v3400_v47 = vpop.f32.mrf.mxu1 }
 0x5cc   : > { %v3401_v48 = vadd.f32 %v7414_v11, %v3400_v47  ;;  %v3488_v4 = vadd.f32 %v3998_v39, %v3406_v30 }
 0x5ce   : > { %v3487_v28 = vadd.f32 %v3997_v43, %v3401_v48 }
 0x5d0   : > { %3535 = vxpose.xlu0.b32.cont [3/16] (narrow) %v3487_v28, 8 }
 0x5d4   : > { %3536 = vxpose.xlu0.b32.cont [4/16] (narrow) %v3488_v4, 8 }
 0x5dd   : > { %v3900_v2 = vpop.f32.mrf.mxu1 }
 0x5de   : > { %v3416_v21 = vadd.f32 %v3900_v2, %v7414_v11 }
 0x5df   : > { %v3410_v6 = vpop.f32.mrf.mxu1 }
 0x5e0   : > { %v3411_v45 = vadd.f32 %v7414_v11, %v3410_v6  ;;  %v3490_v13 = vadd.f32 %v4000_v63, %v3416_v21 }
 0x5e2   : > { %v3489_v9 = vadd.f32 %v3999_v62, %v3411_v45 }
 0x5e4   : > { %3537 = vxpose.xlu0.b32.cont [5/16] (narrow) %v3489_v9, 8 }
 0x5e8   : > { %3538 = vxpose.xlu0.b32.cont [6/16] (narrow) %v3490_v13, 8 }
 0x5ec   : > { %v3517_v49 = vpop.trf.xlu1 }
 0x5f1   : > { %v3903_v31 = vpop.f32.mrf.mxu1 }
 0x5f2   : > { %v3426_v1 = vadd.f32 %v3903_v31, %v7414_v11 }
 0x5f3   : > { %v3420_v27 = vpop.f32.mrf.mxu1 }
 0x5f4   : > { %v3421_v22 = vadd.f32 %v7414_v11, %v3420_v27  ;;  %v3492_v55 = vadd.f32 %v4002_v57, %v3426_v1 }
 0x5f6   : > { %v3491_v44 = vadd.f32 %v4001_v20, %v3421_v22 }
 0x5f8   : > { %3539 = vxpose.xlu0.b32.cont [7/16] (narrow) %v3491_v44, 8 }
 0x5fc   : > { %3540 = vxpose.xlu0.b32.cont [8/16] (narrow) %v3492_v55, 8 }
 0x605   : > { %v3906_v58 = vpop.f32.mrf.mxu1 }
 0x606   : > { %v3436_v61 = vadd.f32 %v3906_v58, %v7414_v11 }
 0x607   : > { %v3430_v8 = vpop.f32.mrf.mxu1 }
 0x608   : > { %v3431_v24 = vadd.f32 %v7414_v11, %v3430_v8  ;;  %v3494_v12 = vadd.f32 %v4004_v56, %v3436_v61 }
 0x60a   : > { %v3493_v26 = vadd.f32 %v4003_v0, %v3431_v24 }
 0x60c   : > { %3541 = vxpose.xlu0.b32.cont [9/16] (narrow) %v3493_v26, 8 }
 0x610   : > { %3542 = vxpose.xlu0.b32.cont [10/16] (narrow) %v3494_v12, 8 }
 0x619   : > { %v3909_v16 = vpop.f32.mrf.mxu1 }
 0x61a   : > { %v3446_v14 = vadd.f32 %v3909_v16, %v7414_v11 }
 0x61b   : > { %v3440_v60 = vpop.f32.mrf.mxu1 }
 0x61c   : > { %v3441_v5 = vadd.f32 %v7414_v11, %v3440_v60  ;;  %v3496_v33 = vadd.f32 %v4006_v40, %v3446_v14 }
 0x61e   : > { %v3495_v52 = vadd.f32 %v4005_v23, %v3441_v5 }
 0x620   : > { %3543 = vxpose.xlu0.b32.cont [11/16] (narrow) %v3495_v52, 8 }
 0x624   : > { %3544 = vxpose.xlu0.b32.cont [12/16] (narrow) %v3496_v33, 8 }
 0x62d   : > { %v3912_v37 = vpop.f32.mrf.mxu1 }
 0x62e   : > { %v3456_v35 = vadd.f32 %v3912_v37, %v7414_v11 }
 0x62f   : > { %v3450_v7 = vpop.f32.mrf.mxu1 }
 0x630   : > { %v3451_v15 = vadd.f32 %v7414_v11, %v3450_v7  ;;  %v3498_v25 = vadd.f32 %v4008_v29, %v3456_v35 }
 0x631   : > { %v3915_v17 = vpop.f32.mrf.mxu1 }
 0x632   : > { %v3497_v32 = vadd.f32 %v4007_v10, %v3451_v15  ;;  %v3466_v46 = vadd.f32 %v3915_v17, %v7414_v11 }
 0x633   : > { %v3460_v3 = vpop.f32.mrf.mxu1 }
 0x634   : > { %3545 = vxpose.xlu0.b32.cont [13/16] (narrow) %v3497_v32, 8  ;;  %v3461_v53 = vadd.f32 %v7414_v11, %v3460_v3  ;;  %v3500_v38 = vadd.f32 %v4010_v19, %v3466_v46 }
 0x636   : > { %v3499_v50 = vadd.f32 %v4009_v51, %v3461_v53 }
 0x638   : > { %3546 = vxpose.xlu0.b32.cont [14/16] (narrow) %v3498_v25, 8 }
 0x63c   : > { %3547 = vxpose.xlu0.b32.cont [15/16] (narrow) %v3499_v50, 8 }
 0x640   : > { %3548 = vxpose.xlu0.b32.end [16/16] (narrow) %v3500_v38, 8 }
 0x680   : > { %v3549_v36 = vpop.trf.xlu0 }
 0x681   : > { %v3567_v59 = vcombine.low %v3517_v49, %v3549_v36 }
 0x683   : > { %3569 = vst [vmem:[%s217_s30] sm:$0xff] %v3567_v59 }
 0x684   : > { %4024 = shalt.err (!%p4021_p3)
}
 0x685   : > { %s4025_s26 = scalar_lea.hbm %s3583_s8, 128  ;;  %s4029_s14 = scalar_lea.hbm %s7648_s5, 256 }
 0x686   : > { %p4026_p4 = scmp.ne.s32.totalorder %s3583_s8, %s4025_s26  ;;  %p4030_p9 = scmp.lt.s32.totalorder %s3583_s8, %s7648_s5 }
 0x687   : > { %p4031_p10 = scmp.lt.s32.totalorder %s4029_s14, %s4025_s26 }
 0x688   : > { %p4027_p7 = pnand %p4026_p4, %p4151_p5 }
 0x689   : > { %p4032_p11 = por %p4031_p10, %p4030_p9 }
 0x68a   : > { %p4028_p8 = pneg %p4027_p7 }
 0x68c   : > { %p4033_p12 = pnand %p4032_p11, %p4028_p8 }
 0x68e   : > { %4036 = shalt.err (!%p4033_p12)
}
 0x68f   : > { %3916 = dma.vmem_to_hbm [thread:$0]  (%p4151_p5), %s3586_s11, 128, %s3583_s8, %s3571_s9  }
 0x690 PF: > { %p3922_p13 = scmp.ge.s32.totalorder %s4071_s21, 2  ;;  %s3597_s25 = sand.u32 1, %s4059_s18  }
 0x691   : > { %s3598_s30 = scalar_lea.sflag [#allocation3], %s3597_s25 }
 0x692   : > { %p3919_p0 = pnand %p3922_p13, %p4155_p6 }
 0x694   : > { %p3920_p1 = pneg %p3919_p0 }
 0x696   : > { %4054 = dma.done.wait (%p3920_p1), %s3598_s30, 128  }
 0x697   : > { %4056 = vsyncadd (%p3920_p1), %s3598_s30, 4294967168  ;;  %p15_p2 = scmp.ge.s32.totalorder %s4138_s24, 4   ;;  %s8553_s18 = smov %s4063_s19 }
 0x698   : > { %s8554_s19 = smov %s4067_s20  ;;  %s8555_s20 = smov %s4149_s27 }
 0x699   : > { %s8556_s21 = smov %s4138_s24  ;;  %17 = sbr.rel (!%p15_p2) target bundleno = 3 (0x3), region = 75 }
 0x69e   :  { %3603 = vsyncpa [#allocation3], 1 }
 0x69f   :  { %3605 = vsyncpa [#allocation3 + $0x1], 1 }

</bundles_post_ra>
